<compile_context>
chip_gen: v5e
topology: v5e:2x2
jax: 0.10.0
libtpu: 0.0.40
codegen_flags: <defaults>
</compile_context>

<pallas_src>
import numpy as np
import jax
import jax.numpy as jnp
from jax.experimental import pallas as pl
from jax.experimental.pallas import tpu as pltpu

# ----------------------------------------------------------------------------
# Problem geometry (matches the PyTorch module defaults)
# ----------------------------------------------------------------------------
J = 16          # graph nodes (spatial H of every conv)
T = 8           # seq_len (channels of extractCNN / tcn convs)
C_IN = 2        # input coordinate channels
F = 3           # out_channels of SpatioTemporalGraphCNN.cnn (spatial W later)
PRED = 12       # pred_seq_len (channels of the tpcnn stack)
CP = 16         # padded channel count for the 12-channel tp stages
L_A = J * J     # 256 : flattened (J, J) grid of A
L_X = J * F     # 48  : flattened (J, F) grid of the ST-GCN output
NTAP = 9        # 3x3 conv taps

# Affine-pack column ids (per-channel scale/shift/bias vectors, padded to 16)
(C_E_S0, C_E_B0, C_A_S, C_A_B, C_CNN_B,
 C_T_S0, C_T_B0, C_T_BIAS, C_T_S1, C_T_B1,
 C_TP0_BIAS, C_TP0_S, C_TP0_B,
 C_TP1_BIAS, C_TP1_S, C_TP1_B,
 C_OUT_BIAS, N_AFF) = range(18)


# ----------------------------------------------------------------------------
# Fused whole-network kernel (one grid step == one batch element)
# ----------------------------------------------------------------------------
def _skeleton_kernel(prelu_e, prelu_t, prelu_0, prelu_1):
    def kernel(a_ref, v_ref, aff_ref, we_ref, sred_ref, weff_ref, e1_ref, md_ref,
               wt_ref, srep_ref, wtp0_ref, szero_ref, wtp1_ref, wout_ref, o_ref):

        def mm(a, b):  # bf16 MXU operands, f32 accumulation
            return jnp.dot(a.astype(jnp.bfloat16), b.astype(jnp.bfloat16),
                           preferred_element_type=jnp.float32)

        def aff(col, rows=CP):  # (rows, 1) per-channel affine column
            return aff_ref[0:rows, col:col + 1]

        def prelu(x, slope):
            return jnp.where(x >= 0.0, x, slope * x)

        def conv(x, wstack_ref, shift_ref, c_out):
            # y = sum_tap  W_tap @ x @ S_tap   (all matmuls, padding inside S)
            wx = mm(wstack_ref[...], x)                       # (NTAP*c_out, L_in)
            n_out = shift_ref.shape[-1]
            y = jnp.zeros((c_out, n_out), jnp.float32)
            for tap in range(NTAP):
                y = y + mm(wx[tap * c_out:(tap + 1) * c_out, :], shift_ref[tap])
            return y

        # ---- extractCNN(A), right-reduced over the trailing graph axis ------
        A = a_ref[0]                                          # (T, J*J)
        A = A * aff(C_E_S0, T) + aff(C_E_B0, T)               # BatchNorm2d (eval)
        A = prelu(A, prelu_e)
        asum = conv(A, we_ref, sred_ref, T)                   # (T, J) == sum_v A_out
        asum = asum * aff(C_A_S, T) + aff(C_A_B, T)           # conv bias + BN folded

        # ---- cnn(v) with the einsum Y-reduction folded into the weights -----
        xs = mm(weff_ref[...], v_ref[0]) + aff(C_CNN_B)       # (CP, J), rows>=F zero

        # ---- graph einsum 'bfjy,bsjv->bfjs' (+transpose) as outer product ---
        asum_t = mm(asum, e1_ref[...])                        # (T, L_X)
        xs_row = jnp.sum(mm(xs, e1_ref[...]) * md_ref[...], axis=0, keepdims=True)
        xg = asum_t * xs_row                                  # (T, L_X)

        # ---- tcn(x) + x ------------------------------------------------------
        xt = xg * aff(C_T_S0, T) + aff(C_T_B0, T)
        xt = prelu(xt, prelu_t)
        y = conv(xt, wt_ref, srep_ref, T) + aff(C_T_BIAS, T)
        y = y * aff(C_T_S1, T) + aff(C_T_B1, T)
        x_st = y + xg

        # ---- tpcnns[0] -> BN -> PReLU ----------------------------------------
        v1 = conv(x_st, wtp0_ref, szero_ref, CP) + aff(C_TP0_BIAS)
        v1 = prelu(v1 * aff(C_TP0_S) + aff(C_TP0_B), prelu_0)

        # ---- tpcnns[1] -> BN -> PReLU -> + residual ---------------------------
        v2 = conv(v1, wtp1_ref, szero_ref, CP) + aff(C_TP1_BIAS)
        v2 = prelu(v2 * aff(C_TP1_S) + aff(C_TP1_B), prelu_1) + v1

        # ---- tpcnn_ouput -------------------------------------------------------
        out = conv(v2, wout_ref, szero_ref, CP) + aff(C_OUT_BIAS)
        o_ref[0] = out

    return kernel


# ----------------------------------------------------------------------------
# Host-side constant construction (structural matrices + folded parameters)
# ----------------------------------------------------------------------------
def _shift_reduce_mats(H, W, kh, kw):
    """Replicate-padded 3x3 shift matrices, right-reduced over W: (9, H*W, H)."""
    ph, pw = (kh - 1) // 2, (kw - 1) // 2
    S = np.zeros((kh * kw, H * W, H), np.float32)
    for dh in range(kh):
        for dw in range(kw):
            tap = dh * kw + dw
            for h in range(H):
                for w in range(W):
                    sh = min(max(h + dh - ph, 0), H - 1)
                    sw = min(max(w + dw - pw, 0), W - 1)
                    S[tap, sh * W + sw, h] += 1.0
    return S


def _shift_mats(H, W, kh, kw, mode):
    """3x3 shift matrices on an (H, W) grid: (9, H*W, H*W). mode: replicate|zero."""
    ph, pw = (kh - 1) // 2, (kw - 1) // 2
    S = np.zeros((kh * kw, H * W, H * W), np.float32)
    for dh in range(kh):
        for dw in range(kw):
            tap = dh * kw + dw
            for h in range(H):
                for w in range(W):
                    sh, sw = h + dh - ph, w + dw - pw
                    if mode == "replicate":
                        sh = min(max(sh, 0), H - 1)
                        sw = min(max(sw, 0), W - 1)
                    elif not (0 <= sh < H and 0 <= sw < W):
                        continue
                    S[tap, sh * W + sw, h * W + w] = 1.0
    return S


def _wstack(w, c_out_pad, c_in_pad):
    """(C_out,C_in,kh,kw) -> (9*c_out_pad, c_in_pad): row tap*c_out_pad+co."""
    c_out, c_in, kh, kw = w.shape
    wt = jnp.transpose(w, (2, 3, 0, 1))
    wt = jnp.pad(wt, ((0, 0), (0, 0), (0, c_out_pad - c_out), (0, c_in_pad - c_in)))
    return wt.reshape(kh * kw * c_out_pad, c_in_pad).astype(jnp.float32)


def _pad16(x):
    x = jnp.asarray(x, jnp.float32)
    return jnp.pad(x, (0, CP - x.shape[0]))


def build_kernel_constants(p):
    # structural matrices (parameter independent)
    sred = jnp.asarray(_shift_reduce_mats(J, J, 3, 3))          # (9, 256, 16)
    srep = jnp.asarray(_shift_mats(J, F, 3, 3, "replicate"))    # (9, 48, 48)
    szero = jnp.asarray(_shift_mats(J, F, 3, 3, "zero"))        # (9, 48, 48)
    e1 = np.zeros((J, L_X), np.float32)
    e1[np.arange(L_X) // F, np.arange(L_X)] = 1.0                # tile j -> (j, f)
    md = np.zeros((CP, L_X), np.float32)
    md[np.arange(L_X) % F, np.arange(L_X)] = 1.0                 # pick f at (j, f)
    e1, md = jnp.asarray(e1), jnp.asarray(md)

    # cnn weight with the einsum Y-reduction folded in (valid y in [0, T-3])
    g = np.zeros((3, T), np.float32)
    for dw in range(3):
        for t in range(T):
            if 0 <= t - dw <= T - 3:
                g[dw, t] = 1.0
    weff = jnp.einsum("fcd,dt->fct", p["cnn_w"][:, :, 0, :], jnp.asarray(g))
    weff = jnp.pad(weff.reshape(F, C_IN * T), ((0, CP - F), (0, 0))).astype(jnp.float32)

    # stacked conv weights
    w_e = _wstack(p["e_conv_w"], T, T)          # (72, 8)
    w_t = _wstack(p["t_conv_w"], T, T)          # (72, 8)
    w_tp0 = _wstack(p["tp0_w"], CP, T)          # (144, 8)
    w_tp1 = _wstack(p["tp1_w"], CP, CP)         # (144, 16)
    w_out = _wstack(p["out_w"], CP, CP)         # (144, 16)

    # per-channel affine table (eval-mode BN folds, biases), channels padded to 16
    cols = [None] * N_AFF
    cols[C_E_S0] = _pad16(p["e_bn0_s"]); cols[C_E_B0] = _pad16(p["e_bn0_b"])
    cols[C_A_S] = _pad16(p["e_bn1_s"])
    cols[C_A_B] = _pad16(J * (p["e_bn1_s"] * p["e_conv_b"] + p["e_bn1_b"]))
    cols[C_CNN_B] = _pad16((T - 3 + 1) * p["cnn_b"])             # sum over 6 y positions
    cols[C_T_S0] = _pad16(p["t_bn0_s"]); cols[C_T_B0] = _pad16(p["t_bn0_b"])
    cols[C_T_BIAS] = _pad16(p["t_conv_b"])
    cols[C_T_S1] = _pad16(p["t_bn1_s"]); cols[C_T_B1] = _pad16(p["t_bn1_b"])
    cols[C_TP0_BIAS] = _pad16(p["tp0_b"])
    cols[C_TP0_S] = _pad16(p["tp0_bn_s"]); cols[C_TP0_B] = _pad16(p["tp0_bn_b"])
    cols[C_TP1_BIAS] = _pad16(p["tp1_b"])
    cols[C_TP1_S] = _pad16(p["tp1_bn_s"]); cols[C_TP1_B] = _pad16(p["tp1_bn_b"])
    cols[C_OUT_BIAS] = _pad16(p["out_b"])
    aff = jnp.stack(cols, axis=1)                # (16, N_AFF)

    return dict(aff=aff, w_e=w_e, sred=sred, weff=weff, e1=e1, md=md,
                w_t=w_t, srep=srep, w_tp0=w_tp0, szero=szero,
                w_tp1=w_tp1, w_out=w_out,
                prelu=(float(p["e_prelu"]), float(p["t_prelu"]),
                       float(p["prelu0"]), float(p["prelu1"])))


# ----------------------------------------------------------------------------
# Forward factory: one fused pallas_call, batch axis parallel over TensorCores
# ----------------------------------------------------------------------------
def make_forward(params):
    consts = build_kernel_constants(params)
    kernel = _skeleton_kernel(*consts["prelu"])
    const_names = ("aff", "w_e", "sred", "weff", "e1", "md",
                   "w_t", "srep", "w_tp0", "szero", "w_tp1", "w_out")
    const_arrays = tuple(consts[n] for n in const_names)

    def const_spec(arr):
        nd = arr.ndim
        return pl.BlockSpec(arr.shape, lambda b, _nd=nd: (0,) * _nd)

    @jax.jit
    def forward(v, a):
        B = v.shape[0]
        a_flat = a.reshape(B, T, L_A).astype(jnp.float32)                   # (B,8,256)
        v_flat = jnp.transpose(v, (0, 3, 1, 2)).reshape(B, C_IN * T, J)     # (B,16,16)
        v_flat = v_flat.astype(jnp.float32)

        out = pl.pallas_call(
            kernel,
            out_shape=jax.ShapeDtypeStruct((B, CP, L_X), jnp.float32),
            grid=(B,),
            in_specs=[
                pl.BlockSpec((1, T, L_A), lambda b: (b, 0, 0)),
                pl.BlockSpec((1, C_IN * T, J), lambda b: (b, 0, 0)),
            ] + [const_spec(arr) for arr in const_arrays],
            out_specs=pl.BlockSpec((1, CP, L_X), lambda b: (b, 0, 0)),
            compiler_params=pltpu.CompilerParams(
                dimension_semantics=("parallel",)),
        )(a_flat, v_flat, *const_arrays)

        return out[:, :PRED, :].reshape(B, PRED, J, F)

    return forward


# ----------------------------------------------------------------------------
# Deterministic synthetic parameters (BN folded to eval-mode scale/shift)
# ----------------------------------------------------------------------------
def init_params(key, in_channels=C_IN, out_channels=F, seq_len=T, pred_seq_len=PRED):
    ks = jax.random.split(key, 18)

    def conv_init(k, shape, scale=0.1):
        return jax.random.normal(k, shape, jnp.float32) * scale

    def bn_init(k, c):
        k1, k2, k3, k4 = jax.random.split(k, 4)
        gamma = jax.random.uniform(k1, (c,), jnp.float32, 0.5, 1.5)
        beta = jax.random.normal(k2, (c,), jnp.float32) * 0.1
        mean = jax.random.normal(k3, (c,), jnp.float32) * 0.1
        var = jax.random.uniform(k4, (c,), jnp.float32, 0.5, 1.5)
        scale = gamma / jnp.sqrt(var + 1e-5)
        shift = beta - mean * scale
        return scale, shift

    p = {}
    # st_gcns[0].extractCNN : BN(8) -> PReLU -> Conv2d(8,8,3x3, replicate) -> BN(8)
    p["e_bn0_s"], p["e_bn0_b"] = bn_init(ks[0], seq_len)
    p["e_prelu"] = 0.25
    p["e_conv_w"] = conv_init(ks[1], (seq_len, seq_len, 3, 3))
    p["e_conv_b"] = conv_init(ks[2], (seq_len,))
    p["e_bn1_s"], p["e_bn1_b"] = bn_init(ks[3], seq_len)
    # st_gcns[0].cnn : Conv2d(in_channels, out_channels, (1, 3)), no padding
    p["cnn_w"] = conv_init(ks[4], (out_channels, in_channels, 1, 3))
    p["cnn_b"] = conv_init(ks[5], (out_channels,))
    # st_gcns[0].tcn : BN(8) -> PReLU -> Conv2d(8,8,3, replicate pad=1) -> BN(8)
    p["t_bn0_s"], p["t_bn0_b"] = bn_init(ks[6], seq_len)
    p["t_prelu"] = 0.25
    p["t_conv_w"] = conv_init(ks[7], (seq_len, seq_len, 3, 3))
    p["t_conv_b"] = conv_init(ks[8], (seq_len,))
    p["t_bn1_s"], p["t_bn1_b"] = bn_init(ks[9], seq_len)
    # tpcnns[0] : Conv2d(8,12,3,pad=1) + BN(12) ; prelus[0]
    p["tp0_w"] = conv_init(ks[10], (pred_seq_len, seq_len, 3, 3))
    p["tp0_b"] = conv_init(ks[11], (pred_seq_len,))
    p["tp0_bn_s"], p["tp0_bn_b"] = bn_init(ks[12], pred_seq_len)
    p["prelu0"] = 0.25
    # tpcnns[1] : Conv2d(12,12,3,pad=1) + BN(12) ; prelus[1]
    p["tp1_w"] = conv_init(ks[13], (pred_seq_len, pred_seq_len, 3, 3))
    p["tp1_b"] = conv_init(ks[14], (pred_seq_len,))
    p["tp1_bn_s"], p["tp1_bn_b"] = bn_init(ks[15], pred_seq_len)
    p["prelu1"] = 0.25
    # tpcnn_ouput : Conv2d(12,12,3,pad=1)   (tpcnns[2]/prelus[2] are dead in forward)
    p["out_w"] = conv_init(ks[16], (pred_seq_len, pred_seq_len, 3, 3))
    p["out_b"] = conv_init(ks[17], (pred_seq_len,))
    return p


if __name__ == "__main__":
    key = jax.random.PRNGKey(0)
    kp, kv, ka = jax.random.split(key, 3)

    B = 2
    params = init_params(kp)
    forward = make_forward(params)

    v = jax.random.normal(kv, (B, T, J, C_IN), jnp.float32)     # (2, 8, 16, 2)
    a = jax.random.normal(ka, (B, T, J, J), jnp.float32)        # (2, 8, 16, 16)

    out = jax.block_until_ready(forward(v, a))
    assert out.shape == (B, PRED, J, F), out.shape
    assert bool(jnp.all(jnp.isfinite(out)))
    print("KERNEL_OK")
</pallas_src>

<mosaic_0001>
module attributes {stable_mosaic.version = 11 : i64} {
  func.func @kernel(%arg0: i32, %arg1: memref<1x8x256xf32, #tpu.memory_space<vmem>>, %arg2: memref<1x16x16xf32, #tpu.memory_space<vmem>>, %arg3: memref<16x17xf32, #tpu.memory_space<vmem>>, %arg4: memref<72x8xf32, #tpu.memory_space<vmem>>, %arg5: memref<9x256x16xf32, #tpu.memory_space<vmem>>, %arg6: memref<16x16xf32, #tpu.memory_space<vmem>>, %arg7: memref<16x48xf32, #tpu.memory_space<vmem>>, %arg8: memref<16x48xf32, #tpu.memory_space<vmem>>, %arg9: memref<72x8xf32, #tpu.memory_space<vmem>>, %arg10: memref<9x48x48xf32, #tpu.memory_space<vmem>>, %arg11: memref<144x8xf32, #tpu.memory_space<vmem>>, %arg12: memref<9x48x48xf32, #tpu.memory_space<vmem>>, %arg13: memref<144x16xf32, #tpu.memory_space<vmem>>, %arg14: memref<144x16xf32, #tpu.memory_space<vmem>>, %arg15: memref<1x16x48xf32, #tpu.memory_space<vmem>>) attributes {dimension_semantics = [#tpu.dimension_semantics<parallel>], iteration_bounds = array<i64: 2>, scalar_prefetch = 0 : i64, scratch_operands = 0 : i64, tpu.core_type = #tpu.core_type<tc>, window_params = [{transform_indices = @transform_0, window_bounds = array<i64: 1, 8, 256>}, {transform_indices = @transform_1, window_bounds = array<i64: 1, 16, 16>}, {pipeline_mode = #tpu.pipeline_mode<synchronous>, transform_indices = @transform_2, window_bounds = array<i64: 16, 17>}, {pipeline_mode = #tpu.pipeline_mode<synchronous>, transform_indices = @transform_3, window_bounds = array<i64: 72, 8>}, {pipeline_mode = #tpu.pipeline_mode<synchronous>, transform_indices = @transform_4, window_bounds = array<i64: 9, 256, 16>}, {pipeline_mode = #tpu.pipeline_mode<synchronous>, transform_indices = @transform_5, window_bounds = array<i64: 16, 16>}, {pipeline_mode = #tpu.pipeline_mode<synchronous>, transform_indices = @transform_6, window_bounds = array<i64: 16, 48>}, {pipeline_mode = #tpu.pipeline_mode<synchronous>, transform_indices = @transform_7, window_bounds = array<i64: 16, 48>}, {pipeline_mode = #tpu.pipeline_mode<synchronous>, transform_indices = @transform_8, window_bounds = array<i64: 72, 8>}, {pipeline_mode = #tpu.pipeline_mode<synchronous>, transform_indices = @transform_9, window_bounds = array<i64: 9, 48, 48>}, {pipeline_mode = #tpu.pipeline_mode<synchronous>, transform_indices = @transform_10, window_bounds = array<i64: 144, 8>}, {pipeline_mode = #tpu.pipeline_mode<synchronous>, transform_indices = @transform_11, window_bounds = array<i64: 9, 48, 48>}, {pipeline_mode = #tpu.pipeline_mode<synchronous>, transform_indices = @transform_12, window_bounds = array<i64: 144, 16>}, {pipeline_mode = #tpu.pipeline_mode<synchronous>, transform_indices = @transform_13, window_bounds = array<i64: 144, 16>}, {transform_indices = @transform_14, window_bounds = array<i64: 1, 16, 48>}]} {
    %c0 = arith.constant 0 : index
    %c0_0 = arith.constant 0 : index
    %c0_1 = arith.constant 0 : index
    %0 = vector.load %arg1[%c0, %c0_0, %c0_1] : memref<1x8x256xf32, #tpu.memory_space<vmem>>, vector<1x8x256xf32>
    %1 = vector.shape_cast %0 : vector<1x8x256xf32> to vector<8x256xf32>
    %c0_2 = arith.constant 0 : index
    %c0_3 = arith.constant 0 : index
    %2 = vector.load %arg3[%c0_2, %c0_3] : memref<16x17xf32, #tpu.memory_space<vmem>>, vector<8x1xf32>
    %3 = vector.broadcast %2 : vector<8x1xf32> to vector<8x256xf32>
    %4 = arith.mulf %1, %3 : vector<8x256xf32>
    %c0_4 = arith.constant 0 : index
    %c1 = arith.constant 1 : index
    %5 = vector.load %arg3[%c0_4, %c1] : memref<16x17xf32, #tpu.memory_space<vmem>>, vector<8x1xf32>
    %6 = vector.broadcast %5 : vector<8x1xf32> to vector<8x256xf32>
    %7 = arith.addf %4, %6 : vector<8x256xf32>
    %cst = arith.constant 0.000000e+00 : f32
    %8 = vector.broadcast %cst : f32 to vector<8x256xf32>
    %9 = arith.cmpf oge, %7, %8 : vector<8x256xf32>
    %cst_5 = arith.constant 2.500000e-01 : f32
    %10 = vector.broadcast %cst_5 : f32 to vector<8x256xf32>
    %11 = arith.mulf %10, %7 : vector<8x256xf32>
    %12 = arith.select %9, %7, %11 : vector<8x256xi1>, vector<8x256xf32>
    %c0_6 = arith.constant 0 : index
    %c0_7 = arith.constant 0 : index
    %13 = vector.load %arg4[%c0_6, %c0_7] : memref<72x8xf32, #tpu.memory_space<vmem>>, vector<72x8xf32>
    %14 = arith.truncf %13 : vector<72x8xf32> to vector<72x8xbf16>
    %15 = arith.truncf %12 : vector<8x256xf32> to vector<8x256xbf16>
    %cst_8 = arith.constant dense<0.000000e+00> : vector<72x256xf32>
    %16 = tpu.matmul %14, %15, %cst_8 {dimension_numbers = #tpu.dot_dimension_numbers<[1], [0], [0], [1], [0, 0, 1, 1], [], []>} : vector<72x8xbf16>, vector<8x256xbf16>, vector<72x256xf32> -> vector<72x256xf32>
    %cst_9 = arith.constant 0.000000e+00 : f32
    %17 = vector.broadcast %cst_9 : f32 to vector<8x16xf32>
    %18 = vector.extract_strided_slice %16 {offsets = [0, 0], sizes = [8, 256], strides = [1, 1]} : vector<72x256xf32> to vector<8x256xf32>
    %c0_10 = arith.constant 0 : index
    %c0_11 = arith.constant 0 : index
    %c0_12 = arith.constant 0 : index
    %19 = vector.load %arg5[%c0_10, %c0_11, %c0_12] : memref<9x256x16xf32, #tpu.memory_space<vmem>>, vector<1x256x16xf32>
    %20 = vector.shape_cast %19 : vector<1x256x16xf32> to vector<256x16xf32>
    %21 = arith.truncf %18 : vector<8x256xf32> to vector<8x256xbf16>
    %22 = arith.truncf %20 : vector<256x16xf32> to vector<256x16xbf16>
    %cst_13 = arith.constant dense<0.000000e+00> : vector<8x16xf32>
    %23 = tpu.matmul %21, %22, %cst_13 {dimension_numbers = #tpu.dot_dimension_numbers<[1], [0], [0], [1], [0, 0, 1, 1], [], []>} : vector<8x256xbf16>, vector<256x16xbf16>, vector<8x16xf32> -> vector<8x16xf32>
    %24 = arith.addf %17, %23 : vector<8x16xf32>
    %25 = vector.extract_strided_slice %16 {offsets = [8, 0], sizes = [8, 256], strides = [1, 1]} : vector<72x256xf32> to vector<8x256xf32>
    %c1_14 = arith.constant 1 : index
    %c0_15 = arith.constant 0 : index
    %c0_16 = arith.constant 0 : index
    %26 = vector.load %arg5[%c1_14, %c0_15, %c0_16] : memref<9x256x16xf32, #tpu.memory_space<vmem>>, vector<1x256x16xf32>
    %27 = vector.shape_cast %26 : vector<1x256x16xf32> to vector<256x16xf32>
    %28 = arith.truncf %25 : vector<8x256xf32> to vector<8x256xbf16>
    %29 = arith.truncf %27 : vector<256x16xf32> to vector<256x16xbf16>
    %cst_17 = arith.constant dense<0.000000e+00> : vector<8x16xf32>
    %30 = tpu.matmul %28, %29, %cst_17 {dimension_numbers = #tpu.dot_dimension_numbers<[1], [0], [0], [1], [0, 0, 1, 1], [], []>} : vector<8x256xbf16>, vector<256x16xbf16>, vector<8x16xf32> -> vector<8x16xf32>
    %31 = arith.addf %24, %30 : vector<8x16xf32>
    %32 = vector.extract_strided_slice %16 {offsets = [16, 0], sizes = [8, 256], strides = [1, 1]} : vector<72x256xf32> to vector<8x256xf32>
    %c2 = arith.constant 2 : index
    %c0_18 = arith.constant 0 : index
    %c0_19 = arith.constant 0 : index
    %33 = vector.load %arg5[%c2, %c0_18, %c0_19] : memref<9x256x16xf32, #tpu.memory_space<vmem>>, vector<1x256x16xf32>
    %34 = vector.shape_cast %33 : vector<1x256x16xf32> to vector<256x16xf32>
    %35 = arith.truncf %32 : vector<8x256xf32> to vector<8x256xbf16>
    %36 = arith.truncf %34 : vector<256x16xf32> to vector<256x16xbf16>
    %cst_20 = arith.constant dense<0.000000e+00> : vector<8x16xf32>
    %37 = tpu.matmul %35, %36, %cst_20 {dimension_numbers = #tpu.dot_dimension_numbers<[1], [0], [0], [1], [0, 0, 1, 1], [], []>} : vector<8x256xbf16>, vector<256x16xbf16>, vector<8x16xf32> -> vector<8x16xf32>
    %38 = arith.addf %31, %37 : vector<8x16xf32>
    %39 = vector.extract_strided_slice %16 {offsets = [24, 0], sizes = [8, 256], strides = [1, 1]} : vector<72x256xf32> to vector<8x256xf32>
    %c3 = arith.constant 3 : index
    %c0_21 = arith.constant 0 : index
    %c0_22 = arith.constant 0 : index
    %40 = vector.load %arg5[%c3, %c0_21, %c0_22] : memref<9x256x16xf32, #tpu.memory_space<vmem>>, vector<1x256x16xf32>
    %41 = vector.shape_cast %40 : vector<1x256x16xf32> to vector<256x16xf32>
    %42 = arith.truncf %39 : vector<8x256xf32> to vector<8x256xbf16>
    %43 = arith.truncf %41 : vector<256x16xf32> to vector<256x16xbf16>
    %cst_23 = arith.constant dense<0.000000e+00> : vector<8x16xf32>
    %44 = tpu.matmul %42, %43, %cst_23 {dimension_numbers = #tpu.dot_dimension_numbers<[1], [0], [0], [1], [0, 0, 1, 1], [], []>} : vector<8x256xbf16>, vector<256x16xbf16>, vector<8x16xf32> -> vector<8x16xf32>
    %45 = arith.addf %38, %44 : vector<8x16xf32>
    %46 = vector.extract_strided_slice %16 {offsets = [32, 0], sizes = [8, 256], strides = [1, 1]} : vector<72x256xf32> to vector<8x256xf32>
    %c4 = arith.constant 4 : index
    %c0_24 = arith.constant 0 : index
    %c0_25 = arith.constant 0 : index
    %47 = vector.load %arg5[%c4, %c0_24, %c0_25] : memref<9x256x16xf32, #tpu.memory_space<vmem>>, vector<1x256x16xf32>
    %48 = vector.shape_cast %47 : vector<1x256x16xf32> to vector<256x16xf32>
    %49 = arith.truncf %46 : vector<8x256xf32> to vector<8x256xbf16>
    %50 = arith.truncf %48 : vector<256x16xf32> to vector<256x16xbf16>
    %cst_26 = arith.constant dense<0.000000e+00> : vector<8x16xf32>
    %51 = tpu.matmul %49, %50, %cst_26 {dimension_numbers = #tpu.dot_dimension_numbers<[1], [0], [0], [1], [0, 0, 1, 1], [], []>} : vector<8x256xbf16>, vector<256x16xbf16>, vector<8x16xf32> -> vector<8x16xf32>
    %52 = arith.addf %45, %51 : vector<8x16xf32>
    %53 = vector.extract_strided_slice %16 {offsets = [40, 0], sizes = [8, 256], strides = [1, 1]} : vector<72x256xf32> to vector<8x256xf32>
    %c5 = arith.constant 5 : index
    %c0_27 = arith.constant 0 : index
    %c0_28 = arith.constant 0 : index
    %54 = vector.load %arg5[%c5, %c0_27, %c0_28] : memref<9x256x16xf32, #tpu.memory_space<vmem>>, vector<1x256x16xf32>
    %55 = vector.shape_cast %54 : vector<1x256x16xf32> to vector<256x16xf32>
    %56 = arith.truncf %53 : vector<8x256xf32> to vector<8x256xbf16>
    %57 = arith.truncf %55 : vector<256x16xf32> to vector<256x16xbf16>
    %cst_29 = arith.constant dense<0.000000e+00> : vector<8x16xf32>
    %58 = tpu.matmul %56, %57, %cst_29 {dimension_numbers = #tpu.dot_dimension_numbers<[1], [0], [0], [1], [0, 0, 1, 1], [], []>} : vector<8x256xbf16>, vector<256x16xbf16>, vector<8x16xf32> -> vector<8x16xf32>
    %59 = arith.addf %52, %58 : vector<8x16xf32>
    %60 = vector.extract_strided_slice %16 {offsets = [48, 0], sizes = [8, 256], strides = [1, 1]} : vector<72x256xf32> to vector<8x256xf32>
    %c6 = arith.constant 6 : index
    %c0_30 = arith.constant 0 : index
    %c0_31 = arith.constant 0 : index
    %61 = vector.load %arg5[%c6, %c0_30, %c0_31] : memref<9x256x16xf32, #tpu.memory_space<vmem>>, vector<1x256x16xf32>
    %62 = vector.shape_cast %61 : vector<1x256x16xf32> to vector<256x16xf32>
    %63 = arith.truncf %60 : vector<8x256xf32> to vector<8x256xbf16>
    %64 = arith.truncf %62 : vector<256x16xf32> to vector<256x16xbf16>
    %cst_32 = arith.constant dense<0.000000e+00> : vector<8x16xf32>
    %65 = tpu.matmul %63, %64, %cst_32 {dimension_numbers = #tpu.dot_dimension_numbers<[1], [0], [0], [1], [0, 0, 1, 1], [], []>} : vector<8x256xbf16>, vector<256x16xbf16>, vector<8x16xf32> -> vector<8x16xf32>
    %66 = arith.addf %59, %65 : vector<8x16xf32>
    %67 = vector.extract_strided_slice %16 {offsets = [56, 0], sizes = [8, 256], strides = [1, 1]} : vector<72x256xf32> to vector<8x256xf32>
    %c7 = arith.constant 7 : index
    %c0_33 = arith.constant 0 : index
    %c0_34 = arith.constant 0 : index
    %68 = vector.load %arg5[%c7, %c0_33, %c0_34] : memref<9x256x16xf32, #tpu.memory_space<vmem>>, vector<1x256x16xf32>
    %69 = vector.shape_cast %68 : vector<1x256x16xf32> to vector<256x16xf32>
    %70 = arith.truncf %67 : vector<8x256xf32> to vector<8x256xbf16>
    %71 = arith.truncf %69 : vector<256x16xf32> to vector<256x16xbf16>
    %cst_35 = arith.constant dense<0.000000e+00> : vector<8x16xf32>
    %72 = tpu.matmul %70, %71, %cst_35 {dimension_numbers = #tpu.dot_dimension_numbers<[1], [0], [0], [1], [0, 0, 1, 1], [], []>} : vector<8x256xbf16>, vector<256x16xbf16>, vector<8x16xf32> -> vector<8x16xf32>
    %73 = arith.addf %66, %72 : vector<8x16xf32>
    %74 = vector.extract_strided_slice %16 {offsets = [64, 0], sizes = [8, 256], strides = [1, 1]} : vector<72x256xf32> to vector<8x256xf32>
    %c8 = arith.constant 8 : index
    %c0_36 = arith.constant 0 : index
    %c0_37 = arith.constant 0 : index
    %75 = vector.load %arg5[%c8, %c0_36, %c0_37] : memref<9x256x16xf32, #tpu.memory_space<vmem>>, vector<1x256x16xf32>
    %76 = vector.shape_cast %75 : vector<1x256x16xf32> to vector<256x16xf32>
    %77 = arith.truncf %74 : vector<8x256xf32> to vector<8x256xbf16>
    %78 = arith.truncf %76 : vector<256x16xf32> to vector<256x16xbf16>
    %cst_38 = arith.constant dense<0.000000e+00> : vector<8x16xf32>
    %79 = tpu.matmul %77, %78, %cst_38 {dimension_numbers = #tpu.dot_dimension_numbers<[1], [0], [0], [1], [0, 0, 1, 1], [], []>} : vector<8x256xbf16>, vector<256x16xbf16>, vector<8x16xf32> -> vector<8x16xf32>
    %80 = arith.addf %73, %79 : vector<8x16xf32>
    %c0_39 = arith.constant 0 : index
    %c2_40 = arith.constant 2 : index
    %81 = vector.load %arg3[%c0_39, %c2_40] : memref<16x17xf32, #tpu.memory_space<vmem>>, vector<8x1xf32>
    %82 = vector.broadcast %81 : vector<8x1xf32> to vector<8x16xf32>
    %83 = arith.mulf %80, %82 : vector<8x16xf32>
    %c0_41 = arith.constant 0 : index
    %c3_42 = arith.constant 3 : index
    %84 = vector.load %arg3[%c0_41, %c3_42] : memref<16x17xf32, #tpu.memory_space<vmem>>, vector<8x1xf32>
    %85 = vector.broadcast %84 : vector<8x1xf32> to vector<8x16xf32>
    %86 = arith.addf %83, %85 : vector<8x16xf32>
    %c0_43 = arith.constant 0 : index
    %c0_44 = arith.constant 0 : index
    %87 = vector.load %arg6[%c0_43, %c0_44] : memref<16x16xf32, #tpu.memory_space<vmem>>, vector<16x16xf32>
    %c0_45 = arith.constant 0 : index
    %c0_46 = arith.constant 0 : index
    %c0_47 = arith.constant 0 : index
    %88 = vector.load %arg2[%c0_45, %c0_46, %c0_47] : memref<1x16x16xf32, #tpu.memory_space<vmem>>, vector<1x16x16xf32>
    %89 = vector.shape_cast %88 : vector<1x16x16xf32> to vector<16x16xf32>
    %90 = arith.truncf %87 : vector<16x16xf32> to vector<16x16xbf16>
    %91 = arith.truncf %89 : vector<16x16xf32> to vector<16x16xbf16>
    %cst_48 = arith.constant dense<0.000000e+00> : vector<16x16xf32>
    %92 = tpu.matmul %90, %91, %cst_48 {dimension_numbers = #tpu.dot_dimension_numbers<[1], [0], [0], [1], [0, 0, 1, 1], [], []>} : vector<16x16xbf16>, vector<16x16xbf16>, vector<16x16xf32> -> vector<16x16xf32>
    %c0_49 = arith.constant 0 : index
    %c4_50 = arith.constant 4 : index
    %93 = vector.load %arg3[%c0_49, %c4_50] : memref<16x17xf32, #tpu.memory_space<vmem>>, vector<16x1xf32>
    %94 = vector.broadcast %93 : vector<16x1xf32> to vector<16x16xf32>
    %95 = arith.addf %92, %94 : vector<16x16xf32>
    %c0_51 = arith.constant 0 : index
    %c0_52 = arith.constant 0 : index
    %96 = vector.load %arg7[%c0_51, %c0_52] : memref<16x48xf32, #tpu.memory_space<vmem>>, vector<16x48xf32>
    %97 = arith.truncf %86 : vector<8x16xf32> to vector<8x16xbf16>
    %98 = arith.truncf %96 : vector<16x48xf32> to vector<16x48xbf16>
    %cst_53 = arith.constant dense<0.000000e+00> : vector<8x48xf32>
    %99 = tpu.matmul %97, %98, %cst_53 {dimension_numbers = #tpu.dot_dimension_numbers<[1], [0], [0], [1], [0, 0, 1, 1], [], []>} : vector<8x16xbf16>, vector<16x48xbf16>, vector<8x48xf32> -> vector<8x48xf32>
    %c0_54 = arith.constant 0 : index
    %c0_55 = arith.constant 0 : index
    %100 = vector.load %arg7[%c0_54, %c0_55] : memref<16x48xf32, #tpu.memory_space<vmem>>, vector<16x48xf32>
    %101 = arith.truncf %95 : vector<16x16xf32> to vector<16x16xbf16>
    %102 = arith.truncf %100 : vector<16x48xf32> to vector<16x48xbf16>
    %cst_56 = arith.constant dense<0.000000e+00> : vector<16x48xf32>
    %103 = tpu.matmul %101, %102, %cst_56 {dimension_numbers = #tpu.dot_dimension_numbers<[1], [0], [0], [1], [0, 0, 1, 1], [], []>} : vector<16x16xbf16>, vector<16x48xbf16>, vector<16x48xf32> -> vector<16x48xf32>
    %c0_57 = arith.constant 0 : index
    %c0_58 = arith.constant 0 : index
    %104 = vector.load %arg8[%c0_57, %c0_58] : memref<16x48xf32, #tpu.memory_space<vmem>>, vector<16x48xf32>
    %105 = arith.mulf %103, %104 : vector<16x48xf32>
    %cst_59 = arith.constant dense<0.000000e+00> : vector<48xf32>
    %106 = vector.multi_reduction <add>, %105, %cst_59 [0] : vector<16x48xf32> to vector<48xf32>
    %107 = vector.shape_cast %106 : vector<48xf32> to vector<1x48xf32>
    %108 = vector.broadcast %107 : vector<1x48xf32> to vector<8x48xf32>
    %109 = arith.mulf %99, %108 : vector<8x48xf32>
    %c0_60 = arith.constant 0 : index
    %c5_61 = arith.constant 5 : index
    %110 = vector.load %arg3[%c0_60, %c5_61] : memref<16x17xf32, #tpu.memory_space<vmem>>, vector<8x1xf32>
    %111 = vector.broadcast %110 : vector<8x1xf32> to vector<8x48xf32>
    %112 = arith.mulf %109, %111 : vector<8x48xf32>
    %c0_62 = arith.constant 0 : index
    %c6_63 = arith.constant 6 : index
    %113 = vector.load %arg3[%c0_62, %c6_63] : memref<16x17xf32, #tpu.memory_space<vmem>>, vector<8x1xf32>
    %114 = vector.broadcast %113 : vector<8x1xf32> to vector<8x48xf32>
    %115 = arith.addf %112, %114 : vector<8x48xf32>
    %cst_64 = arith.constant 0.000000e+00 : f32
    %116 = vector.broadcast %cst_64 : f32 to vector<8x48xf32>
    %117 = arith.cmpf oge, %115, %116 : vector<8x48xf32>
    %cst_65 = arith.constant 2.500000e-01 : f32
    %118 = vector.broadcast %cst_65 : f32 to vector<8x48xf32>
    %119 = arith.mulf %118, %115 : vector<8x48xf32>
    %120 = arith.select %117, %115, %119 : vector<8x48xi1>, vector<8x48xf32>
    %c0_66 = arith.constant 0 : index
    %c0_67 = arith.constant 0 : index
    %121 = vector.load %arg9[%c0_66, %c0_67] : memref<72x8xf32, #tpu.memory_space<vmem>>, vector<72x8xf32>
    %122 = arith.truncf %121 : vector<72x8xf32> to vector<72x8xbf16>
    %123 = arith.truncf %120 : vector<8x48xf32> to vector<8x48xbf16>
    %cst_68 = arith.constant dense<0.000000e+00> : vector<72x48xf32>
    %124 = tpu.matmul %122, %123, %cst_68 {dimension_numbers = #tpu.dot_dimension_numbers<[1], [0], [0], [1], [0, 0, 1, 1], [], []>} : vector<72x8xbf16>, vector<8x48xbf16>, vector<72x48xf32> -> vector<72x48xf32>
    %cst_69 = arith.constant 0.000000e+00 : f32
    %125 = vector.broadcast %cst_69 : f32 to vector<8x48xf32>
    %126 = vector.extract_strided_slice %124 {offsets = [0, 0], sizes = [8, 48], strides = [1, 1]} : vector<72x48xf32> to vector<8x48xf32>
    %c0_70 = arith.constant 0 : index
    %c0_71 = arith.constant 0 : index
    %c0_72 = arith.constant 0 : index
    %127 = vector.load %arg10[%c0_70, %c0_71, %c0_72] : memref<9x48x48xf32, #tpu.memory_space<vmem>>, vector<1x48x48xf32>
    %128 = vector.shape_cast %127 : vector<1x48x48xf32> to vector<48x48xf32>
    %129 = arith.truncf %126 : vector<8x48xf32> to vector<8x48xbf16>
    %130 = arith.truncf %128 : vector<48x48xf32> to vector<48x48xbf16>
    %cst_73 = arith.constant dense<0.000000e+00> : vector<8x48xf32>
    %131 = tpu.matmul %129, %130, %cst_73 {dimension_numbers = #tpu.dot_dimension_numbers<[1], [0], [0], [1], [0, 0, 1, 1], [], []>} : vector<8x48xbf16>, vector<48x48xbf16>, vector<8x48xf32> -> vector<8x48xf32>
    %132 = arith.addf %125, %131 : vector<8x48xf32>
    %133 = vector.extract_strided_slice %124 {offsets = [8, 0], sizes = [8, 48], strides = [1, 1]} : vector<72x48xf32> to vector<8x48xf32>
    %c1_74 = arith.constant 1 : index
    %c0_75 = arith.constant 0 : index
    %c0_76 = arith.constant 0 : index
    %134 = vector.load %arg10[%c1_74, %c0_75, %c0_76] : memref<9x48x48xf32, #tpu.memory_space<vmem>>, vector<1x48x48xf32>
    %135 = vector.shape_cast %134 : vector<1x48x48xf32> to vector<48x48xf32>
    %136 = arith.truncf %133 : vector<8x48xf32> to vector<8x48xbf16>
    %137 = arith.truncf %135 : vector<48x48xf32> to vector<48x48xbf16>
    %cst_77 = arith.constant dense<0.000000e+00> : vector<8x48xf32>
    %138 = tpu.matmul %136, %137, %cst_77 {dimension_numbers = #tpu.dot_dimension_numbers<[1], [0], [0], [1], [0, 0, 1, 1], [], []>} : vector<8x48xbf16>, vector<48x48xbf16>, vector<8x48xf32> -> vector<8x48xf32>
    %139 = arith.addf %132, %138 : vector<8x48xf32>
    %140 = vector.extract_strided_slice %124 {offsets = [16, 0], sizes = [8, 48], strides = [1, 1]} : vector<72x48xf32> to vector<8x48xf32>
    %c2_78 = arith.constant 2 : index
    %c0_79 = arith.constant 0 : index
    %c0_80 = arith.constant 0 : index
    %141 = vector.load %arg10[%c2_78, %c0_79, %c0_80] : memref<9x48x48xf32, #tpu.memory_space<vmem>>, vector<1x48x48xf32>
    %142 = vector.shape_cast %141 : vector<1x48x48xf32> to vector<48x48xf32>
    %143 = arith.truncf %140 : vector<8x48xf32> to vector<8x48xbf16>
    %144 = arith.truncf %142 : vector<48x48xf32> to vector<48x48xbf16>
    %cst_81 = arith.constant dense<0.000000e+00> : vector<8x48xf32>
    %145 = tpu.matmul %143, %144, %cst_81 {dimension_numbers = #tpu.dot_dimension_numbers<[1], [0], [0], [1], [0, 0, 1, 1], [], []>} : vector<8x48xbf16>, vector<48x48xbf16>, vector<8x48xf32> -> vector<8x48xf32>
    %146 = arith.addf %139, %145 : vector<8x48xf32>
    %147 = vector.extract_strided_slice %124 {offsets = [24, 0], sizes = [8, 48], strides = [1, 1]} : vector<72x48xf32> to vector<8x48xf32>
    %c3_82 = arith.constant 3 : index
    %c0_83 = arith.constant 0 : index
    %c0_84 = arith.constant 0 : index
    %148 = vector.load %arg10[%c3_82, %c0_83, %c0_84] : memref<9x48x48xf32, #tpu.memory_space<vmem>>, vector<1x48x48xf32>
    %149 = vector.shape_cast %148 : vector<1x48x48xf32> to vector<48x48xf32>
    %150 = arith.truncf %147 : vector<8x48xf32> to vector<8x48xbf16>
    %151 = arith.truncf %149 : vector<48x48xf32> to vector<48x48xbf16>
    %cst_85 = arith.constant dense<0.000000e+00> : vector<8x48xf32>
    %152 = tpu.matmul %150, %151, %cst_85 {dimension_numbers = #tpu.dot_dimension_numbers<[1], [0], [0], [1], [0, 0, 1, 1], [], []>} : vector<8x48xbf16>, vector<48x48xbf16>, vector<8x48xf32> -> vector<8x48xf32>
    %153 = arith.addf %146, %152 : vector<8x48xf32>
    %154 = vector.extract_strided_slice %124 {offsets = [32, 0], sizes = [8, 48], strides = [1, 1]} : vector<72x48xf32> to vector<8x48xf32>
    %c4_86 = arith.constant 4 : index
    %c0_87 = arith.constant 0 : index
    %c0_88 = arith.constant 0 : index
    %155 = vector.load %arg10[%c4_86, %c0_87, %c0_88] : memref<9x48x48xf32, #tpu.memory_space<vmem>>, vector<1x48x48xf32>
    %156 = vector.shape_cast %155 : vector<1x48x48xf32> to vector<48x48xf32>
    %157 = arith.truncf %154 : vector<8x48xf32> to vector<8x48xbf16>
    %158 = arith.truncf %156 : vector<48x48xf32> to vector<48x48xbf16>
    %cst_89 = arith.constant dense<0.000000e+00> : vector<8x48xf32>
    %159 = tpu.matmul %157, %158, %cst_89 {dimension_numbers = #tpu.dot_dimension_numbers<[1], [0], [0], [1], [0, 0, 1, 1], [], []>} : vector<8x48xbf16>, vector<48x48xbf16>, vector<8x48xf32> -> vector<8x48xf32>
    %160 = arith.addf %153, %159 : vector<8x48xf32>
    %161 = vector.extract_strided_slice %124 {offsets = [40, 0], sizes = [8, 48], strides = [1, 1]} : vector<72x48xf32> to vector<8x48xf32>
    %c5_90 = arith.constant 5 : index
    %c0_91 = arith.constant 0 : index
    %c0_92 = arith.constant 0 : index
    %162 = vector.load %arg10[%c5_90, %c0_91, %c0_92] : memref<9x48x48xf32, #tpu.memory_space<vmem>>, vector<1x48x48xf32>
    %163 = vector.shape_cast %162 : vector<1x48x48xf32> to vector<48x48xf32>
    %164 = arith.truncf %161 : vector<8x48xf32> to vector<8x48xbf16>
    %165 = arith.truncf %163 : vector<48x48xf32> to vector<48x48xbf16>
    %cst_93 = arith.constant dense<0.000000e+00> : vector<8x48xf32>
    %166 = tpu.matmul %164, %165, %cst_93 {dimension_numbers = #tpu.dot_dimension_numbers<[1], [0], [0], [1], [0, 0, 1, 1], [], []>} : vector<8x48xbf16>, vector<48x48xbf16>, vector<8x48xf32> -> vector<8x48xf32>
    %167 = arith.addf %160, %166 : vector<8x48xf32>
    %168 = vector.extract_strided_slice %124 {offsets = [48, 0], sizes = [8, 48], strides = [1, 1]} : vector<72x48xf32> to vector<8x48xf32>
    %c6_94 = arith.constant 6 : index
    %c0_95 = arith.constant 0 : index
    %c0_96 = arith.constant 0 : index
    %169 = vector.load %arg10[%c6_94, %c0_95, %c0_96] : memref<9x48x48xf32, #tpu.memory_space<vmem>>, vector<1x48x48xf32>
    %170 = vector.shape_cast %169 : vector<1x48x48xf32> to vector<48x48xf32>
    %171 = arith.truncf %168 : vector<8x48xf32> to vector<8x48xbf16>
    %172 = arith.truncf %170 : vector<48x48xf32> to vector<48x48xbf16>
    %cst_97 = arith.constant dense<0.000000e+00> : vector<8x48xf32>
    %173 = tpu.matmul %171, %172, %cst_97 {dimension_numbers = #tpu.dot_dimension_numbers<[1], [0], [0], [1], [0, 0, 1, 1], [], []>} : vector<8x48xbf16>, vector<48x48xbf16>, vector<8x48xf32> -> vector<8x48xf32>
    %174 = arith.addf %167, %173 : vector<8x48xf32>
    %175 = vector.extract_strided_slice %124 {offsets = [56, 0], sizes = [8, 48], strides = [1, 1]} : vector<72x48xf32> to vector<8x48xf32>
    %c7_98 = arith.constant 7 : index
    %c0_99 = arith.constant 0 : index
    %c0_100 = arith.constant 0 : index
    %176 = vector.load %arg10[%c7_98, %c0_99, %c0_100] : memref<9x48x48xf32, #tpu.memory_space<vmem>>, vector<1x48x48xf32>
    %177 = vector.shape_cast %176 : vector<1x48x48xf32> to vector<48x48xf32>
    %178 = arith.truncf %175 : vector<8x48xf32> to vector<8x48xbf16>
    %179 = arith.truncf %177 : vector<48x48xf32> to vector<48x48xbf16>
    %cst_101 = arith.constant dense<0.000000e+00> : vector<8x48xf32>
    %180 = tpu.matmul %178, %179, %cst_101 {dimension_numbers = #tpu.dot_dimension_numbers<[1], [0], [0], [1], [0, 0, 1, 1], [], []>} : vector<8x48xbf16>, vector<48x48xbf16>, vector<8x48xf32> -> vector<8x48xf32>
    %181 = arith.addf %174, %180 : vector<8x48xf32>
    %182 = vector.extract_strided_slice %124 {offsets = [64, 0], sizes = [8, 48], strides = [1, 1]} : vector<72x48xf32> to vector<8x48xf32>
    %c8_102 = arith.constant 8 : index
    %c0_103 = arith.constant 0 : index
    %c0_104 = arith.constant 0 : index
    %183 = vector.load %arg10[%c8_102, %c0_103, %c0_104] : memref<9x48x48xf32, #tpu.memory_space<vmem>>, vector<1x48x48xf32>
    %184 = vector.shape_cast %183 : vector<1x48x48xf32> to vector<48x48xf32>
    %185 = arith.truncf %182 : vector<8x48xf32> to vector<8x48xbf16>
    %186 = arith.truncf %184 : vector<48x48xf32> to vector<48x48xbf16>
    %cst_105 = arith.constant dense<0.000000e+00> : vector<8x48xf32>
    %187 = tpu.matmul %185, %186, %cst_105 {dimension_numbers = #tpu.dot_dimension_numbers<[1], [0], [0], [1], [0, 0, 1, 1], [], []>} : vector<8x48xbf16>, vector<48x48xbf16>, vector<8x48xf32> -> vector<8x48xf32>
    %188 = arith.addf %181, %187 : vector<8x48xf32>
    %c0_106 = arith.constant 0 : index
    %c7_107 = arith.constant 7 : index
    %189 = vector.load %arg3[%c0_106, %c7_107] : memref<16x17xf32, #tpu.memory_space<vmem>>, vector<8x1xf32>
    %190 = vector.broadcast %189 : vector<8x1xf32> to vector<8x48xf32>
    %191 = arith.addf %188, %190 : vector<8x48xf32>
    %c0_108 = arith.constant 0 : index
    %c8_109 = arith.constant 8 : index
    %192 = vector.load %arg3[%c0_108, %c8_109] : memref<16x17xf32, #tpu.memory_space<vmem>>, vector<8x1xf32>
    %193 = vector.broadcast %192 : vector<8x1xf32> to vector<8x48xf32>
    %194 = arith.mulf %191, %193 : vector<8x48xf32>
    %c0_110 = arith.constant 0 : index
    %c9 = arith.constant 9 : index
    %195 = vector.load %arg3[%c0_110, %c9] : memref<16x17xf32, #tpu.memory_space<vmem>>, vector<8x1xf32>
    %196 = vector.broadcast %195 : vector<8x1xf32> to vector<8x48xf32>
    %197 = arith.addf %194, %196 : vector<8x48xf32>
    %198 = arith.addf %197, %109 : vector<8x48xf32>
    %c0_111 = arith.constant 0 : index
    %c0_112 = arith.constant 0 : index
    %199 = vector.load %arg11[%c0_111, %c0_112] : memref<144x8xf32, #tpu.memory_space<vmem>>, vector<144x8xf32>
    %200 = arith.truncf %199 : vector<144x8xf32> to vector<144x8xbf16>
    %201 = arith.truncf %198 : vector<8x48xf32> to vector<8x48xbf16>
    %cst_113 = arith.constant dense<0.000000e+00> : vector<144x48xf32>
    %202 = tpu.matmul %200, %201, %cst_113 {dimension_numbers = #tpu.dot_dimension_numbers<[1], [0], [0], [1], [0, 0, 1, 1], [], []>} : vector<144x8xbf16>, vector<8x48xbf16>, vector<144x48xf32> -> vector<144x48xf32>
    %cst_114 = arith.constant 0.000000e+00 : f32
    %203 = vector.broadcast %cst_114 : f32 to vector<16x48xf32>
    %204 = vector.extract_strided_slice %202 {offsets = [0, 0], sizes = [16, 48], strides = [1, 1]} : vector<144x48xf32> to vector<16x48xf32>
    %c0_115 = arith.constant 0 : index
    %c0_116 = arith.constant 0 : index
    %c0_117 = arith.constant 0 : index
    %205 = vector.load %arg12[%c0_115, %c0_116, %c0_117] : memref<9x48x48xf32, #tpu.memory_space<vmem>>, vector<1x48x48xf32>
    %206 = vector.shape_cast %205 : vector<1x48x48xf32> to vector<48x48xf32>
    %207 = arith.truncf %204 : vector<16x48xf32> to vector<16x48xbf16>
    %208 = arith.truncf %206 : vector<48x48xf32> to vector<48x48xbf16>
    %cst_118 = arith.constant dense<0.000000e+00> : vector<16x48xf32>
    %209 = tpu.matmul %207, %208, %cst_118 {dimension_numbers = #tpu.dot_dimension_numbers<[1], [0], [0], [1], [0, 0, 1, 1], [], []>} : vector<16x48xbf16>, vector<48x48xbf16>, vector<16x48xf32> -> vector<16x48xf32>
    %210 = arith.addf %203, %209 : vector<16x48xf32>
    %211 = vector.extract_strided_slice %202 {offsets = [16, 0], sizes = [16, 48], strides = [1, 1]} : vector<144x48xf32> to vector<16x48xf32>
    %c1_119 = arith.constant 1 : index
    %c0_120 = arith.constant 0 : index
    %c0_121 = arith.constant 0 : index
    %212 = vector.load %arg12[%c1_119, %c0_120, %c0_121] : memref<9x48x48xf32, #tpu.memory_space<vmem>>, vector<1x48x48xf32>
    %213 = vector.shape_cast %212 : vector<1x48x48xf32> to vector<48x48xf32>
    %214 = arith.truncf %211 : vector<16x48xf32> to vector<16x48xbf16>
    %215 = arith.truncf %213 : vector<48x48xf32> to vector<48x48xbf16>
    %cst_122 = arith.constant dense<0.000000e+00> : vector<16x48xf32>
    %216 = tpu.matmul %214, %215, %cst_122 {dimension_numbers = #tpu.dot_dimension_numbers<[1], [0], [0], [1], [0, 0, 1, 1], [], []>} : vector<16x48xbf16>, vector<48x48xbf16>, vector<16x48xf32> -> vector<16x48xf32>
    %217 = arith.addf %210, %216 : vector<16x48xf32>
    %218 = vector.extract_strided_slice %202 {offsets = [32, 0], sizes = [16, 48], strides = [1, 1]} : vector<144x48xf32> to vector<16x48xf32>
    %c2_123 = arith.constant 2 : index
    %c0_124 = arith.constant 0 : index
    %c0_125 = arith.constant 0 : index
    %219 = vector.load %arg12[%c2_123, %c0_124, %c0_125] : memref<9x48x48xf32, #tpu.memory_space<vmem>>, vector<1x48x48xf32>
    %220 = vector.shape_cast %219 : vector<1x48x48xf32> to vector<48x48xf32>
    %221 = arith.truncf %218 : vector<16x48xf32> to vector<16x48xbf16>
    %222 = arith.truncf %220 : vector<48x48xf32> to vector<48x48xbf16>
    %cst_126 = arith.constant dense<0.000000e+00> : vector<16x48xf32>
    %223 = tpu.matmul %221, %222, %cst_126 {dimension_numbers = #tpu.dot_dimension_numbers<[1], [0], [0], [1], [0, 0, 1, 1], [], []>} : vector<16x48xbf16>, vector<48x48xbf16>, vector<16x48xf32> -> vector<16x48xf32>
    %224 = arith.addf %217, %223 : vector<16x48xf32>
    %225 = vector.extract_strided_slice %202 {offsets = [48, 0], sizes = [16, 48], strides = [1, 1]} : vector<144x48xf32> to vector<16x48xf32>
    %c3_127 = arith.constant 3 : index
    %c0_128 = arith.constant 0 : index
    %c0_129 = arith.constant 0 : index
    %226 = vector.load %arg12[%c3_127, %c0_128, %c0_129] : memref<9x48x48xf32, #tpu.memory_space<vmem>>, vector<1x48x48xf32>
    %227 = vector.shape_cast %226 : vector<1x48x48xf32> to vector<48x48xf32>
    %228 = arith.truncf %225 : vector<16x48xf32> to vector<16x48xbf16>
    %229 = arith.truncf %227 : vector<48x48xf32> to vector<48x48xbf16>
    %cst_130 = arith.constant dense<0.000000e+00> : vector<16x48xf32>
    %230 = tpu.matmul %228, %229, %cst_130 {dimension_numbers = #tpu.dot_dimension_numbers<[1], [0], [0], [1], [0, 0, 1, 1], [], []>} : vector<16x48xbf16>, vector<48x48xbf16>, vector<16x48xf32> -> vector<16x48xf32>
    %231 = arith.addf %224, %230 : vector<16x48xf32>
    %232 = vector.extract_strided_slice %202 {offsets = [64, 0], sizes = [16, 48], strides = [1, 1]} : vector<144x48xf32> to vector<16x48xf32>
    %c4_131 = arith.constant 4 : index
    %c0_132 = arith.constant 0 : index
    %c0_133 = arith.constant 0 : index
    %233 = vector.load %arg12[%c4_131, %c0_132, %c0_133] : memref<9x48x48xf32, #tpu.memory_space<vmem>>, vector<1x48x48xf32>
    %234 = vector.shape_cast %233 : vector<1x48x48xf32> to vector<48x48xf32>
    %235 = arith.truncf %232 : vector<16x48xf32> to vector<16x48xbf16>
    %236 = arith.truncf %234 : vector<48x48xf32> to vector<48x48xbf16>
    %cst_134 = arith.constant dense<0.000000e+00> : vector<16x48xf32>
    %237 = tpu.matmul %235, %236, %cst_134 {dimension_numbers = #tpu.dot_dimension_numbers<[1], [0], [0], [1], [0, 0, 1, 1], [], []>} : vector<16x48xbf16>, vector<48x48xbf16>, vector<16x48xf32> -> vector<16x48xf32>
    %238 = arith.addf %231, %237 : vector<16x48xf32>
    %239 = vector.extract_strided_slice %202 {offsets = [80, 0], sizes = [16, 48], strides = [1, 1]} : vector<144x48xf32> to vector<16x48xf32>
    %c5_135 = arith.constant 5 : index
    %c0_136 = arith.constant 0 : index
    %c0_137 = arith.constant 0 : index
    %240 = vector.load %arg12[%c5_135, %c0_136, %c0_137] : memref<9x48x48xf32, #tpu.memory_space<vmem>>, vector<1x48x48xf32>
    %241 = vector.shape_cast %240 : vector<1x48x48xf32> to vector<48x48xf32>
    %242 = arith.truncf %239 : vector<16x48xf32> to vector<16x48xbf16>
    %243 = arith.truncf %241 : vector<48x48xf32> to vector<48x48xbf16>
    %cst_138 = arith.constant dense<0.000000e+00> : vector<16x48xf32>
    %244 = tpu.matmul %242, %243, %cst_138 {dimension_numbers = #tpu.dot_dimension_numbers<[1], [0], [0], [1], [0, 0, 1, 1], [], []>} : vector<16x48xbf16>, vector<48x48xbf16>, vector<16x48xf32> -> vector<16x48xf32>
    %245 = arith.addf %238, %244 : vector<16x48xf32>
    %246 = vector.extract_strided_slice %202 {offsets = [96, 0], sizes = [16, 48], strides = [1, 1]} : vector<144x48xf32> to vector<16x48xf32>
    %c6_139 = arith.constant 6 : index
    %c0_140 = arith.constant 0 : index
    %c0_141 = arith.constant 0 : index
    %247 = vector.load %arg12[%c6_139, %c0_140, %c0_141] : memref<9x48x48xf32, #tpu.memory_space<vmem>>, vector<1x48x48xf32>
    %248 = vector.shape_cast %247 : vector<1x48x48xf32> to vector<48x48xf32>
    %249 = arith.truncf %246 : vector<16x48xf32> to vector<16x48xbf16>
    %250 = arith.truncf %248 : vector<48x48xf32> to vector<48x48xbf16>
    %cst_142 = arith.constant dense<0.000000e+00> : vector<16x48xf32>
    %251 = tpu.matmul %249, %250, %cst_142 {dimension_numbers = #tpu.dot_dimension_numbers<[1], [0], [0], [1], [0, 0, 1, 1], [], []>} : vector<16x48xbf16>, vector<48x48xbf16>, vector<16x48xf32> -> vector<16x48xf32>
    %252 = arith.addf %245, %251 : vector<16x48xf32>
    %253 = vector.extract_strided_slice %202 {offsets = [112, 0], sizes = [16, 48], strides = [1, 1]} : vector<144x48xf32> to vector<16x48xf32>
    %c7_143 = arith.constant 7 : index
    %c0_144 = arith.constant 0 : index
    %c0_145 = arith.constant 0 : index
    %254 = vector.load %arg12[%c7_143, %c0_144, %c0_145] : memref<9x48x48xf32, #tpu.memory_space<vmem>>, vector<1x48x48xf32>
    %255 = vector.shape_cast %254 : vector<1x48x48xf32> to vector<48x48xf32>
    %256 = arith.truncf %253 : vector<16x48xf32> to vector<16x48xbf16>
    %257 = arith.truncf %255 : vector<48x48xf32> to vector<48x48xbf16>
    %cst_146 = arith.constant dense<0.000000e+00> : vector<16x48xf32>
    %258 = tpu.matmul %256, %257, %cst_146 {dimension_numbers = #tpu.dot_dimension_numbers<[1], [0], [0], [1], [0, 0, 1, 1], [], []>} : vector<16x48xbf16>, vector<48x48xbf16>, vector<16x48xf32> -> vector<16x48xf32>
    %259 = arith.addf %252, %258 : vector<16x48xf32>
    %260 = vector.extract_strided_slice %202 {offsets = [128, 0], sizes = [16, 48], strides = [1, 1]} : vector<144x48xf32> to vector<16x48xf32>
    %c8_147 = arith.constant 8 : index
    %c0_148 = arith.constant 0 : index
    %c0_149 = arith.constant 0 : index
    %261 = vector.load %arg12[%c8_147, %c0_148, %c0_149] : memref<9x48x48xf32, #tpu.memory_space<vmem>>, vector<1x48x48xf32>
    %262 = vector.shape_cast %261 : vector<1x48x48xf32> to vector<48x48xf32>
    %263 = arith.truncf %260 : vector<16x48xf32> to vector<16x48xbf16>
    %264 = arith.truncf %262 : vector<48x48xf32> to vector<48x48xbf16>
    %cst_150 = arith.constant dense<0.000000e+00> : vector<16x48xf32>
    %265 = tpu.matmul %263, %264, %cst_150 {dimension_numbers = #tpu.dot_dimension_numbers<[1], [0], [0], [1], [0, 0, 1, 1], [], []>} : vector<16x48xbf16>, vector<48x48xbf16>, vector<16x48xf32> -> vector<16x48xf32>
    %266 = arith.addf %259, %265 : vector<16x48xf32>
    %c0_151 = arith.constant 0 : index
    %c10 = arith.constant 10 : index
    %267 = vector.load %arg3[%c0_151, %c10] : memref<16x17xf32, #tpu.memory_space<vmem>>, vector<16x1xf32>
    %268 = vector.broadcast %267 : vector<16x1xf32> to vector<16x48xf32>
    %269 = arith.addf %266, %268 : vector<16x48xf32>
    %c0_152 = arith.constant 0 : index
    %c11 = arith.constant 11 : index
    %270 = vector.load %arg3[%c0_152, %c11] : memref<16x17xf32, #tpu.memory_space<vmem>>, vector<16x1xf32>
    %271 = vector.broadcast %270 : vector<16x1xf32> to vector<16x48xf32>
    %272 = arith.mulf %269, %271 : vector<16x48xf32>
    %c0_153 = arith.constant 0 : index
    %c12 = arith.constant 12 : index
    %273 = vector.load %arg3[%c0_153, %c12] : memref<16x17xf32, #tpu.memory_space<vmem>>, vector<16x1xf32>
    %274 = vector.broadcast %273 : vector<16x1xf32> to vector<16x48xf32>
    %275 = arith.addf %272, %274 : vector<16x48xf32>
    %cst_154 = arith.constant 0.000000e+00 : f32
    %276 = vector.broadcast %cst_154 : f32 to vector<16x48xf32>
    %277 = arith.cmpf oge, %275, %276 : vector<16x48xf32>
    %cst_155 = arith.constant 2.500000e-01 : f32
    %278 = vector.broadcast %cst_155 : f32 to vector<16x48xf32>
    %279 = arith.mulf %278, %275 : vector<16x48xf32>
    %280 = arith.select %277, %275, %279 : vector<16x48xi1>, vector<16x48xf32>
    %c0_156 = arith.constant 0 : index
    %c0_157 = arith.constant 0 : index
    %281 = vector.load %arg13[%c0_156, %c0_157] : memref<144x16xf32, #tpu.memory_space<vmem>>, vector<144x16xf32>
    %282 = arith.truncf %281 : vector<144x16xf32> to vector<144x16xbf16>
    %283 = arith.truncf %280 : vector<16x48xf32> to vector<16x48xbf16>
    %cst_158 = arith.constant dense<0.000000e+00> : vector<144x48xf32>
    %284 = tpu.matmul %282, %283, %cst_158 {dimension_numbers = #tpu.dot_dimension_numbers<[1], [0], [0], [1], [0, 0, 1, 1], [], []>} : vector<144x16xbf16>, vector<16x48xbf16>, vector<144x48xf32> -> vector<144x48xf32>
    %cst_159 = arith.constant 0.000000e+00 : f32
    %285 = vector.broadcast %cst_159 : f32 to vector<16x48xf32>
    %286 = vector.extract_strided_slice %284 {offsets = [0, 0], sizes = [16, 48], strides = [1, 1]} : vector<144x48xf32> to vector<16x48xf32>
    %c0_160 = arith.constant 0 : index
    %c0_161 = arith.constant 0 : index
    %c0_162 = arith.constant 0 : index
    %287 = vector.load %arg12[%c0_160, %c0_161, %c0_162] : memref<9x48x48xf32, #tpu.memory_space<vmem>>, vector<1x48x48xf32>
    %288 = vector.shape_cast %287 : vector<1x48x48xf32> to vector<48x48xf32>
    %289 = arith.truncf %286 : vector<16x48xf32> to vector<16x48xbf16>
    %290 = arith.truncf %288 : vector<48x48xf32> to vector<48x48xbf16>
    %cst_163 = arith.constant dense<0.000000e+00> : vector<16x48xf32>
    %291 = tpu.matmul %289, %290, %cst_163 {dimension_numbers = #tpu.dot_dimension_numbers<[1], [0], [0], [1], [0, 0, 1, 1], [], []>} : vector<16x48xbf16>, vector<48x48xbf16>, vector<16x48xf32> -> vector<16x48xf32>
    %292 = arith.addf %285, %291 : vector<16x48xf32>
    %293 = vector.extract_strided_slice %284 {offsets = [16, 0], sizes = [16, 48], strides = [1, 1]} : vector<144x48xf32> to vector<16x48xf32>
    %c1_164 = arith.constant 1 : index
    %c0_165 = arith.constant 0 : index
    %c0_166 = arith.constant 0 : index
    %294 = vector.load %arg12[%c1_164, %c0_165, %c0_166] : memref<9x48x48xf32, #tpu.memory_space<vmem>>, vector<1x48x48xf32>
    %295 = vector.shape_cast %294 : vector<1x48x48xf32> to vector<48x48xf32>
    %296 = arith.truncf %293 : vector<16x48xf32> to vector<16x48xbf16>
    %297 = arith.truncf %295 : vector<48x48xf32> to vector<48x48xbf16>
    %cst_167 = arith.constant dense<0.000000e+00> : vector<16x48xf32>
    %298 = tpu.matmul %296, %297, %cst_167 {dimension_numbers = #tpu.dot_dimension_numbers<[1], [0], [0], [1], [0, 0, 1, 1], [], []>} : vector<16x48xbf16>, vector<48x48xbf16>, vector<16x48xf32> -> vector<16x48xf32>
    %299 = arith.addf %292, %298 : vector<16x48xf32>
    %300 = vector.extract_strided_slice %284 {offsets = [32, 0], sizes = [16, 48], strides = [1, 1]} : vector<144x48xf32> to vector<16x48xf32>
    %c2_168 = arith.constant 2 : index
    %c0_169 = arith.constant 0 : index
    %c0_170 = arith.constant 0 : index
    %301 = vector.load %arg12[%c2_168, %c0_169, %c0_170] : memref<9x48x48xf32, #tpu.memory_space<vmem>>, vector<1x48x48xf32>
    %302 = vector.shape_cast %301 : vector<1x48x48xf32> to vector<48x48xf32>
    %303 = arith.truncf %300 : vector<16x48xf32> to vector<16x48xbf16>
    %304 = arith.truncf %302 : vector<48x48xf32> to vector<48x48xbf16>
    %cst_171 = arith.constant dense<0.000000e+00> : vector<16x48xf32>
    %305 = tpu.matmul %303, %304, %cst_171 {dimension_numbers = #tpu.dot_dimension_numbers<[1], [0], [0], [1], [0, 0, 1, 1], [], []>} : vector<16x48xbf16>, vector<48x48xbf16>, vector<16x48xf32> -> vector<16x48xf32>
    %306 = arith.addf %299, %305 : vector<16x48xf32>
    %307 = vector.extract_strided_slice %284 {offsets = [48, 0], sizes = [16, 48], strides = [1, 1]} : vector<144x48xf32> to vector<16x48xf32>
    %c3_172 = arith.constant 3 : index
    %c0_173 = arith.constant 0 : index
    %c0_174 = arith.constant 0 : index
    %308 = vector.load %arg12[%c3_172, %c0_173, %c0_174] : memref<9x48x48xf32, #tpu.memory_space<vmem>>, vector<1x48x48xf32>
    %309 = vector.shape_cast %308 : vector<1x48x48xf32> to vector<48x48xf32>
    %310 = arith.truncf %307 : vector<16x48xf32> to vector<16x48xbf16>
    %311 = arith.truncf %309 : vector<48x48xf32> to vector<48x48xbf16>
    %cst_175 = arith.constant dense<0.000000e+00> : vector<16x48xf32>
    %312 = tpu.matmul %310, %311, %cst_175 {dimension_numbers = #tpu.dot_dimension_numbers<[1], [0], [0], [1], [0, 0, 1, 1], [], []>} : vector<16x48xbf16>, vector<48x48xbf16>, vector<16x48xf32> -> vector<16x48xf32>
    %313 = arith.addf %306, %312 : vector<16x48xf32>
    %314 = vector.extract_strided_slice %284 {offsets = [64, 0], sizes = [16, 48], strides = [1, 1]} : vector<144x48xf32> to vector<16x48xf32>
    %c4_176 = arith.constant 4 : index
    %c0_177 = arith.constant 0 : index
    %c0_178 = arith.constant 0 : index
    %315 = vector.load %arg12[%c4_176, %c0_177, %c0_178] : memref<9x48x48xf32, #tpu.memory_space<vmem>>, vector<1x48x48xf32>
    %316 = vector.shape_cast %315 : vector<1x48x48xf32> to vector<48x48xf32>
    %317 = arith.truncf %314 : vector<16x48xf32> to vector<16x48xbf16>
    %318 = arith.truncf %316 : vector<48x48xf32> to vector<48x48xbf16>
    %cst_179 = arith.constant dense<0.000000e+00> : vector<16x48xf32>
    %319 = tpu.matmul %317, %318, %cst_179 {dimension_numbers = #tpu.dot_dimension_numbers<[1], [0], [0], [1], [0, 0, 1, 1], [], []>} : vector<16x48xbf16>, vector<48x48xbf16>, vector<16x48xf32> -> vector<16x48xf32>
    %320 = arith.addf %313, %319 : vector<16x48xf32>
    %321 = vector.extract_strided_slice %284 {offsets = [80, 0], sizes = [16, 48], strides = [1, 1]} : vector<144x48xf32> to vector<16x48xf32>
    %c5_180 = arith.constant 5 : index
    %c0_181 = arith.constant 0 : index
    %c0_182 = arith.constant 0 : index
    %322 = vector.load %arg12[%c5_180, %c0_181, %c0_182] : memref<9x48x48xf32, #tpu.memory_space<vmem>>, vector<1x48x48xf32>
    %323 = vector.shape_cast %322 : vector<1x48x48xf32> to vector<48x48xf32>
    %324 = arith.truncf %321 : vector<16x48xf32> to vector<16x48xbf16>
    %325 = arith.truncf %323 : vector<48x48xf32> to vector<48x48xbf16>
    %cst_183 = arith.constant dense<0.000000e+00> : vector<16x48xf32>
    %326 = tpu.matmul %324, %325, %cst_183 {dimension_numbers = #tpu.dot_dimension_numbers<[1], [0], [0], [1], [0, 0, 1, 1], [], []>} : vector<16x48xbf16>, vector<48x48xbf16>, vector<16x48xf32> -> vector<16x48xf32>
    %327 = arith.addf %320, %326 : vector<16x48xf32>
    %328 = vector.extract_strided_slice %284 {offsets = [96, 0], sizes = [16, 48], strides = [1, 1]} : vector<144x48xf32> to vector<16x48xf32>
    %c6_184 = arith.constant 6 : index
    %c0_185 = arith.constant 0 : index
    %c0_186 = arith.constant 0 : index
    %329 = vector.load %arg12[%c6_184, %c0_185, %c0_186] : memref<9x48x48xf32, #tpu.memory_space<vmem>>, vector<1x48x48xf32>
    %330 = vector.shape_cast %329 : vector<1x48x48xf32> to vector<48x48xf32>
    %331 = arith.truncf %328 : vector<16x48xf32> to vector<16x48xbf16>
    %332 = arith.truncf %330 : vector<48x48xf32> to vector<48x48xbf16>
    %cst_187 = arith.constant dense<0.000000e+00> : vector<16x48xf32>
    %333 = tpu.matmul %331, %332, %cst_187 {dimension_numbers = #tpu.dot_dimension_numbers<[1], [0], [0], [1], [0, 0, 1, 1], [], []>} : vector<16x48xbf16>, vector<48x48xbf16>, vector<16x48xf32> -> vector<16x48xf32>
    %334 = arith.addf %327, %333 : vector<16x48xf32>
    %335 = vector.extract_strided_slice %284 {offsets = [112, 0], sizes = [16, 48], strides = [1, 1]} : vector<144x48xf32> to vector<16x48xf32>
    %c7_188 = arith.constant 7 : index
    %c0_189 = arith.constant 0 : index
    %c0_190 = arith.constant 0 : index
    %336 = vector.load %arg12[%c7_188, %c0_189, %c0_190] : memref<9x48x48xf32, #tpu.memory_space<vmem>>, vector<1x48x48xf32>
    %337 = vector.shape_cast %336 : vector<1x48x48xf32> to vector<48x48xf32>
    %338 = arith.truncf %335 : vector<16x48xf32> to vector<16x48xbf16>
    %339 = arith.truncf %337 : vector<48x48xf32> to vector<48x48xbf16>
    %cst_191 = arith.constant dense<0.000000e+00> : vector<16x48xf32>
    %340 = tpu.matmul %338, %339, %cst_191 {dimension_numbers = #tpu.dot_dimension_numbers<[1], [0], [0], [1], [0, 0, 1, 1], [], []>} : vector<16x48xbf16>, vector<48x48xbf16>, vector<16x48xf32> -> vector<16x48xf32>
    %341 = arith.addf %334, %340 : vector<16x48xf32>
    %342 = vector.extract_strided_slice %284 {offsets = [128, 0], sizes = [16, 48], strides = [1, 1]} : vector<144x48xf32> to vector<16x48xf32>
    %c8_192 = arith.constant 8 : index
    %c0_193 = arith.constant 0 : index
    %c0_194 = arith.constant 0 : index
    %343 = vector.load %arg12[%c8_192, %c0_193, %c0_194] : memref<9x48x48xf32, #tpu.memory_space<vmem>>, vector<1x48x48xf32>
    %344 = vector.shape_cast %343 : vector<1x48x48xf32> to vector<48x48xf32>
    %345 = arith.truncf %342 : vector<16x48xf32> to vector<16x48xbf16>
    %346 = arith.truncf %344 : vector<48x48xf32> to vector<48x48xbf16>
    %cst_195 = arith.constant dense<0.000000e+00> : vector<16x48xf32>
    %347 = tpu.matmul %345, %346, %cst_195 {dimension_numbers = #tpu.dot_dimension_numbers<[1], [0], [0], [1], [0, 0, 1, 1], [], []>} : vector<16x48xbf16>, vector<48x48xbf16>, vector<16x48xf32> -> vector<16x48xf32>
    %348 = arith.addf %341, %347 : vector<16x48xf32>
    %c0_196 = arith.constant 0 : index
    %c13 = arith.constant 13 : index
    %349 = vector.load %arg3[%c0_196, %c13] : memref<16x17xf32, #tpu.memory_space<vmem>>, vector<16x1xf32>
    %350 = vector.broadcast %349 : vector<16x1xf32> to vector<16x48xf32>
    %351 = arith.addf %348, %350 : vector<16x48xf32>
    %c0_197 = arith.constant 0 : index
    %c14 = arith.constant 14 : index
    %352 = vector.load %arg3[%c0_197, %c14] : memref<16x17xf32, #tpu.memory_space<vmem>>, vector<16x1xf32>
    %353 = vector.broadcast %352 : vector<16x1xf32> to vector<16x48xf32>
    %354 = arith.mulf %351, %353 : vector<16x48xf32>
    %c0_198 = arith.constant 0 : index
    %c15 = arith.constant 15 : index
    %355 = vector.load %arg3[%c0_198, %c15] : memref<16x17xf32, #tpu.memory_space<vmem>>, vector<16x1xf32>
    %356 = vector.broadcast %355 : vector<16x1xf32> to vector<16x48xf32>
    %357 = arith.addf %354, %356 : vector<16x48xf32>
    %cst_199 = arith.constant 0.000000e+00 : f32
    %358 = vector.broadcast %cst_199 : f32 to vector<16x48xf32>
    %359 = arith.cmpf oge, %357, %358 : vector<16x48xf32>
    %cst_200 = arith.constant 2.500000e-01 : f32
    %360 = vector.broadcast %cst_200 : f32 to vector<16x48xf32>
    %361 = arith.mulf %360, %357 : vector<16x48xf32>
    %362 = arith.select %359, %357, %361 : vector<16x48xi1>, vector<16x48xf32>
    %363 = arith.addf %362, %280 : vector<16x48xf32>
    %c0_201 = arith.constant 0 : index
    %c0_202 = arith.constant 0 : index
    %364 = vector.load %arg14[%c0_201, %c0_202] : memref<144x16xf32, #tpu.memory_space<vmem>>, vector<144x16xf32>
    %365 = arith.truncf %364 : vector<144x16xf32> to vector<144x16xbf16>
    %366 = arith.truncf %363 : vector<16x48xf32> to vector<16x48xbf16>
    %cst_203 = arith.constant dense<0.000000e+00> : vector<144x48xf32>
    %367 = tpu.matmul %365, %366, %cst_203 {dimension_numbers = #tpu.dot_dimension_numbers<[1], [0], [0], [1], [0, 0, 1, 1], [], []>} : vector<144x16xbf16>, vector<16x48xbf16>, vector<144x48xf32> -> vector<144x48xf32>
    %cst_204 = arith.constant 0.000000e+00 : f32
    %368 = vector.broadcast %cst_204 : f32 to vector<16x48xf32>
    %369 = vector.extract_strided_slice %367 {offsets = [0, 0], sizes = [16, 48], strides = [1, 1]} : vector<144x48xf32> to vector<16x48xf32>
    %c0_205 = arith.constant 0 : index
    %c0_206 = arith.constant 0 : index
    %c0_207 = arith.constant 0 : index
    %370 = vector.load %arg12[%c0_205, %c0_206, %c0_207] : memref<9x48x48xf32, #tpu.memory_space<vmem>>, vector<1x48x48xf32>
    %371 = vector.shape_cast %370 : vector<1x48x48xf32> to vector<48x48xf32>
    %372 = arith.truncf %369 : vector<16x48xf32> to vector<16x48xbf16>
    %373 = arith.truncf %371 : vector<48x48xf32> to vector<48x48xbf16>
    %cst_208 = arith.constant dense<0.000000e+00> : vector<16x48xf32>
    %374 = tpu.matmul %372, %373, %cst_208 {dimension_numbers = #tpu.dot_dimension_numbers<[1], [0], [0], [1], [0, 0, 1, 1], [], []>} : vector<16x48xbf16>, vector<48x48xbf16>, vector<16x48xf32> -> vector<16x48xf32>
    %375 = arith.addf %368, %374 : vector<16x48xf32>
    %376 = vector.extract_strided_slice %367 {offsets = [16, 0], sizes = [16, 48], strides = [1, 1]} : vector<144x48xf32> to vector<16x48xf32>
    %c1_209 = arith.constant 1 : index
    %c0_210 = arith.constant 0 : index
    %c0_211 = arith.constant 0 : index
    %377 = vector.load %arg12[%c1_209, %c0_210, %c0_211] : memref<9x48x48xf32, #tpu.memory_space<vmem>>, vector<1x48x48xf32>
    %378 = vector.shape_cast %377 : vector<1x48x48xf32> to vector<48x48xf32>
    %379 = arith.truncf %376 : vector<16x48xf32> to vector<16x48xbf16>
    %380 = arith.truncf %378 : vector<48x48xf32> to vector<48x48xbf16>
    %cst_212 = arith.constant dense<0.000000e+00> : vector<16x48xf32>
    %381 = tpu.matmul %379, %380, %cst_212 {dimension_numbers = #tpu.dot_dimension_numbers<[1], [0], [0], [1], [0, 0, 1, 1], [], []>} : vector<16x48xbf16>, vector<48x48xbf16>, vector<16x48xf32> -> vector<16x48xf32>
    %382 = arith.addf %375, %381 : vector<16x48xf32>
    %383 = vector.extract_strided_slice %367 {offsets = [32, 0], sizes = [16, 48], strides = [1, 1]} : vector<144x48xf32> to vector<16x48xf32>
    %c2_213 = arith.constant 2 : index
    %c0_214 = arith.constant 0 : index
    %c0_215 = arith.constant 0 : index
    %384 = vector.load %arg12[%c2_213, %c0_214, %c0_215] : memref<9x48x48xf32, #tpu.memory_space<vmem>>, vector<1x48x48xf32>
    %385 = vector.shape_cast %384 : vector<1x48x48xf32> to vector<48x48xf32>
    %386 = arith.truncf %383 : vector<16x48xf32> to vector<16x48xbf16>
    %387 = arith.truncf %385 : vector<48x48xf32> to vector<48x48xbf16>
    %cst_216 = arith.constant dense<0.000000e+00> : vector<16x48xf32>
    %388 = tpu.matmul %386, %387, %cst_216 {dimension_numbers = #tpu.dot_dimension_numbers<[1], [0], [0], [1], [0, 0, 1, 1], [], []>} : vector<16x48xbf16>, vector<48x48xbf16>, vector<16x48xf32> -> vector<16x48xf32>
    %389 = arith.addf %382, %388 : vector<16x48xf32>
    %390 = vector.extract_strided_slice %367 {offsets = [48, 0], sizes = [16, 48], strides = [1, 1]} : vector<144x48xf32> to vector<16x48xf32>
    %c3_217 = arith.constant 3 : index
    %c0_218 = arith.constant 0 : index
    %c0_219 = arith.constant 0 : index
    %391 = vector.load %arg12[%c3_217, %c0_218, %c0_219] : memref<9x48x48xf32, #tpu.memory_space<vmem>>, vector<1x48x48xf32>
    %392 = vector.shape_cast %391 : vector<1x48x48xf32> to vector<48x48xf32>
    %393 = arith.truncf %390 : vector<16x48xf32> to vector<16x48xbf16>
    %394 = arith.truncf %392 : vector<48x48xf32> to vector<48x48xbf16>
    %cst_220 = arith.constant dense<0.000000e+00> : vector<16x48xf32>
    %395 = tpu.matmul %393, %394, %cst_220 {dimension_numbers = #tpu.dot_dimension_numbers<[1], [0], [0], [1], [0, 0, 1, 1], [], []>} : vector<16x48xbf16>, vector<48x48xbf16>, vector<16x48xf32> -> vector<16x48xf32>
    %396 = arith.addf %389, %395 : vector<16x48xf32>
    %397 = vector.extract_strided_slice %367 {offsets = [64, 0], sizes = [16, 48], strides = [1, 1]} : vector<144x48xf32> to vector<16x48xf32>
    %c4_221 = arith.constant 4 : index
    %c0_222 = arith.constant 0 : index
    %c0_223 = arith.constant 0 : index
    %398 = vector.load %arg12[%c4_221, %c0_222, %c0_223] : memref<9x48x48xf32, #tpu.memory_space<vmem>>, vector<1x48x48xf32>
    %399 = vector.shape_cast %398 : vector<1x48x48xf32> to vector<48x48xf32>
    %400 = arith.truncf %397 : vector<16x48xf32> to vector<16x48xbf16>
    %401 = arith.truncf %399 : vector<48x48xf32> to vector<48x48xbf16>
    %cst_224 = arith.constant dense<0.000000e+00> : vector<16x48xf32>
    %402 = tpu.matmul %400, %401, %cst_224 {dimension_numbers = #tpu.dot_dimension_numbers<[1], [0], [0], [1], [0, 0, 1, 1], [], []>} : vector<16x48xbf16>, vector<48x48xbf16>, vector<16x48xf32> -> vector<16x48xf32>
    %403 = arith.addf %396, %402 : vector<16x48xf32>
    %404 = vector.extract_strided_slice %367 {offsets = [80, 0], sizes = [16, 48], strides = [1, 1]} : vector<144x48xf32> to vector<16x48xf32>
    %c5_225 = arith.constant 5 : index
    %c0_226 = arith.constant 0 : index
    %c0_227 = arith.constant 0 : index
    %405 = vector.load %arg12[%c5_225, %c0_226, %c0_227] : memref<9x48x48xf32, #tpu.memory_space<vmem>>, vector<1x48x48xf32>
    %406 = vector.shape_cast %405 : vector<1x48x48xf32> to vector<48x48xf32>
    %407 = arith.truncf %404 : vector<16x48xf32> to vector<16x48xbf16>
    %408 = arith.truncf %406 : vector<48x48xf32> to vector<48x48xbf16>
    %cst_228 = arith.constant dense<0.000000e+00> : vector<16x48xf32>
    %409 = tpu.matmul %407, %408, %cst_228 {dimension_numbers = #tpu.dot_dimension_numbers<[1], [0], [0], [1], [0, 0, 1, 1], [], []>} : vector<16x48xbf16>, vector<48x48xbf16>, vector<16x48xf32> -> vector<16x48xf32>
    %410 = arith.addf %403, %409 : vector<16x48xf32>
    %411 = vector.extract_strided_slice %367 {offsets = [96, 0], sizes = [16, 48], strides = [1, 1]} : vector<144x48xf32> to vector<16x48xf32>
    %c6_229 = arith.constant 6 : index
    %c0_230 = arith.constant 0 : index
    %c0_231 = arith.constant 0 : index
    %412 = vector.load %arg12[%c6_229, %c0_230, %c0_231] : memref<9x48x48xf32, #tpu.memory_space<vmem>>, vector<1x48x48xf32>
    %413 = vector.shape_cast %412 : vector<1x48x48xf32> to vector<48x48xf32>
    %414 = arith.truncf %411 : vector<16x48xf32> to vector<16x48xbf16>
    %415 = arith.truncf %413 : vector<48x48xf32> to vector<48x48xbf16>
    %cst_232 = arith.constant dense<0.000000e+00> : vector<16x48xf32>
    %416 = tpu.matmul %414, %415, %cst_232 {dimension_numbers = #tpu.dot_dimension_numbers<[1], [0], [0], [1], [0, 0, 1, 1], [], []>} : vector<16x48xbf16>, vector<48x48xbf16>, vector<16x48xf32> -> vector<16x48xf32>
    %417 = arith.addf %410, %416 : vector<16x48xf32>
    %418 = vector.extract_strided_slice %367 {offsets = [112, 0], sizes = [16, 48], strides = [1, 1]} : vector<144x48xf32> to vector<16x48xf32>
    %c7_233 = arith.constant 7 : index
    %c0_234 = arith.constant 0 : index
    %c0_235 = arith.constant 0 : index
    %419 = vector.load %arg12[%c7_233, %c0_234, %c0_235] : memref<9x48x48xf32, #tpu.memory_space<vmem>>, vector<1x48x48xf32>
    %420 = vector.shape_cast %419 : vector<1x48x48xf32> to vector<48x48xf32>
    %421 = arith.truncf %418 : vector<16x48xf32> to vector<16x48xbf16>
    %422 = arith.truncf %420 : vector<48x48xf32> to vector<48x48xbf16>
    %cst_236 = arith.constant dense<0.000000e+00> : vector<16x48xf32>
    %423 = tpu.matmul %421, %422, %cst_236 {dimension_numbers = #tpu.dot_dimension_numbers<[1], [0], [0], [1], [0, 0, 1, 1], [], []>} : vector<16x48xbf16>, vector<48x48xbf16>, vector<16x48xf32> -> vector<16x48xf32>
    %424 = arith.addf %417, %423 : vector<16x48xf32>
    %425 = vector.extract_strided_slice %367 {offsets = [128, 0], sizes = [16, 48], strides = [1, 1]} : vector<144x48xf32> to vector<16x48xf32>
    %c8_237 = arith.constant 8 : index
    %c0_238 = arith.constant 0 : index
    %c0_239 = arith.constant 0 : index
    %426 = vector.load %arg12[%c8_237, %c0_238, %c0_239] : memref<9x48x48xf32, #tpu.memory_space<vmem>>, vector<1x48x48xf32>
    %427 = vector.shape_cast %426 : vector<1x48x48xf32> to vector<48x48xf32>
    %428 = arith.truncf %425 : vector<16x48xf32> to vector<16x48xbf16>
    %429 = arith.truncf %427 : vector<48x48xf32> to vector<48x48xbf16>
    %cst_240 = arith.constant dense<0.000000e+00> : vector<16x48xf32>
    %430 = tpu.matmul %428, %429, %cst_240 {dimension_numbers = #tpu.dot_dimension_numbers<[1], [0], [0], [1], [0, 0, 1, 1], [], []>} : vector<16x48xbf16>, vector<48x48xbf16>, vector<16x48xf32> -> vector<16x48xf32>
    %431 = arith.addf %424, %430 : vector<16x48xf32>
    %c0_241 = arith.constant 0 : index
    %c16 = arith.constant 16 : index
    %432 = vector.load %arg3[%c0_241, %c16] : memref<16x17xf32, #tpu.memory_space<vmem>>, vector<16x1xf32>
    %433 = vector.broadcast %432 : vector<16x1xf32> to vector<16x48xf32>
    %434 = arith.addf %431, %433 : vector<16x48xf32>
    %c0_242 = arith.constant 0 : index
    %c0_243 = arith.constant 0 : index
    %c0_244 = arith.constant 0 : index
    %435 = vector.load %arg15[%c0_242, %c0_243, %c0_244] : memref<1x16x48xf32, #tpu.memory_space<vmem>>, vector<1x16x48xf32>
    %436 = vector.shape_cast %435 : vector<1x16x48xf32> to vector<16x48xf32>
    %437 = vector.shape_cast %434 : vector<16x48xf32> to vector<1x16x48xf32>
    tpu.vector_store %arg15[%c0_242, %c0_243, %c0_244], %437 {strides = array<i32>} : memref<1x16x48xf32, #tpu.memory_space<vmem>>, vector<1x16x48xf32>,
    return
  }
  func.func @transform_0(%arg0: i32) -> (i32, i32, i32) {
    %c0_i32 = arith.constant 0 : i32
    %c0_i32_0 = arith.constant 0 : i32
    %c0_i32_1 = arith.constant 0 : i32
    return %arg0, %c0_i32, %c0_i32_0 : i32, i32, i32
  }
  func.func @transform_1(%arg0: i32) -> (i32, i32, i32) {
    %c0_i32 = arith.constant 0 : i32
    %c0_i32_0 = arith.constant 0 : i32
    %c0_i32_1 = arith.constant 0 : i32
    return %arg0, %c0_i32, %c0_i32_0 : i32, i32, i32
  }
  func.func @transform_2(%arg0: i32) -> (i32, i32) {
    %c0_i32 = arith.constant 0 : i32
    %c0_i32_0 = arith.constant 0 : i32
    %c0_i32_1 = arith.constant 0 : i32
    return %c0_i32, %c0_i32_0 : i32, i32
  }
  func.func @transform_3(%arg0: i32) -> (i32, i32) {
    %c0_i32 = arith.constant 0 : i32
    %c0_i32_0 = arith.constant 0 : i32
    %c0_i32_1 = arith.constant 0 : i32
    return %c0_i32, %c0_i32_0 : i32, i32
  }
  func.func @transform_4(%arg0: i32) -> (i32, i32, i32) {
    %c0_i32 = arith.constant 0 : i32
    %c0_i32_0 = arith.constant 0 : i32
    %c0_i32_1 = arith.constant 0 : i32
    %c0_i32_2 = arith.constant 0 : i32
    return %c0_i32, %c0_i32_0, %c0_i32_1 : i32, i32, i32
  }
  func.func @transform_5(%arg0: i32) -> (i32, i32) {
    %c0_i32 = arith.constant 0 : i32
    %c0_i32_0 = arith.constant 0 : i32
    %c0_i32_1 = arith.constant 0 : i32
    return %c0_i32, %c0_i32_0 : i32, i32
  }
  func.func @transform_6(%arg0: i32) -> (i32, i32) {
    %c0_i32 = arith.constant 0 : i32
    %c0_i32_0 = arith.constant 0 : i32
    %c0_i32_1 = arith.constant 0 : i32
    return %c0_i32, %c0_i32_0 : i32, i32
  }
  func.func @transform_7(%arg0: i32) -> (i32, i32) {
    %c0_i32 = arith.constant 0 : i32
    %c0_i32_0 = arith.constant 0 : i32
    %c0_i32_1 = arith.constant 0 : i32
    return %c0_i32, %c0_i32_0 : i32, i32
  }
  func.func @transform_8(%arg0: i32) -> (i32, i32) {
    %c0_i32 = arith.constant 0 : i32
    %c0_i32_0 = arith.constant 0 : i32
    %c0_i32_1 = arith.constant 0 : i32
    return %c0_i32, %c0_i32_0 : i32, i32
  }
  func.func @transform_9(%arg0: i32) -> (i32, i32, i32) {
    %c0_i32 = arith.constant 0 : i32
    %c0_i32_0 = arith.constant 0 : i32
    %c0_i32_1 = arith.constant 0 : i32
    %c0_i32_2 = arith.constant 0 : i32
    return %c0_i32, %c0_i32_0, %c0_i32_1 : i32, i32, i32
  }
  func.func @transform_10(%arg0: i32) -> (i32, i32) {
    %c0_i32 = arith.constant 0 : i32
    %c0_i32_0 = arith.constant 0 : i32
    %c0_i32_1 = arith.constant 0 : i32
    return %c0_i32, %c0_i32_0 : i32, i32
  }
  func.func @transform_11(%arg0: i32) -> (i32, i32, i32) {
    %c0_i32 = arith.constant 0 : i32
    %c0_i32_0 = arith.constant 0 : i32
    %c0_i32_1 = arith.constant 0 : i32
    %c0_i32_2 = arith.constant 0 : i32
    return %c0_i32, %c0_i32_0, %c0_i32_1 : i32, i32, i32
  }
  func.func @transform_12(%arg0: i32) -> (i32, i32) {
    %c0_i32 = arith.constant 0 : i32
    %c0_i32_0 = arith.constant 0 : i32
    %c0_i32_1 = arith.constant 0 : i32
    return %c0_i32, %c0_i32_0 : i32, i32
  }
  func.func @transform_13(%arg0: i32) -> (i32, i32) {
    %c0_i32 = arith.constant 0 : i32
    %c0_i32_0 = arith.constant 0 : i32
    %c0_i32_1 = arith.constant 0 : i32
    return %c0_i32, %c0_i32_0 : i32, i32
  }
  func.func @transform_14(%arg0: i32) -> (i32, i32, i32) {
    %c0_i32 = arith.constant 0 : i32
    %c0_i32_0 = arith.constant 0 : i32
    %c0_i32_1 = arith.constant 0 : i32
    return %arg0, %c0_i32, %c0_i32_0 : i32, i32, i32
  }
}

</mosaic_0001>

<bundles_post_ra>
// kernel: forward.1
= control target key start
LH: loop header
LB: loop body
LE: loop exit
PB: predicated region body
PF: predicated region fallthrough
CT: control target
= control target key end

     0   :  { %s4440_s0 = inlined_call_operand.vmem [shape: f32[2,8,256], index: 0, kind: input, shape index: {}]   ;;  %s4441_s1 = inlined_call_operand.vmem [shape: f32[2,16,16], index: 1, kind: input, shape index: {}]   ;;  %s4442_s2 = inlined_call_operand.hbm [shape: f32[16,17], index: 2, kind: input, shape index: {}]   ;;  %s4443_s3 = inlined_call_operand.hbm [shape: f32[72,8], index: 3, kind: input, shape index: {}]   ;;  %s4444_s4 = inlined_call_operand.hbm [shape: f32[9,256,16], index: 4, kind: input, shape index: {}]   ;;  %s4445_s5 = inlined_call_operand.hbm [shape: f32[16,16], index: 5, kind: input, shape index: {}]   ;;  %s4446_s6 = inlined_call_operand.hbm [shape: f32[16,48], index: 6, kind: input, shape index: {}]   ;;  %s4447_s7 = inlined_call_operand.hbm [shape: f32[16,48], index: 7, kind: input, shape index: {}]   ;;  %s4448_s8 = inlined_call_operand.hbm [shape: f32[72,8], index: 8, kind: input, shape index: {}]   ;;  %s4449_s9 = inlined_call_operand.hbm [shape: f32[9,48,48], index: 9, kind: input, shape index: {}]   ;;  %s4450_s10 = inlined_call_operand.hbm [shape: f32[144,8], index: 10, kind: input, shape index: {}]   ;;  %s4451_s11 = inlined_call_operand.hbm [shape: f32[9,48,48], index: 11, kind: input, shape index: {}]   ;;  %s4452_s12 = inlined_call_operand.hbm [shape: f32[144,16], index: 12, kind: input, shape index: {}]   ;;  %s4453_s13 = inlined_call_operand.hbm [shape: f32[144,16], index: 13, kind: input, shape index: {}]   ;;  %s4454_s14 = inlined_call_operand.vmem [shape: f32[2,16,48], index: 14, kind: output, shape index: {}]  }
   0x1   :  { %4455 = sst [smem:[#allocation28_spill]] %s4443_s3 }
   0x2   :  { %4456 = sst [smem:[#allocation29_spill]] %s4445_s5 }
   0x3   :  { %19 = vsyncpa [#allocation3], 0 }
   0x4   :  { %20 = vsyncpa [#allocation5], 0 }
   0x5   :  { %21 = vsyncpa [#allocation8], 0 }
   0x6   :  { %22 = vsyncpa [#allocation11], 0 }
   0x7   :  { %23 = vsyncpa [#allocation14], 0 }
   0x8   :  { %24 = vsyncpa [#allocation17], 0 }
   0x9   :  { %25 = vsyncpa [#allocation20], 0  ;;  %s3973_s29 = smov 0  }
   0xa LB: > { %s3979_s30 = sadd.s32 4294967295, %s3865_s29   ;;  %p3176_p0 = scmp.ge.s32.totalorder %s3865_s29, 1  ;;  %s3865_s29 = sphi %s3973_s29, %s31_s29  }
   0xb   : > { %p366_p1 = scmp.lt.s32.totalorder %s3865_s29, 3  ;;  %p3381_p2 = scmp.eq.s32.totalorder %s3979_s30, 0 }
   0xc   : > { %s4457_s3 = sld [smem:[#allocation28_spill]]  ;;  %s3867_s22 = smov [#allocation4]  }
   0xd   : > { %p3987_p3 = pnand %p3176_p0, %p366_p1  ;;  %s4459_s5 = sld [smem:[#allocation29_spill]] }
   0xe   : > { %s393_s23 = sshll.u32 %s3867_s22, 4  ;;  %s3868_s25 = smov [#allocation7]   ;;  %s394_s23 = int_to_ptr.vmem [resolvable:$true] %s393_s23 }
   0xf   : > { %p3344_p4 = pneg %p3987_p3  ;;  %s421_s26 = sshll.u32 %s3868_s25, 4  ;;  %s422_s26 = int_to_ptr.vmem [resolvable:$true] %s421_s26 }
  0x10   : > { %s447_s15 = sshll.u32 %s4447_s7, 4  ;;  %s3869_s16 = smov 128   ;;  %s448_s15 = int_to_ptr.hbm [resolvable:$true] %s447_s15 }
  0x11   : > { %p3998_p5 = pnand %p3381_p2, %p3344_p4  ;;  %s3870_s19 = smov 8  }
  0x12   : > { %s391_s17 = sshll.u32 %s4457_s3, 4  ;;  %s3871_s20 = smov [#allocation10]   ;;  %s392_s17 = int_to_ptr.hbm [resolvable:$true] %s391_s17 }
  0x13   : > { %s419_s21 = sshll.u32 %s4459_s5, 4  ;;  %s449_s22 = sshll.u32 %s3871_s20, 4  ;;  %s420_s21 = int_to_ptr.hbm [resolvable:$true] %s419_s21  ;;  %s450_s22 = int_to_ptr.vmem [resolvable:$true] %s449_s22 }
  0x14   : > { %3350 = dma.hbm_to_vmem [thread:$0]  (!%p3998_p5), %s392_s17, 1152, %s394_s23, [#allocation5], %s3869_s16, %s3869_s16, %s3870_s19  }
  0x15   : > { %3356 = dma.hbm_to_vmem [thread:$0]  (!%p3998_p5), %s420_s21, 256, %s422_s26, [#allocation8], %s3869_s16, %s3869_s16, %s3870_s19  }
  0x16   : > { %s475_s28 = sshll.u32 %s4449_s9, 4  ;;  %s503_s3 = sshll.u32 %s4451_s11, 4  ;;  %s476_s28 = int_to_ptr.hbm [resolvable:$true] %s475_s28  ;;  %s504_s3 = int_to_ptr.hbm [resolvable:$true] %s503_s3 }
  0x17   : > { %3362 = dma.hbm_to_vmem [thread:$0]  (!%p3998_p5), %s448_s15, 256, %s450_s22, [#allocation11], %s3869_s16, %s3869_s16, %s3870_s19  }
  0x18   : > { %s3872_s21 = smov [#allocation13]   ;;  %s3873_s20 = smov [#allocation16]  }
  0x19   : > { %s477_s26 = sshll.u32 %s3872_s21, 4  ;;  %s505_s25 = sshll.u32 %s3873_s20, 4  ;;  %s478_s26 = int_to_ptr.vmem [resolvable:$true] %s477_s26  ;;  %s506_s25 = int_to_ptr.vmem [resolvable:$true] %s505_s25 }
  0x1a   : > { %3368 = dma.hbm_to_vmem [thread:$0]  (!%p3998_p5), %s476_s28, 6912, %s478_s26, [#allocation14], %s3869_s16, %s3869_s16, %s3870_s19  }
  0x1b   : > { %s377_s15 = sshll.u32 %s4442_s2, 4  ;;  %s405_s23 = sshll.u32 %s4444_s4, 4  ;;  %s378_s15 = int_to_ptr.hbm [resolvable:$true] %s377_s15  ;;  %s406_s23 = int_to_ptr.hbm [resolvable:$true] %s405_s23 }
  0x1c   : > { %3374 = dma.hbm_to_vmem [thread:$0]  (!%p3998_p5), %s504_s3, 6912, %s506_s25, [#allocation17], %s3869_s16, %s3869_s16, %s3870_s19  }
  0x1d   : > { %s3874_s21 = smov [#allocation2]   ;;  %s3875_s5 = smov [#allocation6]  }
  0x1e   : > { %s379_s28 = sshll.u32 %s3874_s21, 4  ;;  %s407_s26 = sshll.u32 %s3875_s5, 4  ;;  %s380_s28 = int_to_ptr.vmem [resolvable:$true] %s379_s28  ;;  %s408_s26 = int_to_ptr.vmem [resolvable:$true] %s407_s26 }
  0x1f   : > { %3347 = dma.hbm_to_vmem [thread:$0]  (!%p3998_p5), %s378_s15, 256, %s380_s28, [#allocation3], %s3869_s16, %s3869_s16, %s3870_s19  }
  0x20   : > { %s433_s3 = sshll.u32 %s4446_s6, 4  ;;  %s461_s17 = sshll.u32 %s4448_s8, 4  ;;  %s434_s3 = int_to_ptr.hbm [resolvable:$true] %s433_s3  ;;  %s462_s17 = int_to_ptr.hbm [resolvable:$true] %s461_s17 }
  0x21   : > { %3353 = dma.hbm_to_vmem [thread:$0]  (!%p3998_p5), %s406_s23, 36864, %s408_s26, [#allocation5], %s3869_s16, %s3869_s16, %s3870_s19  }
  0x22   : > { %s3876_s21 = smov [#allocation9]   ;;  %s3877_s28 = smov [#allocation12]  }
  0x23   : > { %s435_s15 = sshll.u32 %s3876_s21, 4  ;;  %s463_s5 = sshll.u32 %s3877_s28, 4  ;;  %s436_s15 = int_to_ptr.vmem [resolvable:$true] %s435_s15  ;;  %s464_s5 = int_to_ptr.vmem [resolvable:$true] %s463_s5 }
  0x24   : > { %3359 = dma.hbm_to_vmem [thread:$0]  (!%p3998_p5), %s434_s3, 256, %s436_s15, [#allocation8], %s3869_s16, %s3869_s16, %s3870_s19  }
  0x25   : > { %s489_s23 = sshll.u32 %s4450_s10, 4  ;;  %s517_s22 = sshll.u32 %s4452_s12, 4  ;;  %s490_s23 = int_to_ptr.hbm [resolvable:$true] %s489_s23  ;;  %s518_s22 = int_to_ptr.hbm [resolvable:$true] %s517_s22 }
  0x26   : > { %3365 = dma.hbm_to_vmem [thread:$0]  (!%p3998_p5), %s462_s17, 1152, %s464_s5, [#allocation11], %s3869_s16, %s3869_s16, %s3870_s19  }
  0x27   : > { %s3878_s3 = smov [#allocation15]   ;;  %s3879_s15 = smov [#allocation18]  }
  0x28   : > { %s491_s21 = sshll.u32 %s3878_s3, 4  ;;  %s519_s28 = sshll.u32 %s3879_s15, 4  ;;  %s492_s21 = int_to_ptr.vmem [resolvable:$true] %s491_s21  ;;  %s520_s28 = int_to_ptr.vmem [resolvable:$true] %s519_s28 }
  0x29   : > { %3371 = dma.hbm_to_vmem [thread:$0]  (!%p3998_p5), %s490_s23, 2304, %s492_s21, [#allocation14], %s3869_s16, %s3869_s16, %s3870_s19  }
  0x2a   : > { %s531_s17 = sshll.u32 %s4453_s13, 4  ;;  %s3880_s5 = smov [#allocation19]   ;;  %s532_s17 = int_to_ptr.hbm [resolvable:$true] %s531_s17 }
  0x2b   : > { %3377 = dma.hbm_to_vmem [thread:$0]  (!%p3998_p5), %s518_s22, 2304, %s520_s28, [#allocation17], %s3869_s16, %s3869_s16, %s3870_s19  }
  0x2c   : > { %s533_s26 = sshll.u32 %s3880_s5, 4  ;;  %565 = sbr.rel (%p3987_p3) target bundleno = 2360 (0x938), region = 76  ;;  %s534_s26 = int_to_ptr.vmem [resolvable:$true] %s533_s26 }
  0x2d   : > { %3380 = dma.hbm_to_vmem [thread:$0]  (!%p3998_p5), %s532_s17, 2304, %s534_s26, [#allocation20], %s3869_s16, %s3869_s16, %s3870_s19  }
  0x31   : > { %3836 = dma.done.wait (%p3381_p2), [#allocation3], 256  }
  0x32   : > { %3838 = vsyncadd (%p3381_p2), [#allocation3], 4294967040 }
  0x33   : > { %3840 = dma.done.wait (%p3381_p2), [#allocation5], 38016  }
  0x34   : > { %3842 = vsyncadd (%p3381_p2), [#allocation5], 4294929280 }
  0x35   : > { %3844 = dma.done.wait (%p3381_p2), [#allocation8], 512  }
  0x36   : > { %3846 = vsyncadd (%p3381_p2), [#allocation8], 4294966784 }
  0x37   : > { %3848 = dma.done.wait (%p3381_p2), [#allocation11], 1408  }
  0x38   : > { %3850 = vsyncadd (%p3381_p2), [#allocation11], 4294965888 }
  0x39   : > { %3852 = dma.done.wait (%p3381_p2), [#allocation14], 9216  }
  0x3a   : > { %3854 = vsyncadd (%p3381_p2), [#allocation14], 4294958080 }
  0x3b   : > { %3856 = dma.done.wait (%p3381_p2), [#allocation17], 9216  }
  0x3c   : > { %3858 = vsyncadd (%p3381_p2), [#allocation17], 4294958080 }
  0x3d   : > { %3860 = dma.done.wait (%p3381_p2), [#allocation20], 2304  }
  0x3e   : > { %3862 = vsyncadd (%p3381_p2), [#allocation20], 4294964992  ;;  %v3881_v0 = vmov 0   ;;  %v690_v1 = vld [vmem:[#allocation2] sm:$0xff]  ;;  %v3882_v2 = vmov 1   ;;  %p672_p6 = scmp.lt.s32.totalorder %s3979_s30, 1 }
  0x3f   : > { %3444 = vset.pattern.permute.xlu0 %v3881_v0  ;;  %vm742_vm2 = vcmask 1043456   ;;  %v710_v15 = vld [vmem:[#allocation4] sm:$0xff]  ;;  %v711_v16 = vld [vmem:[#allocation4 + $0x8] sm:$0xff]  ;;  %vm726_vm3 = vcmask 64512   ;;  %v712_v25 = vld [vmem:[#allocation4 + $0x10] sm:$0xff]  ;;  %vm1542_vm4 = vcmask 130048  }
  0x40   : > { %693 = vperm.xlu0 %3444, %v690_v1   ;;  %s4462_s30 = smov (!%p672_p6, %s3979_s30), 1  ;;  %v714_v19 = vld [vmem:[#allocation4 + $0x20] sm:$0xff]  ;;  %v715_v20 = vld [vmem:[#allocation4 + $0x28] sm:$0xff]  ;;  %v719_v23 = vpack.c.bf16 %v711_v16, %v710_v15  ;;  %v713_v26 = vld [vmem:[#allocation4 + $0x18] sm:$0xff]  ;;  %vm1602_vm5 = vcmask 392192  }
  0x41   : > { %s4124_s18 = sshll.u32 %s4462_s30, 4  ;;  %v721_v24 = vpack.c.bf16 %v715_v20, %v714_v19  ;;  %v716_v27 = vld [vmem:[#allocation4 + $0x30] sm:$0xff]  ;;  %v717_v28 = vld [vmem:[#allocation4 + $0x38] sm:$0xff]  ;;  %v720_v29 = vpack.c.bf16 %v713_v26, %v712_v25  ;;  %v881_v32 = vld [vmem:[#allocation6 + $0x178] sm:$0xff] }
  0x42   : > { %s676_s19 = scalar_lea.vmem %s4440_s0, %s4124_s18  ;;  %v4135_v30 = vpack.c.bf16 %v717_v28, %v716_v27  ;;  %v880_v31 = vld [vmem:[#allocation6 + $0x170] sm:$0xff]  ;;  %v897_v35 = vld [vmem:[#allocation6 + $0x1f8] sm:$0xff]  ;;  %v878_v36 = vld [vmem:[#allocation6 + $0x160] sm:$0xff]  ;;  %s681_s25 = scalar_lea.vmem %s4441_s1, %s4124_s18 }
  0x43   : > { %v688_v4 = vld [vmem:[%s676_s19] sm:$0xff]  ;;  %v689_v5 = vld [vmem:[%s676_s19 + $0x8] sm:$0xff]  ;;  %v907_v34 = vpack.c.bf16 %v881_v32, %v880_v31  ;;  %v894_v39 = vld [vmem:[#allocation6 + $0x1e0] sm:$0xff]  ;;  %s686_s21 = scalar_lea.vmem %s4454_s14, %s4124_s18 }
  0x44   : > { %v896_v33 = vld [vmem:[#allocation6 + $0x1f0] sm:$0xff]  ;;  %v879_v37 = vld [vmem:[#allocation6 + $0x168] sm:$0xff]  ;;  %v877_v44 = vld [vmem:[#allocation6 + $0x158] sm:$0xff] }
  0x45   : > { %v915_v38 = vpack.c.bf16 %v897_v35, %v896_v33  ;;  %v895_v40 = vld [vmem:[#allocation6 + $0x1e8] sm:$0xff]  ;;  %916 = vmatpush.bf16.msra.mxu2 %v907_v34  ;;  %v906_v41 = vpack.c.bf16 %v879_v37, %v878_v36  ;;  %v876_v43 = vld [vmem:[#allocation6 + $0x150] sm:$0xff]  ;;  %v893_v46 = vld [vmem:[#allocation6 + $0x1d8] sm:$0xff] }
  0x46   : > { %v914_v42 = vpack.c.bf16 %v895_v40, %v894_v39  ;;  %v892_v45 = vld [vmem:[#allocation6 + $0x1d0] sm:$0xff]  ;;  %v905_v47 = vpack.c.bf16 %v877_v44, %v876_v43  ;;  %v874_v49 = vld [vmem:[#allocation6 + $0x140] sm:$0xff]  ;;  %v875_v50 = vld [vmem:[#allocation6 + $0x148] sm:$0xff] }
  0x47   : > { %v913_v48 = vpack.c.bf16 %v893_v46, %v892_v45  ;;  %v890_v51 = vld [vmem:[#allocation6 + $0x1c0] sm:$0xff]  ;;  %v891_v52 = vld [vmem:[#allocation6 + $0x1c8] sm:$0xff]  ;;  %v718_v53 = vld [vmem:[#allocation4 + $0x40] sm:$0xff]  ;;  %v904_v54 = vpack.c.bf16 %v875_v50, %v874_v49 }
  0x48   : > { %3445 = vset.pattern.permute.xlu0 %v3882_v2  ;;  %v912_v55 = vpack.c.bf16 %v891_v52, %v890_v51  ;;  %v872_v56 = vld [vmem:[#allocation6 + $0x130] sm:$0xff]  ;;  %v873_v57 = vld [vmem:[#allocation6 + $0x138] sm:$0xff]  ;;  %v4141_v60 = vpack.c.bf16 %v718_v53, %v718_v53  ;;  %v870_v63 = vld [vmem:[#allocation6 + $0x120] sm:$0xff] }
  0x49   : > { %699 = vperm.xlu0 %3445, %v690_v1   ;;  %917 = vmatpush.bf16.msra.mxu2 %v906_v41  ;;  %v888_v58 = vld [vmem:[#allocation6 + $0x1b0] sm:$0xff]  ;;  %v889_v59 = vld [vmem:[#allocation6 + $0x1b8] sm:$0xff]  ;;  %v903_v61 = vpack.c.bf16 %v873_v57, %v872_v56  ;;  %v871_v0 = vld [vmem:[#allocation6 + $0x128] sm:$0xff] }
  0x4a   : > { %v911_v62 = vpack.c.bf16 %v889_v59, %v888_v58  ;;  %v886_v1 = vld [vmem:[#allocation6 + $0x1a0] sm:$0xff]  ;;  %v887_v2 = vld [vmem:[#allocation6 + $0x1a8] sm:$0xff]  ;;  %v830_v25 = vld [vmem:[#allocation6 + $0x78] sm:$0xff] }
  0x4b   : > { %v867_v16 = vld [vmem:[#allocation6 + $0x108] sm:$0xff]  ;;  %v845_v28 = vld [vmem:[#allocation6 + $0xf0] sm:$0xff]  ;;  %v980_v34 = vld [vmem:[#allocation6 + $0x258] sm:$0xff] }
  0x4c   : > { %v998_v27 = vld [vmem:[#allocation6 + $0x2e8] sm:$0xff]  ;;  %v979_v32 = vld [vmem:[#allocation6 + $0x250] sm:$0xff]  ;;  %v996_v36 = vld [vmem:[#allocation6 + $0x2d8] sm:$0xff] }
  0x4d   : > { %918 = vmatpush.bf16.msra.mxu2 %v905_v47  ;;  %v995_v35 = vld [vmem:[#allocation6 + $0x2d0] sm:$0xff]  ;;  %v827_v40 = vld [vmem:[#allocation6 + $0x60] sm:$0xff]  ;;  %v828_v41 = vld [vmem:[#allocation6 + $0x68] sm:$0xff]  ;;  %v1008_v44 = vpack.c.bf16 %v980_v34, %v979_v32 }
  0x4e   : > { %v844_v43 = vld [vmem:[#allocation6 + $0xe8] sm:$0xff]  ;;  %v1016_v45 = vpack.c.bf16 %v996_v36, %v995_v35  ;;  %v855_v46 = vpack.c.bf16 %v828_v41, %v827_v40  ;;  %v826_v49 = vld [vmem:[#allocation6 + $0x58] sm:$0xff]  ;;  %v841_v50 = vld [vmem:[#allocation6 + $0xd0] sm:$0xff] }
  0x4f   : > { %v842_v51 = vld [vmem:[#allocation6 + $0xd8] sm:$0xff]  ;;  %v839_v56 = vld [vmem:[#allocation6 + $0xc0] sm:$0xff]  ;;  %v840_v57 = vld [vmem:[#allocation6 + $0xc8] sm:$0xff] }
  0x50   : > { %v862_v53 = vpack.c.bf16 %v842_v51, %v841_v50  ;;  %v861_v58 = vpack.c.bf16 %v840_v57, %v839_v56  ;;  %v821_v59 = vld [vmem:[#allocation6 + $0x30] sm:$0xff]  ;;  %v974_v32 = vld [vmem:[#allocation6 + $0x228] sm:$0xff]  ;;  %v989_v35 = vld [vmem:[#allocation6 + $0x2a0] sm:$0xff] }
  0x51   : > { %919 = vmatpush.bf16.msra.mxu2 %v904_v54  ;;  %v823_v54 = vld [vmem:[#allocation6 + $0x40] sm:$0xff]  ;;  %v990_v36 = vld [vmem:[#allocation6 + $0x2a8] sm:$0xff]  ;;  %v987_v40 = vld [vmem:[#allocation6 + $0x290] sm:$0xff] }
  0x52   : > { %v1139_v50 = vld [vmem:[#allocation6 + $0x470] sm:$0xff]  ;;  %v1140_v51 = vld [vmem:[#allocation6 + $0x478] sm:$0xff]  ;;  %v1137_v56 = vld [vmem:[#allocation6 + $0x460] sm:$0xff] }
  0x53   : > { %v1138_v57 = vld [vmem:[#allocation6 + $0x468] sm:$0xff] }
  0x55   : > { %920 = vmatpush.bf16.msra.mxu2 %v903_v61  ;;  %v822_v61 = vld [vmem:[#allocation6 + $0x38] sm:$0xff] }
  0xb2   : > { %v694_v3 = vpop.permute.xlu0 %693 }
  0xb3   : > { %v696_v6 = vmul.f32 %v694_v3, %v688_v4  ;;  %v697_v7 = vmul.f32 %v694_v3, %v689_v5  ;;  %v902_v3 = vpack.c.bf16 %v871_v0, %v870_v63  ;;  %v910_v4 = vpack.c.bf16 %v887_v2, %v886_v1  ;;  %v868_v5 = vld [vmem:[#allocation6 + $0x110] sm:$0xff]  ;;  %v838_v63 = vld [vmem:[#allocation6 + $0xb8] sm:$0xff]  ;;  %v819_v2 = vld [vmem:[#allocation6 + $0x20] sm:$0xff] }
  0xb4   : > { %v852_v0 = vpack.c.bf16 %v822_v61, %v821_v59  ;;  %v1165_v59 = vpack.c.bf16 %v1138_v57, %v1137_v56  ;;  %v1295_v57 = vld [vmem:[#allocation6 + $0x670] sm:$0xff] }
  0xb5   : > { %921 = vmatpush.bf16.msra.mxu2 %v902_v3  ;;  %v820_v3 = vld [vmem:[#allocation6 + $0x28] sm:$0xff] }
  0xbb   : > { %v700_v8 = vpop.permute.xlu0 %699 }
  0xbc   : > { %v702_v9 = vadd.f32 %v700_v8, %v696_v6  ;;  %v703_v10 = vadd.f32 %v700_v8, %v697_v7  ;;  %v869_v6 = vld [vmem:[#allocation6 + $0x118] sm:$0xff]  ;;  %v884_v7 = vld [vmem:[#allocation6 + $0x190] sm:$0xff] }
  0xbd   : > { %v885_v8 = vld [vmem:[#allocation6 + $0x198] sm:$0xff]  ;;  %v901_v15 = vpack.c.bf16 %v869_v6, %v868_v5  ;;  %v851_v5 = vpack.c.bf16 %v820_v3, %v819_v2  ;;  %v836_v6 = vld [vmem:[#allocation6 + $0xa8] sm:$0xff] }
  0xbe   : > { %v706_v11 = vmul.f32 0.25, %v702_v9  ;;  %v707_v12 = vmul.f32 0.25, %v703_v10  ;;  %vm704_vm0 = vcmp.ge.f32.partialorder %v702_v9, 0.0  ;;  %vm705_vm1 = vcmp.ge.f32.partialorder %v703_v10, 0.0  ;;  %v1152_v2 = vld [vmem:[#allocation6 + $0x4d8] sm:$0xff] }
  0xbf   : > { %v909_v20 = vpack.c.bf16 %v885_v8, %v884_v7  ;;  %922 = vmatpush.bf16.msra.mxu2 %v901_v15  ;;  %v977_v7 = vld [vmem:[#allocation6 + $0x240] sm:$0xff]  ;;  %v978_v8 = vld [vmem:[#allocation6 + $0x248] sm:$0xff]  ;;  %v818_v15 = vld [vmem:[#allocation6 + $0x18] sm:$0xff] }
  0xc0   : > { %v708_v13 = vsel %vm704_vm0, %v702_v9, %v706_v11  ;;  %v709_v14 = vsel %vm705_vm1, %v703_v10, %v707_v12  ;;  %v983_v9 = vld [vmem:[#allocation6 + $0x270] sm:$0xff]  ;;  %v984_v10 = vld [vmem:[#allocation6 + $0x278] sm:$0xff]  ;;  %v866_v11 = vld [vmem:[#allocation6 + $0x100] sm:$0xff] }
  0xc1   : > { %v724_v17 = vpack.c.bf16 %v708_v13, %v708_v13  ;;  %v725_v18 = vpack.c.bf16 %v709_v14, %v709_v14  ;;  %v1010_v12 = vpack.c.bf16 %v984_v10, %v983_v9  ;;  %v999_v13 = vld [vmem:[#allocation6 + $0x2f0] sm:$0xff]  ;;  %v1000_v14 = vld [vmem:[#allocation6 + $0x2f8] sm:$0xff]  ;;  %v900_v33 = vpack.c.bf16 %v867_v16, %v866_v11  ;;  %v993_v11 = vld [vmem:[#allocation6 + $0x2c0] sm:$0xff] }
  0xc2   : > { %v1018_v19 = vpack.c.bf16 %v1000_v14, %v999_v13  ;;  %v1007_v10 = vpack.c.bf16 %v978_v8, %v977_v7  ;;  %v817_v13 = vld [vmem:[#allocation6 + $0x10] sm:$0xff]  ;;  %v1150_v7 = vld [vmem:[#allocation6 + $0x4c8] sm:$0xff] }
  0xc3   : > { %v744_v21 = vsel %vm742_vm2, %v724_v17, 0  ;;  %v747_v22 = vsel %vm742_vm2, %v725_v18, 0  ;;  %v882_v17 = vld [vmem:[#allocation6 + $0x180] sm:$0xff]  ;;  %v883_v18 = vld [vmem:[#allocation6 + $0x188] sm:$0xff]  ;;  %923 = vmatpush.bf16.msra.mxu2 %v900_v33  ;;  %v833_v16 = vld [vmem:[#allocation6 + $0x90] sm:$0xff] }
  0xc4   : > { %756 = vmatpush.bf16.msra.mxu0 %v744_v21  ;;  %789 = vmatpush.bf16.msra.mxu1 %v747_v22  ;;  %v981_v21 = vld [vmem:[#allocation6 + $0x260] sm:$0xff]  ;;  %v908_v37 = vpack.c.bf16 %v883_v18, %v882_v17  ;;  %v834_v17 = vld [vmem:[#allocation6 + $0x98] sm:$0xff] }
  0xc5   : > { %3295 = vmatpush.bf16.msra.mxu3 %v747_v22  ;;  %v982_v22 = vld [vmem:[#allocation6 + $0x268] sm:$0xff]  ;;  %v858_v18 = vpack.c.bf16 %v834_v17, %v833_v16 }
  0xc6   : > { %v1009_v26 = vpack.c.bf16 %v982_v22, %v981_v21  ;;  %v991_v21 = vld [vmem:[#allocation6 + $0x2b0] sm:$0xff] }
  0xc7   : > { %3209 = vmatmul.msk.bf16.vlgmr.msra.gmra.mxu0 %vm726_vm3, %v719_v23  ;;  %3214 = vmatmul.msk.bf16.vlgmr.msra.gmra.mxu1 %vm726_vm3, %v719_v23  ;;  %v997_v23 = vld [vmem:[#allocation6 + $0x2e0] sm:$0xff] }
  0xc8   : > { %3216 = vmatmul.msk.bf16.vlgmr.msra.gmra.mxu3 %vm726_vm3, %v721_v24  ;;  %1019 = vmatpush.bf16.msrb.mxu0 %v1010_v12  ;;  %v1017_v31 = vpack.c.bf16 %v998_v27, %v997_v23  ;;  %v994_v12 = vld [vmem:[#allocation6 + $0x2c8] sm:$0xff]  ;;  %v992_v23 = vld [vmem:[#allocation6 + $0x2b8] sm:$0xff]  ;;  %v831_v27 = vld [vmem:[#allocation6 + $0x80] sm:$0xff] }
  0xc9   : > { %929 = vmatpush.bf16.msrb.mxu3 %v915_v38  ;;  %1032 = vmatpush.bf16.msrb.mxu1 %v1018_v19  ;;  %v1015_v14 = vpack.c.bf16 %v994_v12, %v993_v11  ;;  %v975_v19 = vld [vmem:[#allocation6 + $0x230] sm:$0xff] }
  0xca   : > { %v1131_v12 = vld [vmem:[#allocation6 + $0x430] sm:$0xff] }
  0xcc   : > { %1020 = vmatpush.bf16.msrb.mxu0 %v1009_v26  ;;  %v816_v26 = vld [vmem:[#allocation6 + $0x8] sm:$0xff] }
  0xcd   : > { %930 = vmatpush.bf16.msrb.mxu3 %v914_v42  ;;  %1033 = vmatpush.bf16.msrb.mxu1 %v1017_v31  ;;  %v843_v42 = vld [vmem:[#allocation6 + $0xe0] sm:$0xff] }
  0xce   : > { %v863_v47 = vpack.c.bf16 %v844_v43, %v843_v42  ;;  %v973_v31 = vld [vmem:[#allocation6 + $0x220] sm:$0xff]  ;;  %v988_v42 = vld [vmem:[#allocation6 + $0x298] sm:$0xff] }
  0xcf   : > { %v1005_v34 = vpack.c.bf16 %v974_v32, %v973_v31  ;;  %v1012_v43 = vpack.c.bf16 %v988_v42, %v987_v40  ;;  %v1143_v40 = vld [vmem:[#allocation6 + $0x490] sm:$0xff]  ;;  %v1144_v42 = vld [vmem:[#allocation6 + $0x498] sm:$0xff] }
  0xd0   : > { %1021 = vmatpush.bf16.msrb.mxu0 %v1008_v44  ;;  %v969_v44 = vld [vmem:[#allocation6 + $0x200] sm:$0xff] }
  0xd1   : > { %931 = vmatpush.bf16.msrb.mxu3 %v913_v48  ;;  %v825_v48 = vld [vmem:[#allocation6 + $0x50] sm:$0xff]  ;;  %1034 = vmatpush.bf16.msrb.mxu1 %v1016_v45  ;;  %v970_v45 = vld [vmem:[#allocation6 + $0x208] sm:$0xff] }
  0xd2   : > { %v854_v52 = vpack.c.bf16 %v826_v49, %v825_v48  ;;  %v986_v48 = vld [vmem:[#allocation6 + $0x288] sm:$0xff] }
  0xd4   : > { %1022 = vmatpush.bf16.msrb.mxu0 %v1007_v10 }
  0xd5   : > { %932 = vmatpush.bf16.msrb.mxu3 %v912_v55  ;;  %v824_v55 = vld [vmem:[#allocation6 + $0x48] sm:$0xff]  ;;  %1035 = vmatpush.bf16.msrb.mxu1 %v1015_v14  ;;  %v1147_v14 = vld [vmem:[#allocation6 + $0x4b0] sm:$0xff] }
  0xd7   : > { %3210 = vmatmul.msk.bf16.gmra.mxu0 %vm726_vm3, %v720_v29  ;;  %3215 = vmatmul.msk.bf16.gmra.mxu1 %vm726_vm3, %v720_v29  ;;  %v846_v29 = vld [vmem:[#allocation6 + $0xf8] sm:$0xff] }
  0xd8   : > { %3217 = vmatmul.msk.bf16.gmra.mxu3 %vm726_vm3, %v4135_v30  ;;  %v864_v39 = vpack.c.bf16 %v846_v29, %v845_v28  ;;  %v832_v29 = vld [vmem:[#allocation6 + $0x88] sm:$0xff] }
  0xd9   : > { %933 = vmatpush.bf16.msrb.mxu3 %v911_v62  ;;  %v837_v62 = vld [vmem:[#allocation6 + $0xb0] sm:$0xff]  ;;  %v857_v33 = vpack.c.bf16 %v832_v29, %v831_v27 }
  0xda   : > { %v860_v1 = vpack.c.bf16 %v838_v63, %v837_v62  ;;  %v1135_v62 = vld [vmem:[#allocation6 + $0x450] sm:$0xff]  ;;  %v1136_v63 = vld [vmem:[#allocation6 + $0x458] sm:$0xff] }
  0xdd   : > { %934 = vmatpush.bf16.msrb.mxu3 %v910_v4  ;;  %v835_v4 = vld [vmem:[#allocation6 + $0xa0] sm:$0xff] }
  0xde   : > { %v859_v9 = vpack.c.bf16 %v836_v6, %v835_v4  ;;  %v1133_v4 = vld [vmem:[#allocation6 + $0x440] sm:$0xff] }
  0xdf   : > { %v1149_v6 = vld [vmem:[#allocation6 + $0x4c0] sm:$0xff] }
  0xe1   : > { %935 = vmatpush.bf16.msrb.mxu3 %v909_v20  ;;  %v976_v20 = vld [vmem:[#allocation6 + $0x238] sm:$0xff] }
  0xe2   : > { %v1006_v22 = vpack.c.bf16 %v976_v20, %v975_v19  ;;  %v1077_v19 = vld [vmem:[#allocation6 + $0x3f0] sm:$0xff]  ;;  %v1078_v20 = vld [vmem:[#allocation6 + $0x3f8] sm:$0xff] }
  0xe3   : > { %v1096_v32 = vpack.c.bf16 %v1078_v20, %v1077_v19 }
  0xe4   : > { %1023 = vmatpush.bf16.msrb.mxu0 %v1006_v22  ;;  %v1130_v22 = vld [vmem:[#allocation6 + $0x428] sm:$0xff] }
  0xe5   : > { %936 = vmatpush.bf16.msrb.mxu3 %v908_v37  ;;  %v1013_v37 = vpack.c.bf16 %v990_v36, %v989_v35  ;;  %v1076_v35 = vld [vmem:[#allocation6 + $0x3e8] sm:$0xff] }
  0xe7   : > { %3211 = vmatmul.msk.bf16.gmra.mxu0 %vm726_vm3, %v721_v24  ;;  %v829_v24 = vld [vmem:[#allocation6 + $0x70] sm:$0xff] }
  0xe8   : > { %3218 = vmatmul.msk.bf16.gmra.mxu3 %vm726_vm3, %v4141_v60  ;;  %v856_v38 = vpack.c.bf16 %v830_v25, %v829_v24  ;;  %v1014_v24 = vpack.c.bf16 %v992_v23, %v991_v21  ;;  %v815_v25 = vld [vmem:[#allocation6] sm:$0xff]  ;;  %1024 = vmatpush.bf16.msrb.mxu0 %v1005_v34 }
  0xe9   : > { %955 = vmatpush.bf16.msra.mxu3 %v864_v39  ;;  %v849_v28 = vpack.c.bf16 %v816_v26, %v815_v25  ;;  %v972_v39 = vld [vmem:[#allocation6 + $0x218] sm:$0xff]  ;;  %v1129_v21 = vld [vmem:[#allocation6 + $0x420] sm:$0xff] }
  0xea   : > { %942 = vmatpush.bf16.msrb.mxu2 %v856_v38  ;;  %1036 = vmatpush.bf16.msrb.mxu1 %v1014_v24  ;;  %v971_v38 = vld [vmem:[#allocation6 + $0x210] sm:$0xff]  ;;  %v1145_v23 = vld [vmem:[#allocation6 + $0x4a0] sm:$0xff]  ;;  %v1146_v24 = vld [vmem:[#allocation6 + $0x4a8] sm:$0xff]  ;;  %v1161_v26 = vpack.c.bf16 %v1130_v22, %v1129_v21 }
  0xeb   : > { %v1004_v41 = vpack.c.bf16 %v972_v39, %v971_v38  ;;  %v1059_v25 = vld [vmem:[#allocation6 + $0x360] sm:$0xff]  ;;  %v1169_v27 = vpack.c.bf16 %v1146_v24, %v1145_v23  ;;  %v1127_v38 = vld [vmem:[#allocation6 + $0x410] sm:$0xff]  ;;  %v1128_v39 = vld [vmem:[#allocation6 + $0x418] sm:$0xff] }
  0xec   : > { %v1075_v34 = vld [vmem:[#allocation6 + $0x3e0] sm:$0xff]  ;;  %v1291_v21 = vld [vmem:[#allocation6 + $0x650] sm:$0xff]  ;;  %v1292_v23 = vld [vmem:[#allocation6 + $0x658] sm:$0xff] }
  0xed   : > { %956 = vmatpush.bf16.msra.mxu3 %v863_v47  ;;  %1025 = vmatpush.bf16.msrb.mxu0 %v1004_v41  ;;  %v1003_v47 = vpack.c.bf16 %v970_v45, %v969_v44  ;;  %v1160_v41 = vpack.c.bf16 %v1128_v39, %v1127_v38  ;;  %v1168_v44 = vpack.c.bf16 %v1144_v42, %v1143_v40  ;;  %v1307_v24 = vld [vmem:[#allocation6 + $0x6d0] sm:$0xff]  ;;  %v1305_v38 = vld [vmem:[#allocation6 + $0x6c0] sm:$0xff]  ;;  %v1306_v39 = vld [vmem:[#allocation6 + $0x6c8] sm:$0xff] }
  0xee   : > { %943 = vmatpush.bf16.msrb.mxu2 %v855_v46  ;;  %1037 = vmatpush.bf16.msrb.mxu1 %v1013_v37  ;;  %v985_v46 = vld [vmem:[#allocation6 + $0x280] sm:$0xff]  ;;  %v1049_v42 = vld [vmem:[#allocation6 + $0x310] sm:$0xff] }
  0xef   : > { %v1011_v49 = vpack.c.bf16 %v986_v48, %v985_v46  ;;  %v1095_v46 = vpack.c.bf16 %v1076_v35, %v1075_v34  ;;  %v1073_v48 = vld [vmem:[#allocation6 + $0x3d0] sm:$0xff]  ;;  %v1068_v34 = vld [vmem:[#allocation6 + $0x3a8] sm:$0xff]  ;;  %v1320_v35 = vpack.c.bf16 %v1292_v23, %v1291_v21  ;;  %v1284_v23 = vld [vmem:[#allocation6 + $0x618] sm:$0xff] }
  0xf1   : > { %957 = vmatpush.bf16.msra.mxu3 %v862_v53  ;;  %v1156_v53 = vld [vmem:[#allocation6 + $0x4f8] sm:$0xff]  ;;  %1026 = vmatpush.bf16.msrb.mxu0 %v1003_v47 }
  0xf2   : > { %944 = vmatpush.bf16.msrb.mxu2 %v854_v52  ;;  %1038 = vmatpush.bf16.msrb.mxu1 %v1012_v43  ;;  %v1155_v52 = vld [vmem:[#allocation6 + $0x4f0] sm:$0xff]  ;;  %v1058_v47 = vld [vmem:[#allocation6 + $0x358] sm:$0xff] }
  0xf3   : > { %v1057_v43 = vld [vmem:[#allocation6 + $0x350] sm:$0xff] }
  0xf5   : > { %958 = vmatpush.bf16.msra.mxu3 %v861_v58  ;;  %v1154_v58 = vld [vmem:[#allocation6 + $0x4e8] sm:$0xff] }
  0xf6   : > { %1039 = vmatpush.bf16.msrb.mxu1 %v1011_v49  ;;  %v1074_v49 = vld [vmem:[#allocation6 + $0x3d8] sm:$0xff] }
  0xf7   : > { %3212 = vmatmul.msk.bf16.gmra.mxu0 %vm726_vm3, %v4135_v30  ;;  %v853_v30 = vpack.c.bf16 %v824_v55, %v823_v54  ;;  %v1166_v54 = vpack.c.bf16 %v1140_v51, %v1139_v50  ;;  %v1174_v55 = vpack.c.bf16 %v1156_v53, %v1155_v52  ;;  %v1125_v50 = vld [vmem:[#allocation6 + $0x400] sm:$0xff]  ;;  %v1126_v51 = vld [vmem:[#allocation6 + $0x408] sm:$0xff] }
  0xf8   : > { %v1141_v52 = vld [vmem:[#allocation6 + $0x480] sm:$0xff]  ;;  %v1159_v53 = vpack.c.bf16 %v1126_v51, %v1125_v50  ;;  %v1288_v50 = vld [vmem:[#allocation6 + $0x638] sm:$0xff]  ;;  %v1303_v51 = vld [vmem:[#allocation6 + $0x6b0] sm:$0xff] }
  0xf9   : > { %945 = vmatpush.bf16.msrb.mxu2 %v853_v30  ;;  %959 = vmatpush.bf16.msra.mxu3 %v860_v1  ;;  %v1153_v30 = vld [vmem:[#allocation6 + $0x4e0] sm:$0xff]  ;;  %v1151_v1 = vld [vmem:[#allocation6 + $0x4d0] sm:$0xff] }
  0xfa   : > { %1175 = vmatpush.bf16.msra.mxu0 %v1166_v54  ;;  %1188 = vmatpush.bf16.msra.mxu1 %v1174_v55  ;;  %v1173_v61 = vpack.c.bf16 %v1154_v58, %v1153_v30  ;;  %v1172_v3 = vpack.c.bf16 %v1152_v2, %v1151_v1  ;;  %v1142_v54 = vld [vmem:[#allocation6 + $0x488] sm:$0xff]  ;;  %v1055_v55 = vld [vmem:[#allocation6 + $0x340] sm:$0xff]  ;;  %v1086_v30 = vpack.c.bf16 %v1058_v47, %v1057_v43 }
  0xfb   : > { %v1167_v56 = vpack.c.bf16 %v1142_v54, %v1141_v52  ;;  %v1094_v58 = vpack.c.bf16 %v1074_v49, %v1073_v48  ;;  %v1056_v1 = vld [vmem:[#allocation6 + $0x348] sm:$0xff]  ;;  %v1071_v2 = vld [vmem:[#allocation6 + $0x3c0] sm:$0xff]  ;;  %v1327_v47 = vpack.c.bf16 %v1306_v39, %v1305_v38  ;;  %v1287_v48 = vld [vmem:[#allocation6 + $0x630] sm:$0xff] }
  0xfc   : > { %v1304_v52 = vld [vmem:[#allocation6 + $0x6b8] sm:$0xff]  ;;  %v1298_v38 = vld [vmem:[#allocation6 + $0x688] sm:$0xff]  ;;  %v1211_v39 = vld [vmem:[#allocation6 + $0x540] sm:$0xff] }
  0xfd   : > { %946 = vmatpush.bf16.msrb.mxu2 %v852_v0  ;;  %960 = vmatpush.bf16.msra.mxu3 %v859_v9  ;;  %v1164_v0 = vpack.c.bf16 %v1136_v63, %v1135_v62  ;;  %v1171_v9 = vpack.c.bf16 %v1150_v7, %v1149_v6  ;;  %v1296_v62 = vld [vmem:[#allocation6 + $0x678] sm:$0xff]  ;;  %v1311_v63 = vld [vmem:[#allocation6 + $0x6f0] sm:$0xff] }
  0xfe   : > { %1176 = vmatpush.bf16.msra.mxu0 %v1165_v59  ;;  %1189 = vmatpush.bf16.msra.mxu1 %v1173_v61  ;;  %v1322_v6 = vpack.c.bf16 %v1296_v62, %v1295_v57  ;;  %v1063_v57 = vld [vmem:[#allocation6 + $0x380] sm:$0xff] }
 0x101   : > { %947 = vmatpush.bf16.msrb.mxu2 %v851_v5  ;;  %961 = vmatpush.bf16.msra.mxu3 %v858_v18  ;;  %v1134_v5 = vld [vmem:[#allocation6 + $0x448] sm:$0xff]  ;;  %v1062_v18 = vld [vmem:[#allocation6 + $0x378] sm:$0xff] }
 0x102   : > { %1177 = vmatpush.bf16.msra.mxu0 %v1164_v0  ;;  %1190 = vmatpush.bf16.msra.mxu1 %v1172_v3  ;;  %v1163_v8 = vpack.c.bf16 %v1134_v5, %v1133_v4  ;;  %v1312_v0 = vld [vmem:[#allocation6 + $0x6f8] sm:$0xff]  ;;  %v1072_v3 = vld [vmem:[#allocation6 + $0x3c8] sm:$0xff] }
 0x103   : > { %v1330_v7 = vpack.c.bf16 %v1312_v0, %v1311_v63  ;;  %v1318_v63 = vpack.c.bf16 %v1288_v50, %v1287_v48  ;;  %v1326_v0 = vpack.c.bf16 %v1304_v52, %v1303_v51 }
 0x105   : > { %962 = vmatpush.bf16.msra.mxu3 %v857_v33  ;;  %v1060_v33 = vld [vmem:[#allocation6 + $0x368] sm:$0xff] }
 0x106   : > { %1178 = vmatpush.bf16.msra.mxu0 %v1163_v8  ;;  %1191 = vmatpush.bf16.msra.mxu1 %v1171_v9  ;;  %v1087_v45 = vpack.c.bf16 %v1060_v33, %v1059_v25  ;;  %v1293_v8 = vld [vmem:[#allocation6 + $0x660] sm:$0xff]  ;;  %v1294_v9 = vld [vmem:[#allocation6 + $0x668] sm:$0xff]  ;;  %v1308_v25 = vld [vmem:[#allocation6 + $0x6d8] sm:$0xff] }
 0x107   : > { %3213 = vmatmul.msk.bf16.gmra.mxu0 %vm726_vm3, %v4141_v60  ;;  %v850_v60 = vpack.c.bf16 %v818_v15, %v817_v13  ;;  %v1132_v13 = vld [vmem:[#allocation6 + $0x438] sm:$0xff]  ;;  %v1321_v19 = vpack.c.bf16 %v1294_v9, %v1293_v8  ;;  %v1067_v33 = vld [vmem:[#allocation6 + $0x3a0] sm:$0xff] }
 0x108   : > { %v1148_v15 = vld [vmem:[#allocation6 + $0x4b8] sm:$0xff]  ;;  %v1162_v16 = vpack.c.bf16 %v1132_v13, %v1131_v12  ;;  %v1309_v12 = vld [vmem:[#allocation6 + $0x6e0] sm:$0xff]  ;;  %v1310_v13 = vld [vmem:[#allocation6 + $0x6e8] sm:$0xff] }
 0x109   : > { %948 = vmatpush.bf16.msrb.mxu2 %v850_v60  ;;  %v1170_v17 = vpack.c.bf16 %v1148_v15, %v1147_v14  ;;  %v1061_v60 = vld [vmem:[#allocation6 + $0x370] sm:$0xff]  ;;  %v1085_v14 = vpack.c.bf16 %v1056_v1, %v1055_v55  ;;  %v1093_v15 = vpack.c.bf16 %v1072_v3, %v1071_v2  ;;  %v1329_v20 = vpack.c.bf16 %v1310_v13, %v1309_v12  ;;  %v1047_v55 = vld [vmem:[#allocation6 + $0x300] sm:$0xff]  ;;  %v1234_v2 = vld [vmem:[#allocation6 + $0x5f8] sm:$0xff] }
 0x10a   : > { %1179 = vmatpush.bf16.msra.mxu0 %v1162_v16  ;;  %v1088_v31 = vpack.c.bf16 %v1062_v18, %v1061_v60  ;;  %v1053_v16 = vld [vmem:[#allocation6 + $0x330] sm:$0xff]  ;;  %v1070_v18 = vld [vmem:[#allocation6 + $0x3b8] sm:$0xff]  ;;  %v1285_v3 = vld [vmem:[#allocation6 + $0x620] sm:$0xff] }
 0x10b   : > { %1192 = vmatpush.bf16.msra.mxu1 %v1170_v17  ;;  %v1054_v17 = vld [vmem:[#allocation6 + $0x338] sm:$0xff]  ;;  %v1069_v60 = vld [vmem:[#allocation6 + $0x3b0] sm:$0xff] }
 0x10c   : > { %v1233_v1 = vld [vmem:[#allocation6 + $0x5f0] sm:$0xff] }
 0x10d   : > { %949 = vmatpush.bf16.msrb.mxu2 %v849_v28  ;;  %v1252_v13 = vpack.c.bf16 %v1234_v2, %v1233_v1 }
 0x10e   : > { %1180 = vmatpush.bf16.msra.mxu0 %v1161_v26  ;;  %v1084_v26 = vpack.c.bf16 %v1054_v17, %v1053_v16  ;;  %v1231_v17 = vld [vmem:[#allocation6 + $0x5e0] sm:$0xff] }
 0x10f   : > { %1193 = vmatpush.bf16.msra.mxu1 %v1169_v27  ;;  %v1092_v27 = vpack.c.bf16 %v1070_v18, %v1069_v60  ;;  %v1232_v60 = vld [vmem:[#allocation6 + $0x5e8] sm:$0xff] }
 0x112   : > { %1181 = vmatpush.bf16.msra.mxu0 %v1160_v41  ;;  %v1091_v41 = vpack.c.bf16 %v1068_v34, %v1067_v33  ;;  %v1229_v33 = vld [vmem:[#allocation6 + $0x5d0] sm:$0xff]  ;;  %v1230_v34 = vld [vmem:[#allocation6 + $0x5d8] sm:$0xff] }
 0x113   : > { %1194 = vmatpush.bf16.msra.mxu1 %v1168_v44  ;;  %v1065_v44 = vld [vmem:[#allocation6 + $0x390] sm:$0xff] }
 0x116   : > { %1182 = vmatpush.bf16.msra.mxu0 %v1159_v53 }
 0x117   : > { %1195 = vmatpush.bf16.msra.mxu1 %v1167_v56  ;;  %v1048_v56 = vld [vmem:[#allocation6 + $0x308] sm:$0xff] }
 0x144   : > { %v4150_v10 = vpop.f32.mrf.mxu0  ;;  %v4152_v11 = vpop.f32.mrf.mxu1 }
 0x145   : > { %v848_v22 = vpack.c.bf16 %v4152_v11, %v4152_v11  ;;  %v1328_v11 = vpack.c.bf16 %v1308_v25, %v1307_v24  ;;  %v1299_v24 = vld [vmem:[#allocation6 + $0x690] sm:$0xff]  ;;  %v1300_v25 = vld [vmem:[#allocation6 + $0x698] sm:$0xff] }
 0x14b   : > { %v801_v43 = vpop.f32.mrf.mxu3 }
 0x14c   : > { %v760_v28 = vpop.f32.mrf.mxu0  ;;  %v793_v29 = vpop.f32.mrf.mxu1  ;;  %v1158_v49 = vpack.c.bf16 %v801_v43, %v801_v43  ;;  %v1452_v43 = vld [vmem:[#allocation6 + $0x878] sm:$0xff] }
 0x14d   : > { %v899_v36 = vpack.c.bf16 %v793_v29, %v793_v29  ;;  %v898_v37 = vpack.c.bf16 %v760_v28, %v760_v28  ;;  %v1051_v28 = vld [vmem:[#allocation6 + $0x320] sm:$0xff] }
 0x14f   : > { %924 = vmatmul.bf16.vlgmr.msra.gmra.mxu2 %v898_v37  ;;  %937 = vmatmul.bf16.vlgmr.msrb.gmra.mxu3 %v899_v36  ;;  %v1289_v36 = vld [vmem:[#allocation6 + $0x640] sm:$0xff]  ;;  %v1290_v37 = vld [vmem:[#allocation6 + $0x648] sm:$0xff] }
 0x150   : > { %1097 = vmatpush.bf16.msra.mxu2 %v1088_v31  ;;  %1110 = vmatpush.bf16.msrb.mxu3 %v1096_v32  ;;  %v847_v31 = vpack.c.bf16 %v4150_v10, %v4150_v10  ;;  %v1052_v32 = vld [vmem:[#allocation6 + $0x328] sm:$0xff]  ;;  %v1050_v10 = vld [vmem:[#allocation6 + $0x318] sm:$0xff] }
 0x151   : > { %v1083_v40 = vpack.c.bf16 %v1052_v32, %v1051_v28  ;;  %v1082_v53 = vpack.c.bf16 %v1050_v10, %v1049_v42  ;;  %v1251_v28 = vpack.c.bf16 %v1232_v60, %v1231_v17  ;;  %v1214_v32 = vld [vmem:[#allocation6 + $0x558] sm:$0xff]  ;;  %v1250_v42 = vpack.c.bf16 %v1230_v34, %v1229_v33  ;;  %v1467_v10 = vld [vmem:[#allocation6 + $0x8f0] sm:$0xff] }
 0x152   : > { %v1443_v33 = vld [vmem:[#allocation6 + $0x830] sm:$0xff]  ;;  %v1444_v34 = vld [vmem:[#allocation6 + $0x838] sm:$0xff] }
 0x153   : > { %v4160_v16 = vpop.f32.mrf.mxu3 }
 0x154   : > { %1098 = vmatpush.bf16.msra.mxu2 %v1087_v45  ;;  %1111 = vmatpush.bf16.msrb.mxu3 %v1095_v46  ;;  %v763_v59 = vpop.f32.mrf.mxu0  ;;  %v796_v61 = vpop.f32.mrf.mxu1  ;;  %v1066_v45 = vld [vmem:[#allocation6 + $0x398] sm:$0xff]  ;;  %v1319_v46 = vpack.c.bf16 %v1290_v37, %v1289_v36  ;;  %v1282_v36 = vld [vmem:[#allocation6 + $0x608] sm:$0xff]  ;;  %v1297_v37 = vld [vmem:[#allocation6 + $0x680] sm:$0xff] }
 0x155   : > { %v1001_v4 = vpack.c.bf16 %v763_v59, %v763_v59  ;;  %v1002_v5 = vpack.c.bf16 %v796_v61, %v796_v61  ;;  %v1090_v54 = vpack.c.bf16 %v1066_v45, %v1065_v44  ;;  %v1217_v59 = vld [vmem:[#allocation6 + $0x570] sm:$0xff]  ;;  %v1218_v61 = vld [vmem:[#allocation6 + $0x578] sm:$0xff]  ;;  %v1212_v45 = vld [vmem:[#allocation6 + $0x548] sm:$0xff] }
 0x156   : > { %v1244_v12 = vpack.c.bf16 %v1218_v61, %v1217_v59  ;;  %v1468_v44 = vld [vmem:[#allocation6 + $0x8f8] sm:$0xff]  ;;  %v1209_v59 = vld [vmem:[#allocation6 + $0x530] sm:$0xff] }
 0x157   : > { %1027 = vmatmul.bf16.vlgmr.msrb.gmra.mxu0 %v1001_v4  ;;  %1040 = vmatmul.bf16.vlgmr.msrb.gmra.mxu1 %v1002_v5  ;;  %v1286_v4 = vld [vmem:[#allocation6 + $0x628] sm:$0xff]  ;;  %v1301_v5 = vld [vmem:[#allocation6 + $0x6a0] sm:$0xff]  ;;  %v1486_v52 = vpack.c.bf16 %v1468_v44, %v1467_v10  ;;  %v1210_v61 = vld [vmem:[#allocation6 + $0x538] sm:$0xff] }
 0x158   : > { %1099 = vmatpush.bf16.msra.mxu2 %v1086_v30  ;;  %1112 = vmatpush.bf16.msrb.mxu3 %v1094_v58  ;;  %v1064_v58 = vld [vmem:[#allocation6 + $0x388] sm:$0xff]  ;;  %v1317_v18 = vpack.c.bf16 %v1286_v4, %v1285_v3  ;;  %v1447_v4 = vld [vmem:[#allocation6 + $0x850] sm:$0xff] }
 0x159   : > { %1331 = vmatpush.bf16.msrb.mxu0 %v1322_v6  ;;  %1344 = vmatpush.bf16.msrb.mxu1 %v1330_v7  ;;  %v1302_v6 = vld [vmem:[#allocation6 + $0x6a8] sm:$0xff]  ;;  %v1081_v7 = vpack.c.bf16 %v1048_v56, %v1047_v55  ;;  %v1089_v8 = vpack.c.bf16 %v1064_v58, %v1063_v57  ;;  %v1465_v56 = vld [vmem:[#allocation6 + $0x8e0] sm:$0xff]  ;;  %v1389_v44 = vld [vmem:[#allocation6 + $0x7f0] sm:$0xff] }
 0x15a   : > { %v1450_v55 = vld [vmem:[#allocation6 + $0x868] sm:$0xff] }
 0x15b   : > { %v806_v50 = vpop.f32.mrf.mxu3  ;;  %v1466_v57 = vld [vmem:[#allocation6 + $0x8e8] sm:$0xff] }
 0x15c   : > { %1100 = vmatpush.bf16.msra.mxu2 %v1085_v14  ;;  %1113 = vmatpush.bf16.msrb.mxu3 %v1093_v15  ;;  %v4156_v29 = vpop.f32.mrf.mxu0  ;;  %v798_v9 = vpop.f32.mrf.mxu1  ;;  %v1215_v14 = vld [vmem:[#allocation6 + $0x560] sm:$0xff]  ;;  %v1216_v15 = vld [vmem:[#allocation6 + $0x568] sm:$0xff]  ;;  %v1314_v1 = vpack.c.bf16 %v806_v50, %v806_v50  ;;  %v1485_v3 = vpack.c.bf16 %v1466_v57, %v1465_v56 }
 0x15d   : > { %1332 = vmatpush.bf16.msrb.mxu0 %v1321_v19  ;;  %1345 = vmatpush.bf16.msrb.mxu1 %v1329_v20  ;;  %v1325_v19 = vpack.c.bf16 %v1302_v6, %v1301_v5  ;;  %v1283_v20 = vld [vmem:[#allocation6 + $0x610] sm:$0xff]  ;;  %v1079_v21 = vpack.c.bf16 %v4156_v29, %v4156_v29  ;;  %v1324_v29 = vpack.c.bf16 %v1300_v25, %v1299_v24  ;;  %v1448_v5 = vld [vmem:[#allocation6 + $0x858] sm:$0xff]  ;;  %v1457_v50 = vld [vmem:[#allocation6 + $0x8a0] sm:$0xff] }
 0x15e   : > { %v1463_v6 = vld [vmem:[#allocation6 + $0x8d0] sm:$0xff]  ;;  %v1476_v17 = vpack.c.bf16 %v1448_v5, %v1447_v4  ;;  %v1206_v25 = vld [vmem:[#allocation6 + $0x518] sm:$0xff]  ;;  %v1371_v56 = vld [vmem:[#allocation6 + $0x760] sm:$0xff] }
 0x15f   : > { %950 = vmatmul.bf16.vlgmr.msrb.gmra.mxu2 %v847_v31  ;;  %963 = vmatmul.bf16.vlgmr.msra.gmra.mxu3 %v848_v22  ;;  %v1080_v22 = vpack.c.bf16 %v798_v9, %v798_v9  ;;  %v1213_v31 = vld [vmem:[#allocation6 + $0x550] sm:$0xff]  ;;  %v1372_v57 = vld [vmem:[#allocation6 + $0x768] sm:$0xff] }
 0x160   : > { %1101 = vmatpush.bf16.msra.mxu2 %v1084_v26  ;;  %1114 = vmatpush.bf16.msrb.mxu3 %v1092_v27  ;;  %v1243_v27 = vpack.c.bf16 %v1216_v15, %v1215_v14  ;;  %v1223_v14 = vld [vmem:[#allocation6 + $0x5a0] sm:$0xff]  ;;  %v1224_v15 = vld [vmem:[#allocation6 + $0x5a8] sm:$0xff]  ;;  %v1205_v24 = vld [vmem:[#allocation6 + $0x510] sm:$0xff]  ;;  %v1399_v5 = vpack.c.bf16 %v1372_v57, %v1371_v56 }
 0x161   : > { %1333 = vmatpush.bf16.msrb.mxu0 %v1320_v35  ;;  %1346 = vmatpush.bf16.msrb.mxu1 %v1328_v11  ;;  %v1316_v35 = vpack.c.bf16 %v1284_v23, %v1283_v20  ;;  %v1281_v11 = vld [vmem:[#allocation6 + $0x600] sm:$0xff]  ;;  %v1247_v23 = vpack.c.bf16 %v1224_v15, %v1223_v14  ;;  %v1438_v15 = vld [vmem:[#allocation6 + $0x808] sm:$0xff] }
 0x162   : > { %v1315_v48 = vpack.c.bf16 %v1282_v36, %v1281_v11  ;;  %v1461_v20 = vld [vmem:[#allocation6 + $0x8c0] sm:$0xff]  ;;  %v1238_v11 = vpack.c.bf16 %v1206_v25, %v1205_v24  ;;  %v1360_v57 = vld [vmem:[#allocation6 + $0x708] sm:$0xff] }
 0x163   : > { %v4168_v10 = vpop.f32.mrf.mxu3  ;;  %v1359_v56 = vld [vmem:[#allocation6 + $0x700] sm:$0xff] }
 0x164   : > { %1102 = vmatpush.bf16.msra.mxu2 %v1083_v40  ;;  %1115 = vmatpush.bf16.msrb.mxu3 %v1091_v41  ;;  %v768_v30 = vpop.f32.mrf.mxu0  ;;  %v1451_v40 = vld [vmem:[#allocation6 + $0x870] sm:$0xff]  ;;  %v1242_v41 = vpack.c.bf16 %v1214_v32, %v1213_v31 }
 0x165   : > { %v1157_v62 = vpack.c.bf16 %v768_v30, %v768_v30  ;;  %1334 = vmatpush.bf16.msrb.mxu0 %v1319_v46  ;;  %1347 = vmatpush.bf16.msrb.mxu1 %v1327_v47  ;;  %v1227_v46 = vld [vmem:[#allocation6 + $0x5c0] sm:$0xff]  ;;  %v1228_v47 = vld [vmem:[#allocation6 + $0x5c8] sm:$0xff]  ;;  %v1478_v51 = vpack.c.bf16 %v1452_v43, %v1451_v40  ;;  %v1241_v30 = vpack.c.bf16 %v1212_v45, %v1211_v39  ;;  %v1374_v43 = vld [vmem:[#allocation6 + $0x778] sm:$0xff] }
 0x166   : > { %v1249_v58 = vpack.c.bf16 %v1228_v47, %v1227_v46  ;;  %v1219_v39 = vld [vmem:[#allocation6 + $0x580] sm:$0xff]  ;;  %v1390_v45 = vld [vmem:[#allocation6 + $0x7f8] sm:$0xff]  ;;  %v1474_v46 = vpack.c.bf16 %v1444_v34, %v1443_v33 }
 0x167   : > { %1183 = vmatmul.bf16.vlgmr.msra.gmra.mxu0 %v1157_v62  ;;  %1196 = vmatmul.bf16.vlgmr.msra.gmra.mxu1 %v1158_v49  ;;  %v1323_v49 = vpack.c.bf16 %v1298_v38, %v1297_v37  ;;  %v1225_v62 = vld [vmem:[#allocation6 + $0x5b0] sm:$0xff]  ;;  %v1203_v37 = vld [vmem:[#allocation6 + $0x500] sm:$0xff]  ;;  %v1204_v38 = vld [vmem:[#allocation6 + $0x508] sm:$0xff] }
 0x168   : > { %1103 = vmatpush.bf16.msra.mxu2 %v1082_v53  ;;  %1116 = vmatpush.bf16.msrb.mxu3 %v1090_v54  ;;  %v1449_v53 = vld [vmem:[#allocation6 + $0x860] sm:$0xff]  ;;  %v1366_v34 = vld [vmem:[#allocation6 + $0x738] sm:$0xff] }
 0x169   : > { %1335 = vmatpush.bf16.msrb.mxu0 %v1318_v63  ;;  %1348 = vmatpush.bf16.msrb.mxu1 %v1326_v0  ;;  %v1226_v63 = vld [vmem:[#allocation6 + $0x5b8] sm:$0xff]  ;;  %v1477_v2 = vpack.c.bf16 %v1450_v55, %v1449_v53  ;;  %v1408_v55 = vpack.c.bf16 %v1390_v45, %v1389_v44  ;;  %v1530_v44 = vld [vmem:[#allocation2] sm:$0xff] }
 0x16a   : > { %v1248_v9 = vpack.c.bf16 %v1226_v63, %v1225_v62  ;;  %v1439_v62 = vld [vmem:[#allocation6 + $0x810] sm:$0xff] }
 0x16c   : > { %1104 = vmatpush.bf16.msra.mxu2 %v1081_v7  ;;  %1117 = vmatpush.bf16.msrb.mxu3 %v1089_v8  ;;  %v4164_v26 = vpop.f32.mrf.mxu0  ;;  %v1464_v7 = vld [vmem:[#allocation6 + $0x8d8] sm:$0xff]  ;;  %v1240_v8 = vpack.c.bf16 %v1210_v61, %v1209_v59 }
 0x16d   : > { %1336 = vmatpush.bf16.msrb.mxu0 %v1317_v18  ;;  %1349 = vmatpush.bf16.msrb.mxu1 %v1325_v19  ;;  %v1484_v60 = vpack.c.bf16 %v1464_v7, %v1463_v6  ;;  %v1445_v18 = vld [vmem:[#allocation6 + $0x840] sm:$0xff]  ;;  %v1446_v19 = vld [vmem:[#allocation6 + $0x848] sm:$0xff]  ;;  %v1235_v63 = vpack.c.bf16 %v4164_v26, %v4164_v26  ;;  %v1369_v7 = vld [vmem:[#allocation6 + $0x750] sm:$0xff] }
 0x16e   : > { %v1475_v31 = vpack.c.bf16 %v1446_v19, %v1445_v18 }
 0x16f   : > { %1105 = vmatmul.bf16.vlgmr.msra.gmra.mxu2 %v1079_v21  ;;  %1118 = vmatmul.bf16.vlgmr.msrb.gmra.mxu3 %v1080_v22  ;;  %v1462_v21 = vld [vmem:[#allocation6 + $0x8c8] sm:$0xff] }
 0x170   : > { %1253 = vmatpush.bf16.msrb.mxu2 %v1244_v12  ;;  %1266 = vmatpush.bf16.msra.mxu3 %v1252_v13  ;;  %v1207_v12 = vld [vmem:[#allocation6 + $0x520] sm:$0xff]  ;;  %v1208_v13 = vld [vmem:[#allocation6 + $0x528] sm:$0xff]  ;;  %v1483_v32 = vpack.c.bf16 %v1462_v21, %v1461_v20 }
 0x171   : > { %1337 = vmatpush.bf16.msrb.mxu0 %v1316_v35  ;;  %1350 = vmatpush.bf16.msrb.mxu1 %v1324_v29  ;;  %v1239_v22 = vpack.c.bf16 %v1208_v13, %v1207_v12  ;;  %v1459_v35 = vld [vmem:[#allocation6 + $0x8b0] sm:$0xff]  ;;  %v1460_v29 = vld [vmem:[#allocation6 + $0x8b8] sm:$0xff]  ;;  %v1367_v20 = vld [vmem:[#allocation6 + $0x740] sm:$0xff] }
 0x172   : > { %v1482_v47 = vpack.c.bf16 %v1460_v29, %v1459_v35  ;;  %v1385_v12 = vld [vmem:[#allocation6 + $0x7d0] sm:$0xff]  ;;  %v1386_v13 = vld [vmem:[#allocation6 + $0x7d8] sm:$0xff]  ;;  %v1368_v21 = vld [vmem:[#allocation6 + $0x748] sm:$0xff] }
 0x173   : > { %v1406_v19 = vpack.c.bf16 %v1386_v13, %v1385_v12  ;;  %v1381_v35 = vld [vmem:[#allocation6 + $0x7b0] sm:$0xff]  ;;  %v1382_v29 = vld [vmem:[#allocation6 + $0x7b8] sm:$0xff] }
 0x174   : > { %1254 = vmatpush.bf16.msrb.mxu2 %v1243_v27  ;;  %1267 = vmatpush.bf16.msra.mxu3 %v1251_v28  ;;  %v773_v54 = vpop.f32.mrf.mxu0  ;;  %v1221_v27 = vld [vmem:[#allocation6 + $0x590] sm:$0xff]  ;;  %v1222_v28 = vld [vmem:[#allocation6 + $0x598] sm:$0xff] }
 0x175   : > { %v1313_v0 = vpack.c.bf16 %v773_v54, %v773_v54  ;;  %1338 = vmatpush.bf16.msrb.mxu0 %v1315_v48  ;;  %1351 = vmatpush.bf16.msrb.mxu1 %v1323_v49  ;;  %v1246_v36 = vpack.c.bf16 %v1222_v28, %v1221_v27  ;;  %v1441_v48 = vld [vmem:[#allocation6 + $0x820] sm:$0xff]  ;;  %v1442_v49 = vld [vmem:[#allocation6 + $0x828] sm:$0xff]  ;;  %v1397_v28 = vpack.c.bf16 %v1368_v21, %v1367_v20 }
 0x176   : > { %v1473_v59 = vpack.c.bf16 %v1442_v49, %v1441_v48  ;;  %v1362_v48 = vld [vmem:[#allocation6 + $0x718] sm:$0xff]  ;;  %v1377_v49 = vld [vmem:[#allocation6 + $0x790] sm:$0xff] }
 0x178   : > { %1255 = vmatpush.bf16.msrb.mxu2 %v1242_v41  ;;  %1268 = vmatpush.bf16.msra.mxu3 %v1250_v42  ;;  %v1220_v41 = vld [vmem:[#allocation6 + $0x588] sm:$0xff]  ;;  %v1373_v42 = vld [vmem:[#allocation6 + $0x770] sm:$0xff] }
 0x179   : > { %1487 = vmatpush.bf16.msra.mxu0 %v1478_v51  ;;  %1500 = vmatpush.bf16.msra.mxu1 %v1486_v52  ;;  %v1458_v51 = vld [vmem:[#allocation6 + $0x8a8] sm:$0xff]  ;;  %v1237_v52 = vpack.c.bf16 %v1204_v38, %v1203_v37  ;;  %v1245_v53 = vpack.c.bf16 %v1220_v41, %v1219_v39  ;;  %v1400_v54 = vpack.c.bf16 %v1374_v43, %v1373_v42  ;;  %v1363_v39 = vld [vmem:[#allocation6 + $0x720] sm:$0xff] }
 0x17a   : > { %1339 = vmatmul.bf16.vlgmr.msrb.gmra.mxu0 %v1313_v0  ;;  %1352 = vmatmul.bf16.vlgmr.msrb.gmra.mxu1 %v1314_v1  ;;  %v1481_v61 = vpack.c.bf16 %v1458_v51, %v1457_v50  ;;  %v1236_v0 = vpack.c.bf16 %v4160_v16, %v4160_v16  ;;  %v1440_v1 = vld [vmem:[#allocation6 + $0x818] sm:$0xff]  ;;  %v1437_v16 = vld [vmem:[#allocation6 + $0x800] sm:$0xff]  ;;  %v1404_v38 = vpack.c.bf16 %v1382_v29, %v1381_v35  ;;  %v1364_v41 = vld [vmem:[#allocation6 + $0x728] sm:$0xff]  ;;  %v3883_v51 = vmov 4  }
 0x17b   : > { %v1472_v26 = vpack.c.bf16 %v1440_v1, %v1439_v62  ;;  %v1471_v24 = vpack.c.bf16 %v1438_v15, %v1437_v16  ;;  %v1379_v42 = vld [vmem:[#allocation6 + $0x7a0] sm:$0xff]  ;;  %v1380_v43 = vld [vmem:[#allocation6 + $0x7a8] sm:$0xff]  ;;  %v1395_v45 = vpack.c.bf16 %v1364_v41, %v1363_v39  ;;  %v1378_v50 = vld [vmem:[#allocation6 + $0x798] sm:$0xff]  ;;  %3446 = vset.pattern.permute.xlu1 %v3883_v51 }
 0x17c   : > { %1256 = vmatpush.bf16.msrb.mxu2 %v1241_v30  ;;  %1269 = vmatpush.bf16.msra.mxu3 %v1249_v58  ;;  %v4166_v40 = vpop.f32.mrf.mxu0  ;;  %v1387_v30 = vld [vmem:[#allocation6 + $0x7e0] sm:$0xff]  ;;  %v1388_v58 = vld [vmem:[#allocation6 + $0x7e8] sm:$0xff]  ;;  %v1531_v62 = vld [vmem:[#allocation2 + $0x8] sm:$0xff] }
 0x17d   : > { %1488 = vmatpush.bf16.msra.mxu0 %v1477_v2  ;;  %1501 = vmatpush.bf16.msra.mxu1 %v1485_v3  ;;  %v1455_v2 = vld [vmem:[#allocation6 + $0x890] sm:$0xff]  ;;  %v1456_v3 = vld [vmem:[#allocation6 + $0x898] sm:$0xff]  ;;  %v1407_v6 = vpack.c.bf16 %v1388_v58, %v1387_v30  ;;  %v1375_v30 = vld [vmem:[#allocation6 + $0x780] sm:$0xff] }
 0x17e   : > { %v1480_v14 = vpack.c.bf16 %v1456_v3, %v1455_v2  ;;  %1534 = vperm.xlu1 %3446, %v1530_v44   ;;  %v1376_v58 = vld [vmem:[#allocation6 + $0x788] sm:$0xff]  ;;  %v1392_v2 = vpack.c.bf16 %v4168_v10, %v4168_v10  ;;  %v1391_v3 = vpack.c.bf16 %v4166_v40, %v4166_v40  ;;  %v1561_v44 = vld [vmem:[#allocation9 + $0x8] sm:$0xff] }
 0x180   : > { %1257 = vmatpush.bf16.msrb.mxu2 %v1240_v8  ;;  %1270 = vmatpush.bf16.msra.mxu3 %v1248_v9  ;;  %v1370_v8 = vld [vmem:[#allocation6 + $0x758] sm:$0xff]  ;;  %v811_v9 = vpop.f32.mrf.mxu3 }
 0x181   : > { %1489 = vmatpush.bf16.msra.mxu0 %v1476_v17  ;;  %1502 = vmatpush.bf16.msra.mxu1 %v1484_v60  ;;  %v1453_v17 = vld [vmem:[#allocation6 + $0x880] sm:$0xff]  ;;  %v1454_v60 = vld [vmem:[#allocation6 + $0x888] sm:$0xff]  ;;  %v1398_v18 = vpack.c.bf16 %v1370_v8, %v1369_v7 }
 0x182   : > { %v1479_v25 = vpack.c.bf16 %v1454_v60, %v1453_v17 }
 0x184   : > { %1258 = vmatpush.bf16.msrb.mxu2 %v1239_v22  ;;  %1271 = vmatpush.bf16.msra.mxu3 %v1247_v23  ;;  %v778_v4 = vpop.f32.mrf.mxu0  ;;  %v1383_v22 = vld [vmem:[#allocation6 + $0x7c0] sm:$0xff]  ;;  %v1384_v23 = vld [vmem:[#allocation6 + $0x7c8] sm:$0xff] }
 0x185   : > { %1490 = vmatpush.bf16.msra.mxu0 %v1475_v31  ;;  %1503 = vmatpush.bf16.msra.mxu1 %v1483_v32  ;;  %v1405_v31 = vpack.c.bf16 %v1384_v23, %v1383_v22  ;;  %v1365_v32 = vld [vmem:[#allocation6 + $0x730] sm:$0xff] }
 0x186   : > { %v1396_v37 = vpack.c.bf16 %v1366_v34, %v1365_v32  ;;  %1539 = vperm.xlu1 %3446, %v1531_v62  }
 0x188   : > { %1259 = vmatpush.bf16.msrb.mxu2 %v1238_v11  ;;  %1272 = vmatpush.bf16.msra.mxu3 %v1246_v36  ;;  %v813_v33 = vpop.f32.mrf.mxu3  ;;  %v1469_v11 = vpack.c.bf16 %v778_v4, %v778_v4  ;;  %v1470_v36 = vpack.c.bf16 %v811_v9, %v811_v9  ;;  %v1524_v4 = vld [vmem:[#allocation7] sm:$0xff] }
 0x189   : > { %1491 = vmatpush.bf16.msra.mxu0 %v1474_v46  ;;  %1504 = vmatpush.bf16.msra.mxu1 %v1482_v47  ;;  %v1403_v46 = vpack.c.bf16 %v1380_v43, %v1379_v42  ;;  %v1361_v47 = vld [vmem:[#allocation6 + $0x710] sm:$0xff] }
 0x18a   : > { %v1560_v43 = vld [vmem:[#allocation9] sm:$0xff] }
 0x18c   : > { %1260 = vmatpush.bf16.msrb.mxu2 %v1237_v52  ;;  %1273 = vmatpush.bf16.msra.mxu3 %v1245_v53  ;;  %v780_v27 = vpop.f32.mrf.mxu0  ;;  %v3884_v52 = vmov 2   ;;  %v4174_v53 = vld [vmem:[#allocation2] sm:$0xff] }
 0x18d   : > { %1492 = vmatpush.bf16.msra.mxu0 %v1473_v59  ;;  %1505 = vmatpush.bf16.msra.mxu1 %v1481_v61  ;;  %v1526_v59 = vld [vmem:[%s681_s25] sm:$0xff]  ;;  %v1527_v61 = vld [vmem:[%s681_s25 + $0x8] sm:$0xff] }
 0x18e   : > { %3447 = vset.pattern.permute.xlu2 %v3884_v52  ;;  %v1529_v1 = vpack.c.bf16 %v1527_v61, %v1526_v59 }
 0x18f   : > { %1261 = vmatmul.bf16.vlgmr.msrb.gmra.mxu2 %v1235_v63  ;;  %1274 = vmatmul.bf16.vlgmr.msra.gmra.mxu3 %v1236_v0  ;;  %v1393_v63 = vpack.c.bf16 %v1360_v57, %v1359_v56  ;;  %v1401_v0 = vpack.c.bf16 %v1376_v58, %v1375_v30  ;;  %v3886_v57 = vmov 5   ;;  %v3887_v30 = vmov 6  }
 0x190   : > { %1409 = vmatpush.bf16.msra.mxu2 %v1400_v54  ;;  %1422 = vmatpush.bf16.msrb.mxu3 %v1408_v55  ;;  %v1394_v54 = vpack.c.bf16 %v1362_v48, %v1361_v47  ;;  %v1402_v55 = vpack.c.bf16 %v1378_v50, %v1377_v49  ;;  %v1563_v47 = vpack.c.bf16 %v1561_v44, %v1560_v43  ;;  %v1628_v44 = vld [vmem:[#allocation12 + $0x10] sm:$0xff] }
 0x191   : > { %1493 = vmatpush.bf16.msra.mxu0 %v1472_v26  ;;  %1506 = vmatpush.bf16.msra.mxu1 %v1480_v14 }
 0x192   : > { %1515 = vperm.xlu2 %3447, %v4174_v53   ;;  %3449 = vset.pattern.permute.xlu1 %v3886_v57  ;;  %v1632_v57 = vld [vmem:[#allocation12 + $0x30] sm:$0xff] }
 0x193   : > { %1614 = vperm.xlu1 %3449, %v4174_v53  }
 0x194   : > { %1410 = vmatpush.bf16.msra.mxu2 %v1399_v5  ;;  %1423 = vmatpush.bf16.msrb.mxu3 %v1407_v6  ;;  %v1525_v5 = vld [vmem:[#allocation7 + $0x8] sm:$0xff]  ;;  %v3885_v6 = vmov 3  }
 0x195   : > { %1494 = vmatpush.bf16.msra.mxu0 %v1471_v24  ;;  %1507 = vmatpush.bf16.msra.mxu1 %v1479_v25  ;;  %v1528_v7 = vpack.c.bf16 %v1525_v5, %v1524_v4 }
 0x198   : > { %1411 = vmatpush.bf16.msra.mxu2 %v1398_v18  ;;  %1424 = vmatpush.bf16.msrb.mxu3 %v1406_v19 }
 0x199   : > { %1495 = vmatmul.bf16.vlgmr.msra.gmra.mxu0 %v1469_v11  ;;  %1508 = vmatmul.bf16.vlgmr.msra.gmra.mxu1 %v1470_v36 }
 0x19a   : > { %3448 = vset.pattern.permute.xlu2 %v3885_v6 }
 0x19b   : > { %1520 = vperm.xlu2 %3448, %v4174_v53  }
 0x19c   : > { %1412 = vmatpush.bf16.msra.mxu2 %v1397_v28  ;;  %1425 = vmatpush.bf16.msrb.mxu3 %v1405_v31 }
 0x1a0   : > { %1413 = vmatpush.bf16.msra.mxu2 %v1396_v37  ;;  %1426 = vmatpush.bf16.msrb.mxu3 %v1404_v38 }
 0x1a3   : > { %3450 = vset.pattern.permute.xlu2 %v3887_v30  ;;  %v1633_v30 = vld [vmem:[#allocation12 + $0x38] sm:$0xff] }
 0x1a4   : > { %1414 = vmatpush.bf16.msra.mxu2 %v1395_v45  ;;  %1427 = vmatpush.bf16.msrb.mxu3 %v1403_v46 }
 0x1a5   : > { %1619 = vperm.xlu2 %3450, %v4174_v53  }
 0x1a8   : > { %1415 = vmatpush.bf16.msra.mxu2 %v1394_v54  ;;  %1428 = vmatpush.bf16.msrb.mxu3 %v1402_v55 }
 0x1ac   : > { %1416 = vmatpush.bf16.msra.mxu2 %v1393_v63  ;;  %1429 = vmatpush.bf16.msrb.mxu3 %v1401_v0 }
 0x1af   : > { %1417 = vmatmul.bf16.vlgmr.msra.gmra.mxu2 %v1391_v3  ;;  %1430 = vmatmul.bf16.vlgmr.msrb.gmra.mxu3 %v1392_v2 }
 0x1b0   : > { %1553 = vmatpush.bf16.msrb.mxu2 %v1529_v1  ;;  %1574 = vmatpush.bf16.msra.mxu3 %v1563_v47 }
 0x1b4   : > { %1591 = vmatpush.bf16.msra.mxu2 %v1563_v47  ;;  %v1630_v47 = vld [vmem:[#allocation12 + $0x20] sm:$0xff] }
 0x1bf   : > { %3219 = vmatmul.msk.bf16.vlgmr.msrb.gmra.mxu2 %vm1542_vm4, %v1528_v7 }
 0x1d2   : > { %v925_v8 = vpop.f32.mrf.mxu2  ;;  %v938_v10 = vpop.f32.mrf.mxu3 }
 0x1d3   : > { %v939_v9 = vadd.f32 %v938_v10, %v925_v8 }
 0x1d4   : > { %v1028_v12 = vpop.f32.mrf.mxu0  ;;  %v1041_v13 = vpop.f32.mrf.mxu1 }
 0x1d5   : > { %v1042_v26 = vadd.f32 %v1041_v13, %v1028_v12 }
 0x1da   : > { %v927_v40 = vpop.f32.mrf.mxu2  ;;  %v940_v14 = vpop.f32.mrf.mxu3 }
 0x1dc   : > { %v1030_v16 = vpop.f32.mrf.mxu0  ;;  %v1043_v15 = vpop.f32.mrf.mxu1 }
 0x1e2   : > { %v951_v17 = vpop.f32.mrf.mxu2  ;;  %v964_v60 = vpop.f32.mrf.mxu3 }
 0x1e3   : > { %v952_v18 = vadd.f32 %v951_v17, %v939_v9  ;;  %v1598_v17 = vld [vmem:[#allocation10] sm:$0xff] }
 0x1e4   : > { %v1184_v19 = vpop.f32.mrf.mxu0  ;;  %v1197_v20 = vpop.f32.mrf.mxu1 }
 0x1e5   : > { %v965_v21 = vadd.f32 %v964_v60, %v952_v18  ;;  %v1198_v22 = vadd.f32 %v1197_v20, %v1184_v19  ;;  %v1599_v60 = vld [vmem:[#allocation10 + $0x8] sm:$0xff] }
 0x1e7   : > { %v1045_v23 = vadd.f32 %v1042_v26, %v965_v21 }
 0x1ea   : > { %v953_v24 = vpop.f32.mrf.mxu2  ;;  %v966_v25 = vpop.f32.mrf.mxu3 }
 0x1ec   : > { %v1186_v27 = vpop.f32.mrf.mxu0  ;;  %v1199_v28 = vpop.f32.mrf.mxu1 }
 0x1ed   : > { %v1516_v54 = vpop.permute.xlu2 %1515 }
 0x1f0   : > { %v1535_v8 = vpop.permute.xlu1 %1534 }
 0x1f2   : > { %v1106_v31 = vpop.f32.mrf.mxu2  ;;  %v1119_v32 = vpop.f32.mrf.mxu3 }
 0x1f3   : > { %v1120_v33 = vadd.f32 %v1119_v32, %v1106_v31 }
 0x1f5   : > { %v1123_v34 = vadd.f32 %v1120_v33, %v1045_v23  ;;  %v1521_v2 = vpop.permute.xlu2 %1520 }
 0x1f7   : > { %v1201_v35 = vadd.f32 %v1198_v22, %v1123_v34  ;;  %v1340_v29 = vpop.f32.mrf.mxu0  ;;  %v1353_v11 = vpop.f32.mrf.mxu1 }
 0x1f8   : > { %v1354_v56 = vadd.f32 %v1353_v11, %v1340_v29  ;;  %v1540_v9 = vpop.permute.xlu1 %1539 }
 0x1fa   : > { %v1108_v36 = vpop.f32.mrf.mxu2  ;;  %v1121_v37 = vpop.f32.mrf.mxu3 }
 0x1ff   : > { %v1342_v38 = vpop.f32.mrf.mxu0  ;;  %v1355_v39 = vpop.f32.mrf.mxu1 }
 0x200   : > { %v1626_v38 = vld [vmem:[#allocation12] sm:$0xff]  ;;  %v1627_v39 = vld [vmem:[#allocation12 + $0x8] sm:$0xff] }
 0x201   : > { %v1635_v43 = vpack.c.bf16 %v1627_v39, %v1626_v38  ;;  %v1835_v38 = vld [vmem:[#allocation13 + $0x118] sm:$0xff] }
 0x205   : > { %v1615_v33 = vpop.permute.xlu1 %1614 }
 0x212   : > { %v1262_v41 = vpop.f32.mrf.mxu2  ;;  %v1275_v42 = vpop.f32.mrf.mxu3 }
 0x213   : > { %v1276_v52 = vadd.f32 %v1275_v42, %v1262_v41 }
 0x215   : > { %v1279_v55 = vadd.f32 %v1276_v52, %v1201_v35  ;;  %v1620_v35 = vpop.permute.xlu2 %1619  ;;  %v1694_v52 = vld [vmem:[#allocation13 + $0x10] sm:$0xff] }
 0x216   : > { %v1496_v45 = vpop.f32.mrf.mxu0  ;;  %v1509_v46 = vpop.f32.mrf.mxu1 }
 0x217   : > { %v1357_v61 = vadd.f32 %v1354_v56, %v1279_v55  ;;  %v1510_v63 = vadd.f32 %v1509_v46, %v1496_v45  ;;  %v1629_v45 = vld [vmem:[#allocation12 + $0x18] sm:$0xff]  ;;  %v1695_v55 = vld [vmem:[#allocation13 + $0x18] sm:$0xff] }
 0x218   : > { %v1636_v46 = vpack.c.bf16 %v1629_v45, %v1628_v44  ;;  %v1700_v56 = vpack.c.bf16 %v1695_v55, %v1694_v52  ;;  %v1833_v44 = vld [vmem:[#allocation13 + $0x108] sm:$0xff]  ;;  %v1860_v55 = vld [vmem:[#allocation13 + $0x130] sm:$0xff] }
 0x21a   : > { %v1264_v48 = vpop.f32.mrf.mxu2  ;;  %v1277_v49 = vpop.f32.mrf.mxu3 }
 0x21b   : > { %v1631_v48 = vld [vmem:[#allocation12 + $0x28] sm:$0xff] }
 0x21c   : > { %v1637_v49 = vpack.c.bf16 %v1631_v48, %v1630_v47  ;;  %v1831_v47 = vld [vmem:[#allocation13 + $0xf8] sm:$0xff]  ;;  %v1862_v48 = vld [vmem:[#allocation13 + $0x140] sm:$0xff] }
 0x21e   : > { %v1498_v50 = vpop.f32.mrf.mxu0  ;;  %v1511_v51 = vpop.f32.mrf.mxu1 }
 0x21f   : > { %v1696_v50 = vld [vmem:[#allocation13 + $0x20] sm:$0xff]  ;;  %v1697_v51 = vld [vmem:[#allocation13 + $0x28] sm:$0xff] }
 0x232   : > { %v1418_v58 = vpop.f32.mrf.mxu2  ;;  %v1431_v59 = vpop.f32.mrf.mxu3 }
 0x233   : > { %v1432_v62 = vadd.f32 %v1431_v59, %v1418_v58  ;;  %v1638_v58 = vpack.c.bf16 %v1633_v30, %v1632_v57  ;;  %v1634_v59 = vld [vmem:[#allocation12 + $0x40] sm:$0xff]  ;;  %v1858_v30 = vld [vmem:[#allocation13 + $0x120] sm:$0xff] }
 0x235   : > { %v1435_v0 = vadd.f32 %v1432_v62, %v1357_v61  ;;  %v1639_v61 = vpack.c.bf16 %v1634_v59, %v1634_v59  ;;  %v1707_v62 = vld [vmem:[#allocation13 + $0x50] sm:$0xff] }
 0x236   : > { %v1890_v59 = vld [vmem:[#allocation13 + $0x170] sm:$0xff] }
 0x237   : > { %v1513_v1 = vadd.f32 %v1510_v63, %v1435_v0  ;;  %v1708_v63 = vld [vmem:[#allocation13 + $0x58] sm:$0xff]  ;;  %v1692_v0 = vld [vmem:[#allocation13] sm:$0xff] }
 0x239   : > { %v1518_v3 = vmul.f32 %v1516_v54, %v1513_v1  ;;  %v1701_v54 = vpack.c.bf16 %v1697_v51, %v1696_v50  ;;  %v1712_v1 = vpack.c.bf16 %v1708_v63, %v1707_v62  ;;  %v1863_v50 = vld [vmem:[#allocation13 + $0x148] sm:$0xff] }
 0x23a   : > { %v1420_v4 = vpop.f32.mrf.mxu2  ;;  %v1433_v5 = vpop.f32.mrf.mxu3  ;;  %v1867_v52 = vpack.c.bf16 %v1863_v50, %v1862_v48 }
 0x23b   : > { %v1523_v6 = vadd.f32 %v1521_v2, %v1518_v3  ;;  %1737 = vmatpush.bf16.msrb.mxu1 %v1701_v54  ;;  %v1693_v2 = vld [vmem:[#allocation13 + $0x8] sm:$0xff]  ;;  %1721 = vmatpush.bf16.msrb.mxu0 %v1712_v1  ;;  %v1705_v4 = vld [vmem:[#allocation13 + $0x40] sm:$0xff] }
 0x23c   : > { %v1699_v3 = vpack.c.bf16 %v1693_v2, %v1692_v0  ;;  %v1706_v5 = vld [vmem:[#allocation13 + $0x48] sm:$0xff]  ;;  %v1888_v2 = vld [vmem:[#allocation13 + $0x160] sm:$0xff] }
 0x23d   : > { %v1562_v7 = vpack.c.bf16 %v1523_v6, %v1523_v6  ;;  %v1711_v6 = vpack.c.bf16 %v1706_v5, %v1705_v4  ;;  %v1886_v5 = vld [vmem:[#allocation13 + $0x150] sm:$0xff] }
 0x23f   : > { %3220 = vmatmul.msk.bf16.vlgmr.msra.gmra.mxu3 %vm1542_vm4, %v1562_v7  ;;  %1738 = vmatpush.bf16.msrb.mxu1 %v1700_v56  ;;  %v1703_v7 = vld [vmem:[#allocation13 + $0x30] sm:$0xff]  ;;  %v1861_v56 = vld [vmem:[#allocation13 + $0x138] sm:$0xff] }
 0x240   : > { %1722 = vmatpush.bf16.msrb.mxu0 %v1711_v6  ;;  %v1866_v57 = vpack.c.bf16 %v1861_v56, %v1860_v55  ;;  %v1887_v6 = vld [vmem:[#allocation13 + $0x158] sm:$0xff] }
 0x242   : > { %v1555_v10 = vpop.f32.mrf.mxu2 }
 0x243   : > { %v1556_v13 = vadd.f32 %v1555_v10, %v1535_v8  ;;  %1739 = vmatpush.bf16.msrb.mxu1 %v1699_v3  ;;  %v1704_v8 = vld [vmem:[#allocation13 + $0x38] sm:$0xff]  ;;  %v1750_v10 = vld [vmem:[#allocation13 + $0x80] sm:$0xff]  ;;  %v1889_v3 = vld [vmem:[#allocation13 + $0x168] sm:$0xff] }
 0x244   : > { %v1894_v4 = vpack.c.bf16 %v1889_v3, %v1888_v2  ;;  %v1957_v3 = vld [vmem:[#allocation15] sm:$0xff] }
 0x24a   : > { %v1557_v12 = vpop.f32.mrf.mxu2 }
 0x24b   : > { %v1558_v26 = vadd.f32 %v1557_v12, %v1540_v9  ;;  %v1710_v9 = vpack.c.bf16 %v1704_v8, %v1703_v7  ;;  %v1751_v12 = vld [vmem:[#allocation13 + $0x88] sm:$0xff]  ;;  %v1918_v7 = vld [vmem:[#allocation13 + $0x1a0] sm:$0xff]  ;;  %v1893_v8 = vpack.c.bf16 %v1887_v6, %v1886_v5 }
 0x24d   : > { %v1580_v40 = vpack.c.bf16 %v1558_v26, %v1556_v13  ;;  %v1755_v13 = vpack.c.bf16 %v1751_v12, %v1750_v10  ;;  %1723 = vmatpush.bf16.msrb.mxu0 %v1710_v9  ;;  %v1748_v26 = vld [vmem:[#allocation13 + $0x70] sm:$0xff]  ;;  %v1919_v10 = vld [vmem:[#allocation13 + $0x1a8] sm:$0xff] }
 0x24e   : > { %v1923_v9 = vpack.c.bf16 %v1919_v10, %v1918_v7  ;;  %v1960_v10 = vld [vmem:[#allocation15 + $0x18] sm:$0xff] }
 0x24f   : > { %3221 = vmatmul.msk.bf16.vlgmr.msra.gmra.mxu2 %vm1542_vm4, %v1580_v40  ;;  %v1749_v40 = vld [vmem:[#allocation13 + $0x78] sm:$0xff] }
 0x250   : > { %1764 = vmatpush.bf16.msrb.mxu2 %v1755_v13 }
 0x2c2   : > { %v1576_v14 = vpop.f32.mrf.mxu3 }
 0x2ca   : > { %v1578_v16 = vpop.f32.mrf.mxu3 }
 0x2cb   : > { %v1746_v16 = vld [vmem:[#allocation13 + $0x60] sm:$0xff] }
 0x2d2   : > { %v1593_v15 = vpop.f32.mrf.mxu2 }
 0x2d3   : > { %v1600_v18 = vmul.f32 %v1598_v17, %v1593_v15  ;;  %v1747_v15 = vld [vmem:[#allocation13 + $0x68] sm:$0xff]  ;;  %v1778_v17 = vld [vmem:[#allocation13 + $0xb0] sm:$0xff] }
 0x2d5   : > { %v1603_v21 = vsel %vm1602_vm5, %v1600_v18, 0.0  ;;  %v1779_v18 = vld [vmem:[#allocation13 + $0xb8] sm:$0xff] }
 0x2da   : > { %v1595_v19 = vpop.f32.mrf.mxu2 }
 0x2db   : > { %v1601_v20 = vmul.f32 %v1599_v60, %v1595_v19  ;;  %v1753_v60 = vpack.c.bf16 %v1747_v15, %v1746_v16  ;;  %v1783_v19 = vpack.c.bf16 %v1779_v18, %v1778_v17  ;;  %v1914_v16 = vld [vmem:[#allocation13 + $0x180] sm:$0xff]  ;;  %v1915_v15 = vld [vmem:[#allocation13 + $0x188] sm:$0xff] }
 0x2dc   : > { %v1921_v17 = vpack.c.bf16 %v1915_v15, %v1914_v16  ;;  %v1965_v16 = vld [vmem:[#allocation15 + $0x40] sm:$0xff]  ;;  %v1966_v15 = vld [vmem:[#allocation15 + $0x48] sm:$0xff] }
 0x2dd   : > { %v1604_v22 = vsel %vm1602_vm5, %v1601_v20, 0.0  ;;  %1792 = vmatpush.bf16.msra.mxu0 %v1783_v19  ;;  %v1776_v20 = vld [vmem:[#allocation13 + $0xa0] sm:$0xff] }
 0x2de   : > { %v1605_v23 = vadd.f32 %v1604_v22, %v1603_v21  ;;  %v1777_v21 = vld [vmem:[#allocation13 + $0xa8] sm:$0xff] }
 0x2df   : > { %v1782_v22 = vpack.c.bf16 %v1777_v21, %v1776_v20  ;;  %v3888_v21 = vmov 7  }
 0x2e0   : > { %v1606_v24 = vrot.slane %v1605_v23, 4  ;;  %3451 = vset.pattern.permute.xlu0 %v3888_v21  ;;  %v1970_v21 = vld [vmem:[#allocation15 + $0x68] sm:$0xff] }
 0x2e1   : > { %1793 = vmatpush.bf16.msra.mxu0 %v1782_v22  ;;  %v3889_v22 = vmov 8   ;;  %1942 = vperm.xlu0 %3451, %v4174_v53  }
 0x2e2   : > { %v1607_v25 = vadd.f32 %v1606_v24, %v1605_v23  ;;  %v1774_v23 = vld [vmem:[#allocation13 + $0x90] sm:$0xff]  ;;  %v1775_v24 = vld [vmem:[#allocation13 + $0x98] sm:$0xff]  ;;  %3452 = vset.pattern.permute.xlu1 %v3889_v22  ;;  %v2073_v22 = vld [vmem:[#allocation16 + $0x20] sm:$0xff] }
 0x2e3   : > { %1947 = vperm.xlu1 %3452, %v4174_v53  }
 0x2e4   : > { %v1608_v27 = vrot.slane %v1607_v25, 2 }
 0x2e6   : > { %v1609_v28 = vadd.f32 %v1608_v27, %v1607_v25  ;;  %v1806_v25 = vld [vmem:[#allocation13 + $0xe0] sm:$0xff]  ;;  %v1781_v27 = vpack.c.bf16 %v1775_v24, %v1774_v23  ;;  %v3890_v23 = vmov 9  }
 0x2e7   : > { %3453 = vset.pattern.permute.xlu2 %v3890_v23  ;;  %v2074_v23 = vld [vmem:[#allocation16 + $0x28] sm:$0xff] }
 0x2e8   : > { %v1610_v31 = vrot.slane %v1609_v28, 1  ;;  %1794 = vmatpush.bf16.msra.mxu0 %v1781_v27  ;;  %1952 = vperm.xlu2 %3453, %v4174_v53  }
 0x2ea   : > { %v1611_v32 = vadd.f32 %v1610_v31, %v1609_v28  ;;  %v1807_v28 = vld [vmem:[#allocation13 + $0xe8] sm:$0xff] }
 0x2eb   : > { %v1811_v31 = vpack.c.bf16 %v1807_v28, %v1806_v25 }
 0x2ec   : > { %v4193_v34 = vmul.f32 %v1611_v32, %v1576_v14  ;;  %v1754_v14 = vpack.c.bf16 %v1749_v40, %v1748_v26  ;;  %v1804_v32 = vld [vmem:[#allocation13 + $0xd0] sm:$0xff]  ;;  %v1917_v40 = vld [vmem:[#allocation13 + $0x198] sm:$0xff] }
 0x2ed   : > { %1820 = vmatpush.bf16.msra.mxu1 %v1811_v31  ;;  %v1916_v26 = vld [vmem:[#allocation13 + $0x190] sm:$0xff] }
 0x2ee   : > { %v1617_v29 = vmul.f32 %v1615_v33, %v4193_v34  ;;  %1765 = vmatpush.bf16.msrb.mxu2 %v1754_v14  ;;  %v1805_v33 = vld [vmem:[#allocation13 + $0xd8] sm:$0xff]  ;;  %v1922_v14 = vpack.c.bf16 %v1917_v40, %v1916_v26  ;;  %v1964_v40 = vld [vmem:[#allocation15 + $0x38] sm:$0xff] }
 0x2f0   : > { %v1622_v11 = vadd.f32 %v1620_v35, %v1617_v29  ;;  %v1810_v35 = vpack.c.bf16 %v1805_v33, %v1804_v32  ;;  %v1802_v29 = vld [vmem:[#allocation13 + $0xc0] sm:$0xff] }
 0x2f2   : > { %vm1623_vm6 = vcmp.ge.f32.partialorder %v1622_v11, 0.0  ;;  %v1624_v36 = vmul.f32 0.25, %v1622_v11  ;;  %1766 = vmatpush.bf16.msrb.mxu2 %v1753_v60  ;;  %1821 = vmatpush.bf16.msra.mxu1 %v1810_v35 }
 0x2f4   : > { %v1625_v37 = vsel %vm1623_vm6, %v1622_v11, %v1624_v36  ;;  %v1803_v11 = vld [vmem:[#allocation13 + $0xc8] sm:$0xff]  ;;  %v1834_v36 = vld [vmem:[#allocation13 + $0x110] sm:$0xff] }
 0x2f5   : > { %v1640_v41 = vpack.c.bf16 %v1625_v37, %v1625_v37  ;;  %v1809_v37 = vpack.c.bf16 %v1803_v11, %v1802_v29  ;;  %v1839_v39 = vpack.c.bf16 %v1835_v38, %v1834_v36 }
 0x2f7   : > { %v1657_v42 = vsel %vm742_vm2, %v1640_v41, 0  ;;  %1822 = vmatpush.bf16.msra.mxu1 %v1809_v37  ;;  %1848 = vmatpush.bf16.msra.mxu2 %v1839_v39 }
 0x2f8   : > { %1666 = vmatpush.bf16.msrb.mxu3 %v1657_v42 }
 0x2fb   : > { %3222 = vmatmul.msk.bf16.vlgmr.msrb.gmra.mxu3 %vm726_vm3, %v1635_v43  ;;  %v1832_v43 = vld [vmem:[#allocation13 + $0x100] sm:$0xff] }
 0x2fc   : > { %v1838_v45 = vpack.c.bf16 %v1833_v44, %v1832_v43 }
 0x2fe   : > { %1849 = vmatpush.bf16.msra.mxu2 %v1838_v45 }
 0x30b   : > { %3223 = vmatmul.msk.bf16.gmra.mxu3 %vm726_vm3, %v1636_v46  ;;  %v1830_v46 = vld [vmem:[#allocation13 + $0xf0] sm:$0xff] }
 0x31b   : > { %3224 = vmatmul.msk.bf16.gmra.mxu3 %vm726_vm3, %v1637_v49  ;;  %v1837_v49 = vpack.c.bf16 %v1831_v47, %v1830_v46 }
 0x31d   : > { %1850 = vmatpush.bf16.msra.mxu2 %v1837_v49 }
 0x32b   : > { %3225 = vmatmul.msk.bf16.gmra.mxu3 %vm726_vm3, %v1638_v58  ;;  %v1859_v58 = vld [vmem:[#allocation13 + $0x128] sm:$0xff] }
 0x32c   : > { %v1865_v0 = vpack.c.bf16 %v1859_v58, %v1858_v30 }
 0x33b   : > { %3226 = vmatmul.msk.bf16.gmra.mxu3 %vm726_vm3, %v1639_v61  ;;  %v1891_v61 = vld [vmem:[#allocation13 + $0x178] sm:$0xff] }
 0x33c   : > { %v1895_v62 = vpack.c.bf16 %v1891_v61, %v1890_v59 }
 0x353   : > { %v1943_v30 = vpop.permute.xlu0 %1942 }
 0x355   : > { %v1948_v59 = vpop.permute.xlu1 %1947 }
 0x37e   : > { %v1668_v41 = vpop.f32.mrf.mxu3 }
 0x37f   : > { %v1698_v42 = vpack.c.bf16 %v1668_v41, %v1668_v41 }
 0x381   : > { %3228 = vmatmul.msk.bf16.vlgmr.msrb.gmra.mxu1 %vm1602_vm5, %v1698_v42 }
 0x382   : > { %1904 = vmatpush.bf16.msrb.mxu1 %v1895_v62  ;;  %v1953_v62 = vpop.permute.xlu2 %1952 }
 0x386   : > { %v1670_v51 = vpop.f32.mrf.mxu3  ;;  %1905 = vmatpush.bf16.msrb.mxu1 %v1894_v4  ;;  %v1958_v4 = vld [vmem:[#allocation15 + $0x8] sm:$0xff] }
 0x387   : > { %v1709_v54 = vpack.c.bf16 %v1670_v51, %v1670_v51  ;;  %v1975_v7 = vpack.c.bf16 %v1958_v4, %v1957_v3  ;;  %v2190_v3 = vld [vmem:[#allocation16 + $0xe8] sm:$0xff]  ;;  %v2157_v4 = vld [vmem:[#allocation16 + $0xa0] sm:$0xff] }
 0x389   : > { %3227 = vmatmul.msk.bf16.vlgmr.msrb.gmra.mxu0 %vm1602_vm5, %v1709_v54 }
 0x38a   : > { %1876 = vmatpush.bf16.msrb.mxu0 %v1867_v52  ;;  %1906 = vmatpush.bf16.msrb.mxu1 %v1893_v8  ;;  %v1959_v8 = vld [vmem:[#allocation15 + $0x10] sm:$0xff] }
 0x38e   : > { %v1673_v63 = vpop.f32.mrf.mxu3  ;;  %1877 = vmatpush.bf16.msrb.mxu0 %v1866_v57 }
 0x38f   : > { %v1752_v1 = vpack.c.bf16 %v1673_v63, %v1673_v63 }
 0x391   : > { %3229 = vmatmul.msk.bf16.vlgmr.msrb.gmra.mxu2 %vm1602_vm5, %v1752_v1 }
 0x392   : > { %1878 = vmatpush.bf16.msrb.mxu0 %v1865_v0  ;;  %1932 = vmatpush.bf16.msrb.mxu2 %v1923_v9  ;;  %v1976_v9 = vpack.c.bf16 %v1960_v10, %v1959_v8  ;;  %v2155_v8 = vld [vmem:[#allocation16 + $0x90] sm:$0xff]  ;;  %v2156_v10 = vld [vmem:[#allocation16 + $0x98] sm:$0xff] }
 0x396   : > { %v1675_v12 = vpop.f32.mrf.mxu3  ;;  %1933 = vmatpush.bf16.msrb.mxu2 %v1922_v14 }
 0x397   : > { %v1780_v13 = vpack.c.bf16 %v1675_v12, %v1675_v12  ;;  %v1961_v12 = vld [vmem:[#allocation15 + $0x20] sm:$0xff] }
 0x399   : > { %3230 = vmatmul.msk.bf16.vlgmr.msra.gmra.mxu0 %vm1602_vm5, %v1780_v13  ;;  %v1962_v13 = vld [vmem:[#allocation15 + $0x28] sm:$0xff] }
 0x39a   : > { %1934 = vmatpush.bf16.msrb.mxu2 %v1921_v17  ;;  %v1977_v26 = vpack.c.bf16 %v1962_v13, %v1961_v12  ;;  %v1979_v17 = vpack.c.bf16 %v1966_v15, %v1965_v16  ;;  %v2185_v16 = vld [vmem:[#allocation16 + $0xc0] sm:$0xff]  ;;  %v2186_v15 = vld [vmem:[#allocation16 + $0xc8] sm:$0xff] }
 0x39e   : > { %v1678_v60 = vpop.f32.mrf.mxu3 }
 0x39f   : > { %v1808_v18 = vpack.c.bf16 %v1678_v60, %v1678_v60  ;;  %v1967_v60 = vld [vmem:[#allocation15 + $0x50] sm:$0xff] }
 0x3a1   : > { %3231 = vmatmul.msk.bf16.vlgmr.msra.gmra.mxu1 %vm1602_vm5, %v1808_v18  ;;  %v1968_v18 = vld [vmem:[#allocation15 + $0x58] sm:$0xff] }
 0x3a6   : > { %v1680_v19 = vpop.f32.mrf.mxu3 }
 0x3a7   : > { %v1836_v20 = vpack.c.bf16 %v1680_v19, %v1680_v19  ;;  %v1980_v19 = vpack.c.bf16 %v1968_v18, %v1967_v60 }
 0x3a9   : > { %3232 = vmatmul.msk.bf16.vlgmr.msra.gmra.mxu2 %vm1602_vm5, %v1836_v20  ;;  %v1969_v20 = vld [vmem:[#allocation15 + $0x60] sm:$0xff] }
 0x3ae   : > { %v1683_v24 = vpop.f32.mrf.mxu3 }
 0x3af   : > { %v1864_v25 = vpack.c.bf16 %v1683_v24, %v1683_v24  ;;  %v4222_v24 = vpack.c.bf16 %v2074_v23, %v2073_v22  ;;  %v2217_v23 = vld [vmem:[#allocation16 + $0x100] sm:$0xff] }
 0x3b1   : > { %3233 = vmatmul.msk.bf16.vlgmr.msrb.gmra.mxu0 %vm1602_vm5, %v1864_v25  ;;  %v1981_v25 = vpack.c.bf16 %v1970_v21, %v1969_v20  ;;  %2115 = vmatpush.bf16.msra.mxu2 %v4222_v24  ;;  %v2220_v20 = vld [vmem:[#allocation16 + $0x118] sm:$0xff] }
 0x3b6   : > { %v1685_v27 = vpop.f32.mrf.mxu3 }
 0x3b7   : > { %v1892_v28 = vpack.c.bf16 %v1685_v27, %v1685_v27  ;;  %v2071_v27 = vld [vmem:[#allocation16 + $0x10] sm:$0xff] }
 0x3b9   : > { %3234 = vmatmul.msk.bf16.vlgmr.msrb.gmra.mxu1 %vm1602_vm5, %v1892_v28  ;;  %v2072_v28 = vld [vmem:[#allocation16 + $0x18] sm:$0xff] }
 0x3be   : > { %v1688_v31 = vpop.f32.mrf.mxu3 }
 0x3bf   : > { %v1920_v32 = vpack.c.bf16 %v1688_v31, %v1688_v31  ;;  %v4226_v31 = vpack.c.bf16 %v2072_v28, %v2071_v27  ;;  %v2215_v28 = vld [vmem:[#allocation16 + $0xf0] sm:$0xff] }
 0x3c1   : > { %3235 = vmatmul.msk.bf16.vlgmr.msrb.gmra.mxu2 %vm1602_vm5, %v1920_v32  ;;  %v2069_v32 = vld [vmem:[#allocation16] sm:$0xff] }
 0x3c2   : > { %2116 = vmatpush.bf16.msra.mxu2 %v4226_v31 }
 0x3c6   : > { %v1690_v33 = vpop.f32.mrf.mxu3 }
 0x3c7   : > { %v2070_v33 = vld [vmem:[#allocation16 + $0x8] sm:$0xff] }
 0x3fe   : > { %v1741_v35 = vpop.f32.mrf.mxu1 }
 0x406   : > { %v1725_v29 = vpop.f32.mrf.mxu0  ;;  %v1743_v11 = vpop.f32.mrf.mxu1 }
 0x407   : > { %v1742_v45 = vadd.f32 %v1741_v35, %v1725_v29  ;;  %v4231_v35 = vpack.c.bf16 %v2070_v33, %v2069_v32  ;;  %v1971_v29 = vld [vmem:[#allocation15 + $0x70] sm:$0xff]  ;;  %v1972_v11 = vld [vmem:[#allocation15 + $0x78] sm:$0xff]  ;;  %v2216_v32 = vld [vmem:[#allocation16 + $0xf8] sm:$0xff] }
 0x408   : > { %v4285_v33 = vpack.c.bf16 %v2216_v32, %v2215_v28  ;;  %v3893_v28 = vmov 12  }
 0x409   : > { %2117 = vmatpush.bf16.msra.mxu2 %v4231_v35 }
 0x40e   : > { %v1727_v36 = vpop.f32.mrf.mxu0 }
 0x40f   : > { %v2084_v36 = vld [vmem:[#allocation16 + $0x50] sm:$0xff] }
 0x414   : > { %v1768_v37 = vpop.f32.mrf.mxu2 }
 0x415   : > { %v1772_v47 = vadd.f32 %v1768_v37, %v1742_v45  ;;  %v2085_v37 = vld [vmem:[#allocation16 + $0x58] sm:$0xff] }
 0x416   : > { %v1796_v38 = vpop.f32.mrf.mxu0 }
 0x417   : > { %v1800_v50 = vadd.f32 %v1796_v38, %v1772_v47  ;;  %v4235_v38 = vpack.c.bf16 %v2085_v37, %v2084_v36  ;;  %v1974_v47 = vld [vmem:[#allocation15 + $0x88] sm:$0xff]  ;;  %v2249_v36 = vld [vmem:[#allocation16 + $0x140] sm:$0xff]  ;;  %v2250_v37 = vld [vmem:[#allocation16 + $0x148] sm:$0xff] }
 0x419   : > { %2098 = vmatpush.bf16.msra.mxu1 %v4235_v38 }
 0x41c   : > { %v1770_v53 = vpop.f32.mrf.mxu2 }
 0x41d   : > { %v1982_v53 = vpack.c.bf16 %v1972_v11, %v1971_v29 }
 0x41e   : > { %v1798_v39 = vpop.f32.mrf.mxu0  ;;  %v1824_v41 = vpop.f32.mrf.mxu1 }
 0x41f   : > { %v1828_v51 = vadd.f32 %v1824_v41, %v1800_v50  ;;  %v2082_v39 = vld [vmem:[#allocation16 + $0x40] sm:$0xff]  ;;  %v2083_v41 = vld [vmem:[#allocation16 + $0x48] sm:$0xff] }
 0x426   : > { %v1826_v42 = vpop.f32.mrf.mxu1 }
 0x427   : > { %v4238_v42 = vpack.c.bf16 %v2083_v41, %v2082_v39  ;;  %v2247_v41 = vld [vmem:[#allocation16 + $0x130] sm:$0xff] }
 0x429   : > { %2099 = vmatpush.bf16.msra.mxu1 %v4238_v42 }
 0x42c   : > { %v1852_v43 = vpop.f32.mrf.mxu2 }
 0x42d   : > { %v1856_v52 = vadd.f32 %v1852_v43, %v1828_v51  ;;  %v2080_v43 = vld [vmem:[#allocation16 + $0x30] sm:$0xff] }
 0x42e   : > { %v1880_v44 = vpop.f32.mrf.mxu0 }
 0x42f   : > { %v1884_v55 = vadd.f32 %v1880_v44, %v1856_v52  ;;  %v2081_v44 = vld [vmem:[#allocation16 + $0x38] sm:$0xff] }
 0x430   : > { %v4242_v45 = vpack.c.bf16 %v2081_v44, %v2080_v43  ;;  %v2248_v43 = vld [vmem:[#allocation16 + $0x138] sm:$0xff] }
 0x431   : > { %v4292_v44 = vpack.c.bf16 %v2248_v43, %v2247_v41 }
 0x432   : > { %2100 = vmatpush.bf16.msra.mxu1 %v4242_v45 }
 0x434   : > { %v1854_v46 = vpop.f32.mrf.mxu2 }
 0x435   : > { %v1973_v46 = vld [vmem:[#allocation15 + $0x80] sm:$0xff] }
 0x436   : > { %v1882_v48 = vpop.f32.mrf.mxu0  ;;  %v1908_v49 = vpop.f32.mrf.mxu1  ;;  %v1983_v51 = vpack.c.bf16 %v1974_v47, %v1973_v46  ;;  %v2245_v46 = vld [vmem:[#allocation16 + $0x120] sm:$0xff]  ;;  %v2246_v47 = vld [vmem:[#allocation16 + $0x128] sm:$0xff] }
 0x437   : > { %v1912_v56 = vadd.f32 %v1908_v49, %v1884_v55  ;;  %v2129_v48 = vld [vmem:[#allocation16 + $0x80] sm:$0xff]  ;;  %v2130_v49 = vld [vmem:[#allocation16 + $0x88] sm:$0xff]  ;;  %v2128_v55 = vld [vmem:[#allocation16 + $0x78] sm:$0xff] }
 0x438   : > { %v4245_v50 = vpack.c.bf16 %v2130_v49, %v2129_v48  ;;  %v4295_v48 = vpack.c.bf16 %v2246_v47, %v2245_v46 }
 0x43a   : > { %2143 = vmatpush.bf16.msrb.mxu1 %v4245_v50 }
 0x43e   : > { %v1910_v54 = vpop.f32.mrf.mxu1 }
 0x43f   : > { %v2127_v54 = vld [vmem:[#allocation16 + $0x70] sm:$0xff] }
 0x444   : > { %v1936_v57 = vpop.f32.mrf.mxu2 }
 0x445   : > { %v1940_v58 = vadd.f32 %v1936_v57, %v1912_v56  ;;  %v4248_v56 = vpack.c.bf16 %v2128_v55, %v2127_v54  ;;  %v2125_v57 = vld [vmem:[#allocation16 + $0x60] sm:$0xff]  ;;  %v2280_v54 = vld [vmem:[#allocation16 + $0x178] sm:$0xff] }
 0x447   : > { %v1945_v61 = vadd.f32 %v1943_v30, %v1940_v58  ;;  %2144 = vmatpush.bf16.msrb.mxu1 %v4248_v56  ;;  %v2126_v30 = vld [vmem:[#allocation16 + $0x68] sm:$0xff] }
 0x448   : > { %v4252_v58 = vpack.c.bf16 %v2126_v30, %v2125_v57  ;;  %v2277_v30 = vld [vmem:[#allocation16 + $0x160] sm:$0xff] }
 0x449   : > { %v1950_v63 = vmul.f32 %v1948_v59, %v1945_v61 }
 0x44b   : > { %v1955_v0 = vadd.f32 %v1953_v62, %v1950_v63  ;;  %2145 = vmatpush.bf16.msrb.mxu1 %v4252_v58  ;;  %v2159_v62 = vld [vmem:[#allocation16 + $0xb0] sm:$0xff]  ;;  %v2160_v63 = vld [vmem:[#allocation16 + $0xb8] sm:$0xff] }
 0x44c   : > { %v1938_v1 = vpop.f32.mrf.mxu2 }
 0x44d   : > { %v1956_v2 = vadd.f32 %v1955_v0, %v4193_v34  ;;  %v1963_v34 = vld [vmem:[#allocation15 + $0x30] sm:$0xff]  ;;  %v4256_v0 = vpack.c.bf16 %v2160_v63, %v2159_v62  ;;  %v2275_v62 = vld [vmem:[#allocation16 + $0x150] sm:$0xff]  ;;  %v2276_v63 = vld [vmem:[#allocation16 + $0x158] sm:$0xff] }
 0x44e   : > { %v1978_v14 = vpack.c.bf16 %v1964_v40, %v1963_v34  ;;  %v2187_v34 = vld [vmem:[#allocation16 + $0xd0] sm:$0xff]  ;;  %v2188_v40 = vld [vmem:[#allocation16 + $0xd8] sm:$0xff] }
 0x44f   : > { %v1984_v5 = vpack.c.bf16 %v1956_v2, %v1956_v2  ;;  %2173 = vmatpush.bf16.msrb.mxu2 %v4256_v0  ;;  %v2189_v2 = vld [vmem:[#allocation16 + $0xe0] sm:$0xff] }
 0x451   : > { %v2013_v6 = vsel %vm742_vm2, %v1984_v5, 0  ;;  %v4260_v5 = vpack.c.bf16 %v2190_v3, %v2189_v2 }
 0x452   : > { %2022 = vmatpush.bf16.msra.mxu0 %v2013_v6  ;;  %v2158_v6 = vld [vmem:[#allocation16 + $0xa8] sm:$0xff] }
 0x453   : > { %2203 = vmatpush.bf16.msra.mxu3 %v4260_v5 }
 0x455   : > { %3236 = vmatmul.msk.bf16.vlgmr.msra.gmra.mxu0 %vm726_vm3, %v1975_v7  ;;  %v4262_v7 = vpack.c.bf16 %v2158_v6, %v2157_v4  ;;  %v2309_v4 = vld [vmem:[#allocation16 + $0x1a0] sm:$0xff]  ;;  %v2310_v6 = vld [vmem:[#allocation16 + $0x1a8] sm:$0xff] }
 0x456   : > { %2829 = vmatpush.bf16.msrb.mxu0 %v4222_v24 }
 0x457   : > { %2174 = vmatpush.bf16.msrb.mxu2 %v4262_v7 }
 0x45a   : > { %2830 = vmatpush.bf16.msrb.mxu0 %v4226_v31 }
 0x45e   : > { %2831 = vmatpush.bf16.msrb.mxu0 %v4231_v35 }
 0x462   : > { %2867 = vmatpush.bf16.msra.mxu0 %v4256_v0 }
 0x465   : > { %3237 = vmatmul.msk.bf16.gmra.mxu0 %vm726_vm3, %v1976_v9  ;;  %v4267_v9 = vpack.c.bf16 %v2156_v10, %v2155_v8  ;;  %v4311_v8 = vpack.c.bf16 %v2310_v6, %v2309_v4 }
 0x466   : > { %2868 = vmatpush.bf16.msra.mxu0 %v4262_v7 }
 0x467   : > { %2175 = vmatpush.bf16.msrb.mxu2 %v4267_v9 }
 0x46a   : > { %2869 = vmatpush.bf16.msra.mxu0 %v4267_v9 }
 0x475   : > { %3238 = vmatmul.msk.bf16.gmra.mxu0 %vm726_vm3, %v1977_v26 }
 0x485   : > { %3239 = vmatmul.msk.bf16.gmra.mxu0 %vm726_vm3, %v1978_v14  ;;  %v4272_v14 = vpack.c.bf16 %v2188_v40, %v2187_v34  ;;  %v2305_v34 = vld [vmem:[#allocation16 + $0x180] sm:$0xff]  ;;  %v2306_v40 = vld [vmem:[#allocation16 + $0x188] sm:$0xff] }
 0x487   : > { %2204 = vmatpush.bf16.msra.mxu3 %v4272_v14 }
 0x495   : > { %3240 = vmatmul.msk.bf16.gmra.mxu0 %vm726_vm3, %v1979_v17  ;;  %v4275_v17 = vpack.c.bf16 %v2186_v15, %v2185_v16  ;;  %v4318_v16 = vpack.c.bf16 %v2306_v40, %v2305_v34 }
 0x497   : > { %2205 = vmatpush.bf16.msra.mxu3 %v4275_v17 }
 0x4a5   : > { %3241 = vmatmul.msk.bf16.gmra.mxu0 %vm726_vm3, %v1980_v19  ;;  %v2219_v19 = vld [vmem:[#allocation16 + $0x110] sm:$0xff] }
 0x4a6   : > { %v4279_v21 = vpack.c.bf16 %v2220_v20, %v2219_v19  ;;  %v4324_v20 = vld [vmem:[#allocation2] sm:$0xff] }
 0x4b5   : > { %3242 = vmatmul.msk.bf16.gmra.mxu0 %vm726_vm3, %v1981_v25  ;;  %v2218_v25 = vld [vmem:[#allocation16 + $0x108] sm:$0xff] }
 0x4b6   : > { %v4282_v27 = vpack.c.bf16 %v2218_v25, %v2217_v23  ;;  %v3892_v25 = vmov 11  }
 0x4b7   : > { %3456 = vset.pattern.permute.xlu0 %v3892_v25 }
 0x4b8   : > { %2345 = vperm.xlu0 %3456, %v4324_v20  }
 0x4c5   : > { %3243 = vmatmul.msk.bf16.gmra.mxu0 %vm726_vm3, %v1982_v53  ;;  %v4289_v53 = vpack.c.bf16 %v2250_v37, %v2249_v36 }
 0x4d2   : > { %v2024_v52 = vpop.f32.mrf.mxu0 }
 0x4d5   : > { %3244 = vmatmul.msk.bf16.gmra.mxu0 %vm726_vm3, %v1983_v51 }
 0x4da   : > { %v2026_v59 = vpop.f32.mrf.mxu0 }
 0x4db   : > { %v2075_v61 = vpack.c.bf16 %v2026_v59, %v2024_v52  ;;  %v2279_v52 = vld [vmem:[#allocation16 + $0x170] sm:$0xff]  ;;  %v2278_v59 = vld [vmem:[#allocation16 + $0x168] sm:$0xff] }
 0x4dc   : > { %v4299_v55 = vpack.c.bf16 %v2280_v54, %v2279_v52 }
 0x4dd   : > { %3246 = vmatmul.msk.bf16.vlgmr.msra.gmra.mxu2 %vm1602_vm5, %v2075_v61  ;;  %v4302_v61 = vpack.c.bf16 %v2278_v59, %v2277_v30 }
 0x4de   : > { %2263 = vmatpush.bf16.msra.mxu2 %v4289_v53  ;;  %2293 = vmatpush.bf16.msrb.mxu3 %v4299_v55 }
 0x4e2   : > { %v2029_v1 = vpop.f32.mrf.mxu0  ;;  %2264 = vmatpush.bf16.msra.mxu2 %v4292_v44  ;;  %2294 = vmatpush.bf16.msrb.mxu3 %v4302_v61 }
 0x4e6   : > { %2265 = vmatpush.bf16.msra.mxu2 %v4295_v48 }
 0x4ea   : > { %v2031_v12 = vpop.f32.mrf.mxu0 }
 0x4eb   : > { %v2086_v13 = vpack.c.bf16 %v2031_v12, %v2029_v1  ;;  %v4305_v1 = vpack.c.bf16 %v2276_v63, %v2275_v62  ;;  %v2307_v12 = vld [vmem:[#allocation16 + $0x190] sm:$0xff] }
 0x4ed   : > { %3245 = vmatmul.msk.bf16.vlgmr.msra.gmra.mxu1 %vm1602_vm5, %v2086_v13  ;;  %2295 = vmatpush.bf16.msrb.mxu3 %v4305_v1  ;;  %v2308_v13 = vld [vmem:[#allocation16 + $0x198] sm:$0xff] }
 0x4ee   : > { %2233 = vmatpush.bf16.msra.mxu1 %v4279_v21 }
 0x4f2   : > { %v2034_v26 = vpop.f32.mrf.mxu0  ;;  %2234 = vmatpush.bf16.msra.mxu1 %v4282_v27 }
 0x4f6   : > { %2235 = vmatpush.bf16.msra.mxu1 %v4285_v33 }
 0x4fa   : > { %v2036_v60 = vpop.f32.mrf.mxu0 }
 0x4fb   : > { %v2131_v18 = vpack.c.bf16 %v2036_v60, %v2034_v26  ;;  %v4314_v26 = vpack.c.bf16 %v2308_v13, %v2307_v12 }
 0x4fd   : > { %3247 = vmatmul.msk.bf16.vlgmr.msrb.gmra.mxu1 %vm1602_vm5, %v2131_v18  ;;  %v3891_v18 = vmov 10  }
 0x4fe   : > { %2323 = vmatpush.bf16.msrb.mxu1 %v4311_v8  ;;  %3454 = vset.pattern.permute.xlu1 %v3891_v18 }
 0x4ff   : > { %3455 = vset.pattern.permute.xlu2 %v3891_v18  ;;  %2335 = vperm.xlu1 %3454, %v4324_v20  }
 0x502   : > { %v2039_v22 = vpop.f32.mrf.mxu0  ;;  %2324 = vmatpush.bf16.msrb.mxu1 %v4314_v26 }
 0x506   : > { %2325 = vmatpush.bf16.msrb.mxu1 %v4318_v16 }
 0x507   : > { %3457 = vset.pattern.permute.xlu1 %v3892_v25 }
 0x50a   : > { %v2041_v29 = vpop.f32.mrf.mxu0 }
 0x50b   : > { %v2161_v11 = vpack.c.bf16 %v2041_v29, %v2039_v22  ;;  %v4327_v22 = vld [vmem:[#allocation2 + $0x8] sm:$0xff] }
 0x50c   : > { %2339 = vperm.xlu2 %3455, %v4327_v22   ;;  %2349 = vperm.xlu1 %3457, %v4327_v22  }
 0x50d   : > { %3248 = vmatmul.msk.bf16.vlgmr.msrb.gmra.mxu2 %vm1602_vm5, %v2161_v11 }
 0x512   : > { %v2044_v39 = vpop.f32.mrf.mxu0 }
 0x514   : > { %3459 = vset.pattern.permute.xlu1 %v3893_v28  ;;  %3458 = vset.pattern.permute.xlu2 %v3893_v28 }
 0x515   : > { %2359 = vperm.xlu1 %3459, %v4327_v22   ;;  %2355 = vperm.xlu2 %3458, %v4324_v20  }
 0x51a   : > { %v2046_v49 = vpop.f32.mrf.mxu0 }
 0x51b   : > { %v2191_v51 = vpack.c.bf16 %v2046_v49, %v2044_v39 }
 0x51d   : > { %3249 = vmatmul.msk.bf16.vlgmr.msra.gmra.mxu3 %vm1602_vm5, %v2191_v51 }
 0x51e   : > { %2489 = vmatpush.bf16.msra.mxu3 %v4235_v38 }
 0x522   : > { %v2049_v57 = vpop.f32.mrf.mxu0  ;;  %2490 = vmatpush.bf16.msra.mxu3 %v4238_v42 }
 0x526   : > { %2491 = vmatpush.bf16.msra.mxu3 %v4242_v45 }
 0x52a   : > { %v2051_v2 = vpop.f32.mrf.mxu0 }
 0x52b   : > { %v2221_v3 = vpack.c.bf16 %v2051_v2, %v2049_v57 }
 0x52d   : > { %3250 = vmatmul.msk.bf16.vlgmr.msra.gmra.mxu1 %vm1602_vm5, %v2221_v3 }
 0x52e   : > { %2506 = vmatpush.bf16.msra.mxu1 %v4222_v24 }
 0x532   : > { %v2054_v10 = vpop.f32.mrf.mxu0  ;;  %2507 = vmatpush.bf16.msra.mxu1 %v4226_v31 }
 0x536   : > { %2508 = vmatpush.bf16.msra.mxu1 %v4231_v35 }
 0x53a   : > { %v2056_v15 = vpop.f32.mrf.mxu0 }
 0x53b   : > { %v2251_v60 = vpack.c.bf16 %v2056_v15, %v2054_v10 }
 0x53d   : > { %3251 = vmatmul.msk.bf16.vlgmr.msra.gmra.mxu2 %vm1602_vm5, %v2251_v60 }
 0x542   : > { %v2059_v19 = vpop.f32.mrf.mxu0 }
 0x54a   : > { %v2061_v23 = vpop.f32.mrf.mxu0 }
 0x54b   : > { %v2281_v24 = vpack.c.bf16 %v2061_v23, %v2059_v19  ;;  %v2346_v23 = vpop.permute.xlu0 %2345 }
 0x54d   : > { %3252 = vmatmul.msk.bf16.vlgmr.msrb.gmra.mxu3 %vm1602_vm5, %v2281_v24 }
 0x54e   : > { %2524 = vmatpush.bf16.msrb.mxu3 %v4245_v50 }
 0x552   : > { %v2064_v31 = vpop.f32.mrf.mxu0  ;;  %2525 = vmatpush.bf16.msrb.mxu3 %v4248_v56 }
 0x556   : > { %2526 = vmatpush.bf16.msrb.mxu3 %v4252_v58 }
 0x55a   : > { %v2066_v35 = vpop.f32.mrf.mxu0 }
 0x55b   : > { %v2311_v32 = vpack.c.bf16 %v2066_v35, %v2064_v31 }
 0x55d   : > { %3253 = vmatmul.msk.bf16.vlgmr.msrb.gmra.mxu1 %vm1602_vm5, %v2311_v32 }
 0x55e   : > { %2544 = vmatpush.bf16.msrb.mxu1 %v4256_v0 }
 0x560   : > { %v2119_v36 = vpop.f32.mrf.mxu2 }
 0x562   : > { %2545 = vmatpush.bf16.msrb.mxu1 %v4262_v7 }
 0x566   : > { %2546 = vmatpush.bf16.msrb.mxu1 %v4267_v9  ;;  %v2340_v4 = vpop.permute.xlu2 %2339 }
 0x568   : > { %v2121_v39 = vpop.f32.mrf.mxu2 }
 0x56a   : > { %v2102_v29 = vpop.f32.mrf.mxu1 }
 0x56b   : > { %v2120_v52 = vadd.f32 %v2119_v36, %v2102_v29 }
 0x56f   : > { %v2356_v28 = vpop.permute.xlu2 %2355 }
 0x571   : > { %v2336_v59 = vpop.permute.xlu1 %2335 }
 0x572   : > { %v2104_v11 = vpop.f32.mrf.mxu1 }
 0x573   : > { %v2122_v9 = vadd.f32 %v2121_v39, %v2104_v11 }
 0x57a   : > { %v2147_v37 = vpop.f32.mrf.mxu1 }
 0x57b   : > { %v2152_v54 = vadd.f32 %v2147_v37, %v2120_v52 }
 0x57e   : > { %v2350_v15 = vpop.permute.xlu1 %2349 }
 0x582   : > { %v2149_v41 = vpop.f32.mrf.mxu1 }
 0x583   : > { %v2153_v2 = vadd.f32 %v2149_v41, %v2122_v9  ;;  %v2376_v9 = vld [vmem:[#allocation18 + $0x30] sm:$0xff] }
 0x587   : > { %v2360_v36 = vpop.permute.xlu1 %2359 }
 0x590   : > { %v2177_v43 = vpop.f32.mrf.mxu2 }
 0x591   : > { %v2182_v57 = vadd.f32 %v2177_v43, %v2152_v54 }
 0x598   : > { %v2179_v49 = vpop.f32.mrf.mxu2 }
 0x599   : > { %v2183_v6 = vadd.f32 %v2179_v49, %v2153_v2 }
 0x5a0   : > { %v2207_v46 = vpop.f32.mrf.mxu3 }
 0x5a1   : > { %v2212_v7 = vadd.f32 %v2207_v46, %v2182_v57  ;;  %v2370_v46 = vld [vmem:[#allocation18] sm:$0xff]  ;;  %v2372_v57 = vld [vmem:[#allocation18 + $0x10] sm:$0xff] }
 0x5a8   : > { %v2209_v51 = vpop.f32.mrf.mxu3 }
 0x5a9   : > { %v2213_v13 = vadd.f32 %v2209_v51, %v2183_v6 }
 0x5aa   : > { %v2237_v47 = vpop.f32.mrf.mxu1 }
 0x5ab   : > { %v2242_v63 = vadd.f32 %v2237_v47, %v2212_v7  ;;  %v2371_v47 = vld [vmem:[#allocation18 + $0x8] sm:$0xff] }
 0x5ac   : > { %v2388_v54 = vpack.c.bf16 %v2371_v47, %v2370_v46  ;;  %v2375_v7 = vld [vmem:[#allocation18 + $0x28] sm:$0xff] }
 0x5b2   : > { %v2239_v30 = vpop.f32.mrf.mxu1 }
 0x5b3   : > { %v2243_v60 = vadd.f32 %v2239_v30, %v2213_v13  ;;  %v2373_v30 = vld [vmem:[#allocation18 + $0x18] sm:$0xff] }
 0x5c0   : > { %v2267_v0 = vpop.f32.mrf.mxu2 }
 0x5c1   : > { %v2272_v3 = vadd.f32 %v2267_v0, %v2242_v63  ;;  %v2389_v0 = vpack.c.bf16 %v2373_v30, %v2372_v57  ;;  %v2377_v63 = vld [vmem:[#allocation18 + $0x38] sm:$0xff] }
 0x5c2   : > { %v2391_v2 = vpack.c.bf16 %v2377_v63, %v2376_v9 }
 0x5c8   : > { %v2269_v40 = vpop.f32.mrf.mxu2 }
 0x5c9   : > { %v2273_v24 = vadd.f32 %v2269_v40, %v2243_v60  ;;  %v2383_v40 = vld [vmem:[#allocation18 + $0x68] sm:$0xff]  ;;  %v2384_v60 = vld [vmem:[#allocation18 + $0x70] sm:$0xff] }
 0x5d0   : > { %v2297_v62 = vpop.f32.mrf.mxu3 }
 0x5d1   : > { %v2302_v10 = vadd.f32 %v2297_v62, %v2272_v3  ;;  %v2378_v3 = vld [vmem:[#allocation18 + $0x40] sm:$0xff] }
 0x5d8   : > { %v2299_v19 = vpop.f32.mrf.mxu3 }
 0x5d9   : > { %v2303_v25 = vadd.f32 %v2299_v19, %v2273_v24  ;;  %v2387_v24 = vld [vmem:[#allocation18 + $0x88] sm:$0xff] }
 0x5da   : > { %v2327_v12 = vpop.f32.mrf.mxu1 }
 0x5db   : > { %v2332_v34 = vadd.f32 %v2327_v12, %v2302_v10  ;;  %v2380_v10 = vld [vmem:[#allocation18 + $0x50] sm:$0xff]  ;;  %v2381_v12 = vld [vmem:[#allocation18 + $0x58] sm:$0xff] }
 0x5dc   : > { %v2393_v13 = vpack.c.bf16 %v2381_v12, %v2380_v10 }
 0x5dd   : > { %v2342_v18 = vadd.f32 %v2336_v59, %v2332_v34  ;;  %v2374_v59 = vld [vmem:[#allocation18 + $0x20] sm:$0xff] }
 0x5de   : > { %v2390_v62 = vpack.c.bf16 %v2375_v7, %v2374_v59  ;;  %v2382_v34 = vld [vmem:[#allocation18 + $0x60] sm:$0xff] }
 0x5df   : > { %v2352_v31 = vmul.f32 %v2346_v23, %v2342_v18  ;;  %v2385_v18 = vld [vmem:[#allocation18 + $0x78] sm:$0xff]  ;;  %v2386_v23 = vld [vmem:[#allocation18 + $0x80] sm:$0xff] }
 0x5e0   : > { %v2395_v19 = vpack.c.bf16 %v2385_v18, %v2384_v60 }
 0x5e1   : > { %v2362_v29 = vadd.f32 %v2356_v28, %v2352_v31 }
 0x5e2   : > { %v2329_v35 = vpop.f32.mrf.mxu1 }
 0x5e3   : > { %v2333_v32 = vadd.f32 %v2329_v35, %v2303_v25  ;;  %v2366_v39 = vmul.f32 0.25, %v2362_v29  ;;  %vm2364_vm7 = vcmp.ge.f32.partialorder %v2362_v29, 0.0  ;;  %v2396_v25 = vpack.c.bf16 %v2387_v24, %v2386_v23 }
 0x5e5   : > { %v2343_v11 = vadd.f32 %v2340_v4, %v2333_v32  ;;  %v4343_v49 = vsel %vm2364_vm7, %v2362_v29, %v2366_v39  ;;  %v2379_v4 = vld [vmem:[#allocation18 + $0x48] sm:$0xff] }
 0x5e6   : > { %v2392_v6 = vpack.c.bf16 %v2379_v4, %v2378_v3  ;;  %v3896_v3 = vmov 13  }
 0x5e7   : > { %v2353_v37 = vmul.f32 %v2350_v15, %v2343_v11  ;;  %v2394_v15 = vpack.c.bf16 %v2383_v40, %v2382_v34  ;;  %3461 = vset.pattern.permute.xlu0 %v3896_v3  ;;  %3460 = vset.pattern.permute.xlu2 %v3896_v3 }
 0x5e8   : > { %2660 = vperm.xlu0 %3461, %v4327_v22   ;;  %2656 = vperm.xlu2 %3460, %v4324_v20  }
 0x5e9   : > { %v2363_v41 = vadd.f32 %v2360_v36, %v2353_v37 }
 0x5eb   : > { %vm2365_vm8 = vcmp.ge.f32.partialorder %v2363_v41, 0.0  ;;  %v2367_v43 = vmul.f32 0.25, %v2363_v41 }
 0x5ed   : > { %v4345_v51 = vsel %vm2365_vm8, %v2363_v41, %v2367_v43 }
 0x5ee   : > { %v2397_v52 = vpack.c.bf16 %v4345_v51, %v4343_v49 }
 0x5f0   : > { %2432 = vmatpush.bf16.msrb.mxu2 %v2397_v52 }
 0x5f3   : > { %3254 = vmatmul.msk.bf16.vlgmr.msrb.gmra.mxu2 %vm1542_vm4, %v2388_v54 }
 0x5f4   : > { %2967 = vmatpush.bf16.msra.mxu2 %v4311_v8 }
 0x5f8   : > { %2968 = vmatpush.bf16.msra.mxu2 %v4314_v26 }
 0x5fc   : > { %2969 = vmatpush.bf16.msra.mxu2 %v4318_v16 }
 0x603   : > { %3255 = vmatmul.msk.bf16.gmra.mxu2 %vm1542_vm4, %v2389_v0 }
 0x613   : > { %3256 = vmatmul.msk.bf16.gmra.mxu2 %vm1542_vm4, %v2390_v62 }
 0x623   : > { %3257 = vmatmul.msk.bf16.gmra.mxu2 %vm1542_vm4, %v2391_v2  ;;  %v3895_v2 = vmov 15  }
 0x633   : > { %3258 = vmatmul.msk.bf16.gmra.mxu2 %vm1542_vm4, %v2392_v6 }
 0x643   : > { %3259 = vmatmul.msk.bf16.gmra.mxu2 %vm1542_vm4, %v2393_v13 }
 0x653   : > { %3260 = vmatmul.msk.bf16.gmra.mxu2 %vm1542_vm4, %v2394_v15 }
 0x663   : > { %3261 = vmatmul.msk.bf16.gmra.mxu2 %vm1542_vm4, %v2395_v19 }
 0x673   : > { %3262 = vmatmul.msk.bf16.gmra.mxu2 %vm1542_vm4, %v2396_v25 }
 0x676   : > { %v2434_v31 = vpop.f32.mrf.mxu2 }
 0x67e   : > { %v2436_v28 = vpop.f32.mrf.mxu2 }
 0x67f   : > { %v2479_v35 = vpack.c.bf16 %v2436_v28, %v2434_v31 }
 0x681   : > { %3264 = vmatmul.msk.bf16.vlgmr.msra.gmra.mxu1 %vm1602_vm5, %v2479_v35 }
 0x682   : > { %2584 = vmatpush.bf16.msra.mxu1 %v4279_v21 }
 0x686   : > { %v2439_v32 = vpop.f32.mrf.mxu2  ;;  %2585 = vmatpush.bf16.msra.mxu1 %v4282_v27 }
 0x68a   : > { %2586 = vmatpush.bf16.msra.mxu1 %v4285_v33 }
 0x68e   : > { %v2441_v29 = vpop.f32.mrf.mxu2 }
 0x68f   : > { %v2480_v11 = vpack.c.bf16 %v2441_v29, %v2439_v32 }
 0x691   : > { %3263 = vmatmul.msk.bf16.vlgmr.msra.gmra.mxu3 %vm1602_vm5, %v2480_v11 }
 0x692   : > { %2564 = vmatpush.bf16.msra.mxu3 %v4260_v5 }
 0x696   : > { %v2444_v36 = vpop.f32.mrf.mxu2  ;;  %2565 = vmatpush.bf16.msra.mxu3 %v4272_v14 }
 0x69a   : > { %2566 = vmatpush.bf16.msra.mxu3 %v4275_v17 }
 0x69e   : > { %v2446_v37 = vpop.f32.mrf.mxu2 }
 0x69f   : > { %v2515_v39 = vpack.c.bf16 %v2446_v37, %v2444_v36 }
 0x6a1   : > { %3265 = vmatmul.msk.bf16.vlgmr.msrb.gmra.mxu3 %vm1602_vm5, %v2515_v39 }
 0x6a2   : > { %2604 = vmatpush.bf16.msrb.mxu3 %v4289_v53 }
 0x6a6   : > { %v2449_v41 = vpop.f32.mrf.mxu2  ;;  %2605 = vmatpush.bf16.msrb.mxu3 %v4292_v44 }
 0x6aa   : > { %2606 = vmatpush.bf16.msrb.mxu3 %v4295_v48 }
 0x6ae   : > { %v2451_v43 = vpop.f32.mrf.mxu2 }
 0x6af   : > { %v2535_v46 = vpack.c.bf16 %v2451_v43, %v2449_v41 }
 0x6b1   : > { %3266 = vmatmul.msk.bf16.vlgmr.msrb.gmra.mxu1 %vm1602_vm5, %v2535_v46 }
 0x6b2   : > { %2624 = vmatpush.bf16.msrb.mxu1 %v4299_v55 }
 0x6b6   : > { %v2454_v47 = vpop.f32.mrf.mxu2  ;;  %2625 = vmatpush.bf16.msrb.mxu1 %v4302_v61 }
 0x6ba   : > { %2626 = vmatpush.bf16.msrb.mxu1 %v4305_v1 }
 0x6be   : > { %v2456_v52 = vpop.f32.mrf.mxu2 }
 0x6bf   : > { %v2555_v54 = vpack.c.bf16 %v2456_v52, %v2454_v47 }
 0x6c1   : > { %3267 = vmatmul.msk.bf16.vlgmr.msra.gmra.mxu3 %vm1602_vm5, %v2555_v54 }
 0x6c2   : > { %2644 = vmatpush.bf16.msra.mxu3 %v4311_v8  ;;  %v3894_v8 = vmov 14  }
 0x6c3   : > { %3462 = vset.pattern.permute.xlu1 %v3894_v8  ;;  %3463 = vset.pattern.permute.xlu2 %v3894_v8 }
 0x6c4   : > { %2666 = vperm.xlu1 %3462, %v4324_v20   ;;  %2670 = vperm.xlu2 %3463, %v4327_v22  }
 0x6c6   : > { %v2459_v57 = vpop.f32.mrf.mxu2  ;;  %2645 = vmatpush.bf16.msra.mxu3 %v4314_v26 }
 0x6ca   : > { %2646 = vmatpush.bf16.msra.mxu3 %v4318_v16 }
 0x6cc   : > { %3464 = vset.pattern.permute.xlu1 %v3895_v2  ;;  %3465 = vset.pattern.permute.xlu2 %v3895_v2 }
 0x6cd   : > { %2676 = vperm.xlu1 %3464, %v4324_v20   ;;  %2680 = vperm.xlu2 %3465, %v4327_v22  }
 0x6ce   : > { %v2461_v30 = vpop.f32.mrf.mxu2 }
 0x6cf   : > { %v2575_v0 = vpack.c.bf16 %v2461_v30, %v2459_v57 }
 0x6d1   : > { %3268 = vmatmul.msk.bf16.vlgmr.msra.gmra.mxu1 %vm1602_vm5, %v2575_v0 }
 0x6d6   : > { %v2464_v59 = vpop.f32.mrf.mxu2 }
 0x6de   : > { %v2466_v7 = vpop.f32.mrf.mxu2 }
 0x6df   : > { %v2595_v62 = vpack.c.bf16 %v2466_v7, %v2464_v59 }
 0x6e1   : > { %3269 = vmatmul.msk.bf16.vlgmr.msrb.gmra.mxu3 %vm1602_vm5, %v2595_v62 }
 0x6e2   : > { %2812 = vmatpush.bf16.msrb.mxu3 %v4235_v38 }
 0x6e6   : > { %v2469_v9 = vpop.f32.mrf.mxu2  ;;  %2813 = vmatpush.bf16.msrb.mxu3 %v4238_v42 }
 0x6ea   : > { %2814 = vmatpush.bf16.msrb.mxu3 %v4242_v45 }
 0x6ee   : > { %v2471_v26 = vpop.f32.mrf.mxu2 }
 0x6ef   : > { %v2615_v16 = vpack.c.bf16 %v2471_v26, %v2469_v9  ;;  %v2661_v9 = vpop.permute.xlu0 %2660 }
 0x6f1   : > { %3270 = vmatmul.msk.bf16.vlgmr.msrb.gmra.mxu1 %vm1602_vm5, %v2615_v16 }
 0x6f6   : > { %v2474_v63 = vpop.f32.mrf.mxu2 }
 0x6fe   : > { %v2476_v38 = vpop.f32.mrf.mxu2  ;;  %v2510_v6 = vpop.f32.mrf.mxu1 }
 0x6ff   : > { %v2635_v42 = vpack.c.bf16 %v2476_v38, %v2474_v63 }
 0x701   : > { %3271 = vmatmul.msk.bf16.vlgmr.msra.gmra.mxu3 %vm1602_vm5, %v2635_v42 }
 0x702   : > { %2847 = vmatpush.bf16.msra.mxu3 %v4245_v50 }
 0x706   : > { %2848 = vmatpush.bf16.msra.mxu3 %v4248_v56  ;;  %v2512_v12 = vpop.f32.mrf.mxu1 }
 0x70a   : > { %2849 = vmatpush.bf16.msra.mxu3 %v4252_v58  ;;  %v2657_v58 = vpop.permute.xlu2 %2656 }
 0x714   : > { %v2493_v45 = vpop.f32.mrf.mxu3 }
 0x715   : > { %v2511_v23 = vadd.f32 %v2510_v6, %v2493_v45 }
 0x71c   : > { %v2495_v4 = vpop.f32.mrf.mxu3 }
 0x71d   : > { %v2513_v35 = vadd.f32 %v2512_v12, %v2495_v4  ;;  %v2693_v12 = vld [vmem:[#allocation19] sm:$0xff] }
 0x71e   : > { %v2671_v47 = vpop.permute.xlu2 %2670 }
 0x724   : > { %v2528_v10 = vpop.f32.mrf.mxu3 }
 0x725   : > { %v2533_v56 = vadd.f32 %v2528_v10, %v2511_v23 }
 0x727   : > { %v2681_v63 = vpop.permute.xlu2 %2680 }
 0x72c   : > { %v2530_v13 = vpop.f32.mrf.mxu3 }
 0x72d   : > { %v2534_v11 = vadd.f32 %v2530_v13, %v2513_v35  ;;  %v2694_v13 = vld [vmem:[#allocation19 + $0x8] sm:$0xff] }
 0x72e   : > { %v2548_v34 = vpop.f32.mrf.mxu1 }
 0x72f   : > { %v2553_v24 = vadd.f32 %v2548_v34, %v2533_v56  ;;  %v2700_v56 = vld [vmem:[#allocation19 + $0x38] sm:$0xff] }
 0x736   : > { %v2550_v15 = vpop.f32.mrf.mxu1  ;;  %v2667_v29 = vpop.permute.xlu1 %2666 }
 0x737   : > { %v2554_v37 = vadd.f32 %v2550_v15, %v2534_v11  ;;  %v2695_v15 = vld [vmem:[#allocation19 + $0x10] sm:$0xff] }
 0x73f   : > { %v2677_v59 = vpop.permute.xlu1 %2676 }
 0x744   : > { %v2568_v40 = vpop.f32.mrf.mxu3 }
 0x745   : > { %v2573_v31 = vadd.f32 %v2568_v40, %v2553_v24  ;;  %v2711_v40 = vpack.c.bf16 %v2694_v13, %v2693_v12  ;;  %v2701_v24 = vld [vmem:[#allocation19 + $0x40] sm:$0xff] }
 0x74c   : > { %v2570_v60 = vpop.f32.mrf.mxu3 }
 0x74d   : > { %v2574_v43 = vadd.f32 %v2570_v60, %v2554_v37  ;;  %v2696_v60 = vld [vmem:[#allocation19 + $0x18] sm:$0xff] }
 0x74e   : > { %v2588_v18 = vpop.f32.mrf.mxu1  ;;  %v2708_v37 = vld [vmem:[#allocation19 + $0x78] sm:$0xff] }
 0x74f   : > { %v2593_v32 = vadd.f32 %v2588_v18, %v2573_v31  ;;  %v2712_v18 = vpack.c.bf16 %v2696_v60, %v2695_v15  ;;  %v2703_v31 = vld [vmem:[#allocation19 + $0x50] sm:$0xff] }
 0x756   : > { %v2590_v50 = vpop.f32.mrf.mxu1 }
 0x757   : > { %v2594_v52 = vadd.f32 %v2590_v50, %v2574_v43  ;;  %v2698_v50 = vld [vmem:[#allocation19 + $0x28] sm:$0xff] }
 0x758   : > { %v2710_v43 = vld [vmem:[#allocation19 + $0x88] sm:$0xff] }
 0x764   : > { %v2608_v19 = vpop.f32.mrf.mxu3 }
 0x765   : > { %v2613_v36 = vadd.f32 %v2608_v19, %v2593_v32  ;;  %v2697_v19 = vld [vmem:[#allocation19 + $0x20] sm:$0xff] }
 0x766   : > { %v2713_v23 = vpack.c.bf16 %v2698_v50, %v2697_v19  ;;  %v2705_v32 = vld [vmem:[#allocation19 + $0x60] sm:$0xff] }
 0x76c   : > { %v2610_v25 = vpop.f32.mrf.mxu3 }
 0x76d   : > { %v2614_v30 = vadd.f32 %v2610_v25, %v2594_v52  ;;  %v2702_v25 = vld [vmem:[#allocation19 + $0x48] sm:$0xff] }
 0x76e   : > { %v2628_v28 = vpop.f32.mrf.mxu1 }
 0x76f   : > { %v2633_v39 = vadd.f32 %v2628_v28, %v2613_v36  ;;  %v2704_v28 = vld [vmem:[#allocation19 + $0x58] sm:$0xff]  ;;  %v2707_v36 = vld [vmem:[#allocation19 + $0x70] sm:$0xff] }
 0x770   : > { %v2716_v35 = vpack.c.bf16 %v2704_v28, %v2703_v31 }
 0x776   : > { %v2630_v57 = vpop.f32.mrf.mxu1 }
 0x777   : > { %v2634_v7 = vadd.f32 %v2630_v57, %v2614_v30 }
 0x784   : > { %v2648_v41 = vpop.f32.mrf.mxu3 }
 0x785   : > { %v2653_v46 = vadd.f32 %v2648_v41, %v2633_v39  ;;  %v2718_v39 = vpack.c.bf16 %v2708_v37, %v2707_v36  ;;  %v2709_v41 = vld [vmem:[#allocation19 + $0x80] sm:$0xff] }
 0x787   : > { %v2663_v54 = vadd.f32 %v2657_v58, %v2653_v46  ;;  %v2715_v58 = vpack.c.bf16 %v2702_v25, %v2701_v24  ;;  %v2719_v46 = vpack.c.bf16 %v2710_v43, %v2709_v41 }
 0x789   : > { %v2673_v0 = vmul.f32 %v2667_v29, %v2663_v54  ;;  %v2706_v29 = vld [vmem:[#allocation19 + $0x68] sm:$0xff] }
 0x78a   : > { %v2717_v11 = vpack.c.bf16 %v2706_v29, %v2705_v32 }
 0x78b   : > { %v2683_v8 = vadd.f32 %v2677_v59, %v2673_v0 }
 0x78c   : > { %v2650_v62 = vpop.f32.mrf.mxu3 }
 0x78d   : > { %v2654_v26 = vadd.f32 %v2650_v62, %v2634_v7  ;;  %v2687_v2 = vmul.f32 0.25, %v2683_v8  ;;  %vm2685_vm9 = vcmp.ge.f32.partialorder %v2683_v8, 0.0 }
 0x78f   : > { %v2664_v16 = vadd.f32 %v2661_v9, %v2654_v26  ;;  %v2689_v42 = vsel %vm2685_vm9, %v2683_v8, %v2687_v2 }
 0x790   : > { %v2691_v6 = vadd.f32 %v2689_v42, %v4343_v49  ;;  %v2699_v49 = vld [vmem:[#allocation19 + $0x30] sm:$0xff] }
 0x791   : > { %v2674_v3 = vmul.f32 %v2671_v47, %v2664_v16  ;;  %v3897_v16 = vmov 16  }
 0x792   : > { %3466 = vset.pattern.permute.xlu0 %v3897_v16  ;;  %3467 = vset.pattern.permute.xlu1 %v3897_v16 }
 0x793   : > { %v2684_v38 = vadd.f32 %v2681_v63, %v2674_v3  ;;  %2979 = vperm.xlu0 %3466, %v4324_v20   ;;  %2983 = vperm.xlu1 %3467, %v4327_v22  }
 0x795   : > { %vm2686_vm10 = vcmp.ge.f32.partialorder %v2684_v38, 0.0  ;;  %v2688_v45 = vmul.f32 0.25, %v2684_v38 }
 0x797   : > { %v2690_v4 = vsel %vm2686_vm10, %v2684_v38, %v2688_v45 }
 0x798   : > { %v2692_v10 = vadd.f32 %v2690_v4, %v4345_v51  ;;  %v2714_v51 = vpack.c.bf16 %v2700_v56, %v2699_v49 }
 0x79a   : > { %v2720_v34 = vpack.c.bf16 %v2692_v10, %v2691_v6 }
 0x79c   : > { %2755 = vmatpush.bf16.msra.mxu1 %v2720_v34 }
 0x79f   : > { %3272 = vmatmul.msk.bf16.vlgmr.msra.gmra.mxu1 %vm1542_vm4, %v2711_v40 }
 0x7af   : > { %3273 = vmatmul.msk.bf16.gmra.mxu1 %vm1542_vm4, %v2712_v18 }
 0x7bf   : > { %3274 = vmatmul.msk.bf16.gmra.mxu1 %vm1542_vm4, %v2713_v23 }
 0x7cf   : > { %3275 = vmatmul.msk.bf16.gmra.mxu1 %vm1542_vm4, %v2714_v51 }
 0x7df   : > { %3276 = vmatmul.msk.bf16.gmra.mxu1 %vm1542_vm4, %v2715_v58 }
 0x7ef   : > { %3277 = vmatmul.msk.bf16.gmra.mxu1 %vm1542_vm4, %v2716_v35 }
 0x7ff   : > { %3278 = vmatmul.msk.bf16.gmra.mxu1 %vm1542_vm4, %v2717_v11 }
 0x805   : > { %v2980_v28 = vpop.permute.xlu0 %2979 }
 0x80f   : > { %3279 = vmatmul.msk.bf16.gmra.mxu1 %vm1542_vm4, %v2718_v39 }
 0x81c   : > { %v2757_v47 = vpop.f32.mrf.mxu1 }
 0x81f   : > { %3280 = vmatmul.msk.bf16.gmra.mxu1 %vm1542_vm4, %v2719_v46  ;;  %v2984_v46 = vpop.permute.xlu1 %2983 }
 0x824   : > { %v2759_v52 = vpop.f32.mrf.mxu1 }
 0x825   : > { %v2802_v54 = vpack.c.bf16 %v2759_v52, %v2757_v47 }
 0x827   : > { %3282 = vmatmul.msk.bf16.vlgmr.msrb.gmra.mxu0 %vm1602_vm5, %v2802_v54 }
 0x828   : > { %2907 = vmatpush.bf16.msrb.mxu0 %v4279_v21 }
 0x82c   : > { %v2762_v57 = vpop.f32.mrf.mxu1  ;;  %2908 = vmatpush.bf16.msrb.mxu0 %v4282_v27 }
 0x830   : > { %2909 = vmatpush.bf16.msrb.mxu0 %v4285_v33 }
 0x834   : > { %v2764_v30 = vpop.f32.mrf.mxu1 }
 0x835   : > { %v2803_v0 = vpack.c.bf16 %v2764_v30, %v2762_v57 }
 0x837   : > { %3281 = vmatmul.msk.bf16.vlgmr.msrb.gmra.mxu3 %vm1602_vm5, %v2803_v0 }
 0x838   : > { %2887 = vmatpush.bf16.msrb.mxu3 %v4260_v5 }
 0x83c   : > { %v2767_v59 = vpop.f32.mrf.mxu1  ;;  %2888 = vmatpush.bf16.msrb.mxu3 %v4272_v14 }
 0x840   : > { %2889 = vmatpush.bf16.msrb.mxu3 %v4275_v17 }
 0x844   : > { %v2769_v7 = vpop.f32.mrf.mxu1 }
 0x845   : > { %v2838_v62 = vpack.c.bf16 %v2769_v7, %v2767_v59 }
 0x847   : > { %3283 = vmatmul.msk.bf16.vlgmr.msra.gmra.mxu3 %vm1602_vm5, %v2838_v62 }
 0x848   : > { %2927 = vmatpush.bf16.msra.mxu3 %v4289_v53 }
 0x84c   : > { %v2772_v21 = vpop.f32.mrf.mxu1  ;;  %2928 = vmatpush.bf16.msra.mxu3 %v4292_v44 }
 0x850   : > { %2929 = vmatpush.bf16.msra.mxu3 %v4295_v48 }
 0x854   : > { %v2774_v27 = vpop.f32.mrf.mxu1 }
 0x855   : > { %v2858_v33 = vpack.c.bf16 %v2774_v27, %v2772_v21 }
 0x857   : > { %3284 = vmatmul.msk.bf16.vlgmr.msra.gmra.mxu0 %vm1602_vm5, %v2858_v33 }
 0x858   : > { %2947 = vmatpush.bf16.msra.mxu0 %v4299_v55 }
 0x85c   : > { %v2777_v5 = vpop.f32.mrf.mxu1  ;;  %2948 = vmatpush.bf16.msra.mxu0 %v4302_v61 }
 0x860   : > { %2949 = vmatpush.bf16.msra.mxu0 %v4305_v1 }
 0x864   : > { %v2779_v14 = vpop.f32.mrf.mxu1 }
 0x865   : > { %v2878_v17 = vpack.c.bf16 %v2779_v14, %v2777_v5 }
 0x867   : > { %3285 = vmatmul.msk.bf16.vlgmr.msrb.gmra.mxu3 %vm1602_vm5, %v2878_v17 }
 0x86c   : > { %v2782_v53 = vpop.f32.mrf.mxu1 }
 0x874   : > { %v2784_v9 = vpop.f32.mrf.mxu1 }
 0x875   : > { %v2898_v44 = vpack.c.bf16 %v2784_v9, %v2782_v53 }
 0x877   : > { %3286 = vmatmul.msk.bf16.vlgmr.msrb.gmra.mxu0 %vm1602_vm5, %v2898_v44 }
 0x87c   : > { %v2787_v48 = vpop.f32.mrf.mxu1 }
 0x884   : > { %v2789_v8 = vpop.f32.mrf.mxu1 }
 0x885   : > { %v2918_v26 = vpack.c.bf16 %v2789_v8, %v2787_v48 }
 0x887   : > { %3287 = vmatmul.msk.bf16.vlgmr.msra.gmra.mxu3 %vm1602_vm5, %v2918_v26 }
 0x88c   : > { %v2792_v55 = vpop.f32.mrf.mxu1 }
 0x894   : > { %v2794_v61 = vpop.f32.mrf.mxu1 }
 0x895   : > { %v2938_v1 = vpack.c.bf16 %v2794_v61, %v2792_v55 }
 0x897   : > { %3288 = vmatmul.msk.bf16.vlgmr.msra.gmra.mxu0 %vm1602_vm5, %v2938_v1 }
 0x89c   : > { %v2797_v63 = vpop.f32.mrf.mxu1 }
 0x8a4   : > { %v2799_v2 = vpop.f32.mrf.mxu1  ;;  %v2833_v42 = vpop.f32.mrf.mxu0 }
 0x8a5   : > { %v2958_v3 = vpack.c.bf16 %v2799_v2, %v2797_v63 }
 0x8a7   : > { %3289 = vmatmul.msk.bf16.vlgmr.msra.gmra.mxu2 %vm1602_vm5, %v2958_v3 }
 0x8ac   : > { %v2835_v4 = vpop.f32.mrf.mxu0 }
 0x8ba   : > { %v2816_v38 = vpop.f32.mrf.mxu3 }
 0x8bb   : > { %v2834_v15 = vadd.f32 %v2833_v42, %v2816_v38 }
 0x8c2   : > { %v2818_v45 = vpop.f32.mrf.mxu3 }
 0x8c3   : > { %v2836_v49 = vadd.f32 %v2835_v4, %v2818_v45 }
 0x8ca   : > { %v2851_v6 = vpop.f32.mrf.mxu3 }
 0x8cb   : > { %v2856_v60 = vadd.f32 %v2851_v6, %v2834_v15 }
 0x8d2   : > { %v2853_v12 = vpop.f32.mrf.mxu3 }
 0x8d3   : > { %v2857_v51 = vadd.f32 %v2853_v12, %v2836_v49 }
 0x8d4   : > { %v2871_v10 = vpop.f32.mrf.mxu0 }
 0x8d5   : > { %v2876_v18 = vadd.f32 %v2871_v10, %v2856_v60 }
 0x8dc   : > { %v2873_v13 = vpop.f32.mrf.mxu0 }
 0x8dd   : > { %v2877_v25 = vadd.f32 %v2873_v13, %v2857_v51 }
 0x8ea   : > { %v2891_v20 = vpop.f32.mrf.mxu3 }
 0x8eb   : > { %v2896_v50 = vadd.f32 %v2891_v20, %v2876_v18 }
 0x8f2   : > { %v2893_v22 = vpop.f32.mrf.mxu3 }
 0x8f3   : > { %v2897_v35 = vadd.f32 %v2893_v22, %v2877_v25 }
 0x8f4   : > { %v2911_v34 = vpop.f32.mrf.mxu0 }
 0x8f5   : > { %v2916_v56 = vadd.f32 %v2911_v34, %v2896_v50 }
 0x8fc   : > { %v2913_v40 = vpop.f32.mrf.mxu0 }
 0x8fd   : > { %v2917_v11 = vadd.f32 %v2913_v40, %v2897_v35 }
 0x90a   : > { %v2931_v19 = vpop.f32.mrf.mxu3 }
 0x90b   : > { %v2936_v24 = vadd.f32 %v2931_v19, %v2916_v56 }
 0x912   : > { %v2933_v29 = vpop.f32.mrf.mxu3 }
 0x913   : > { %v2937_v39 = vadd.f32 %v2933_v29, %v2917_v11 }
 0x914   : > { %v2951_v23 = vpop.f32.mrf.mxu0 }
 0x915   : > { %v2956_v58 = vadd.f32 %v2951_v23, %v2936_v24 }
 0x91c   : > { %v2953_v37 = vpop.f32.mrf.mxu0 }
 0x91d   : > { %v2957_v41 = vadd.f32 %v2953_v37, %v2937_v39 }
 0x92a   : > { %v2971_v31 = vpop.f32.mrf.mxu2 }
 0x92b   : > { %v2976_v32 = vadd.f32 %v2971_v31, %v2956_v58 }
 0x92d   : > { %v2986_v36 = vadd.f32 %v2980_v28, %v2976_v32 }
 0x92f   : > { %2988 = vst.msk [vmem:[%s686_s21] sm:$0xff] %vm1602_vm5, %v2986_v36 }
 0x932   : > { %v2973_v43 = vpop.f32.mrf.mxu2 }
 0x933   : > { %v2977_v47 = vadd.f32 %v2973_v43, %v2957_v41 }
 0x935   : > { %v2987_v52 = vadd.f32 %v2984_v46, %v2977_v47 }
 0x937   : > { %2989 = vst.msk [vmem:[%s686_s21 + $0x8] sm:$0xff] %vm1602_vm5, %v2987_v52 }
 0x938 PF: > { %s31_s29 = sadd.s32 1, %s3865_s29  }
 0x939   : > { %p28_p7 = scmp.ge.s32.totalorder %s31_s29, 4  }
 0x93b   :  { %30 = sbr.rel (!%p28_p7) target bundleno = 10 (0xa), region = 182 }
 0x940   :  { %3011 = vsyncpa [#allocation3], 1 }
 0x941   :  { %3013 = vsyncpa [#allocation3 + $0x1], 1 }
 0x942   :  { %3014 = vsyncpa [#allocation5], 1 }
 0x943   :  { %3015 = vsyncpa [#allocation8], 1 }
 0x944   :  { %3016 = vsyncpa [#allocation11], 1 }
 0x945   :  { %3017 = vsyncpa [#allocation14], 1 }
 0x946   :  { %3018 = vsyncpa [#allocation17], 1 }
 0x947   :  { %3019 = vsyncpa [#allocation20], 1 }

</bundles_post_ra>
